<compile_context>
chip_gen: v7x
topology: tpu7x:2x2x1
jax: 0.10.0
libtpu: 0.0.40
codegen_flags: <defaults>
</compile_context>

<pallas_src>
import functools

import jax
import jax.numpy as jnp
from jax.experimental import pallas as pl
from jax.experimental.pallas import tpu as pltpu


def _rvq_kernel(x_ref, cbneg2_ref, cbt_ref, cbsq_ref,
                idx_ref, lo_ref, loss_ref,
                *, num_quantizers, codebook_size, tokens_valid):
    """One token tile of residual VQ across all quantizer stages.

    x_ref      : (D, TN)     residual-VQ input tokens (tokens on lanes)
    cbneg2_ref : (Q, C, D)   -2 * codebooks (matmul dtype picked by wrapper)
    cbt_ref    : (Q, D, C)   codebooks transposed (matmul dtype)
    cbsq_ref   : (Q, C, 1)   per-code squared norms (f32)
    idx_ref    : (Q, TN)     argmin code indices per stage (int32)
    lo_ref     : (Q, D, TN)  cumulative quantized output after each stage
    loss_ref   : (1, 1, Q)   this tile's sum of squared commit error per stage
    """
    D, TN = x_ref.shape
    C = codebook_size
    Q = num_quantizers
    mm_dtype = cbt_ref.dtype          # bf16 (fast) or f32 (exact); wrapper picks

    # Mask for padded tokens (only the loss sums need it; padded columns of the
    # other outputs are sliced away by the wrapper).
    lane = jax.lax.broadcasted_iota(jnp.int32, (1, TN), 1)
    valid = ((pl.program_id(0) * TN + lane) < tokens_valid).astype(jnp.float32)

    residual = x_ref[...].astype(jnp.float32)                  # (D, TN)
    quantized_out = jnp.zeros_like(residual)

    c_iota_f = jax.lax.broadcasted_iota(
        jnp.int32, (C, TN), 0).astype(jnp.float32)             # (C, TN)
    q_iota = jax.lax.broadcasted_iota(jnp.int32, (1, 1, Q), 2)
    loss_acc = jnp.zeros((1, 1, Q), jnp.float32)
    idx_rows = []

    # NOTE: both matmuls are plain (M,K)@(K,N) contractions with no in-kernel
    # operand relayout.  K = D is small (badly under-fills a 256-deep MXU on
    # v6e/v7x); the only safe utilization lever is a longer token tile TN --
    # do NOT "fix" it by reshaping inside the kernel (costs XLU/VMEM copies).
    for q in range(Q):                     # Q is small & static -> unrolled
        cbneg2 = cbneg2_ref[q]             # (C, D)  == -2 * codebook
        cbt = cbt_ref[q]                   # (D, C)
        cb_sq = cbsq_ref[q]                # (C, 1)

        # squared distance up to a per-token constant: ||c||^2 - 2 c.r  (MXU)
        scores = jnp.dot(cbneg2, residual.astype(mm_dtype),
                         preferred_element_type=jnp.float32)   # (C, TN)
        dists = cb_sq + scores

        # argmin over C (sublane axis) with first-occurrence tie-breaking
        # (matches torch.argmin)
        min_d = jnp.min(dists, axis=0, keepdims=True)          # (1, TN)
        cand = jnp.where(dists <= min_d, c_iota_f, jnp.float32(C))
        idx_f = jnp.min(cand, axis=0, keepdims=True)           # (1, TN)
        idx_rows.append(idx_f.astype(jnp.int32))

        # codebook gather as one-hot matmul (MXU) -> exact row selection
        onehot = (c_iota_f == idx_f).astype(mm_dtype)          # (C, TN)
        quantized = jnp.dot(cbt, onehot,
                            preferred_element_type=jnp.float32)  # (D, TN)

        # commit loss: reduce over D first, mask only the (1, TN) row
        diff = quantized - residual
        per_tok = jnp.sum(diff * diff, axis=0, keepdims=True)  # (1, TN)
        loss_acc = loss_acc + jnp.where(q_iota == q,
                                        jnp.sum(per_tok * valid), 0.0)

        residual = residual - quantized
        quantized_out = quantized_out + quantized
        lo_ref[q, :, :] = quantized_out.astype(lo_ref.dtype)

    # single lane-dense store of all Q index rows (instead of Q partial stores)
    idx_ref[...] = jnp.concatenate(idx_rows, axis=0)
    loss_ref[...] = loss_acc


def _pick_tile_n(n_tokens, tile_n):
    """Lane-aligned token tile; keeps >= 2 grid steps so the 'parallel' grid
    axis can shard token tiles across both TensorCores on v7x."""
    if tile_n is None:
        tile_n = 1024          # good default; sweep 2048-4096 on v5e/v6e with a
                               # larger vmem_limit_bytes if desired
    tile_n = max(128, (tile_n // 128) * 128)
    tile_n = min(tile_n, pl.cdiv(n_tokens, 128) * 128)
    while tile_n >= 256 and pl.cdiv(n_tokens, tile_n) < 2:
        tile_n = max(128, ((tile_n // 2) // 128) * 128)
    return tile_n


def residual_vq_forward(x, codebooks, *, tile_n=None, use_bf16_matmul=False,
                        layer_out_dtype=jnp.float32,
                        vmem_limit_bytes=48 * 1024 * 1024):
    """Forward pass equivalent to ResidualVQ.forward (codebook_dim == dim).

    x        : (b, d, n) float32
    codebooks: (Q, C, D) float32 with D == d
    returns  : quantized_out (b,d,n) f32, all_indices (b,n,Q) int32,
               all_losses (Q,) f32, layer_out (b,d,n,Q) in `layer_out_dtype`

    use_bf16_matmul=True  : run both MXU matmuls in bf16 (~3x fewer MXU passes
                            than f32 on v6e/v7x); argmin may differ from the
                            f32 torch reference for near-tied codes.
    layer_out_dtype=bf16  : halves the dominant HBM writeback (layer_out).
    vmem_limit_bytes      : 48 MiB default is safe on v7x (64 MiB physical);
                            raise toward ~96 MiB on v5e/v6e for tile_n >= 4096.
    """
    b, d, n = x.shape
    Q, C, D = codebooks.shape
    assert D == d, "codebook_dim must equal dim (Identity projections)"
    assert C < (1 << 24), "float-iota index encoding requires codebook_size < 2**24"
    N = b * n

    tile_n = _pick_tile_n(N, tile_n)
    n_pad = pl.cdiv(N, tile_n) * tile_n
    num_tiles = n_pad // tile_n

    # glue: 'b d n -> d (b n)' (project_in is Identity), pad tokens on lanes.
    x_dn = jnp.transpose(x, (1, 0, 2)).reshape(d, N).astype(jnp.float32)
    if n_pad != N:
        x_dn = jnp.pad(x_dn, ((0, 0), (0, n_pad - N)))

    # Hoisted per-code constants (no per-tile recomputation in the kernel):
    # -2*codebook (exact power-of-two scale), transposed codebook for the
    # gather matmul, squared norms.  Pre-cast to the matmul dtype so the kernel
    # has no per-stage operand casts.
    mm_dtype = jnp.bfloat16 if use_bf16_matmul else jnp.float32
    cb_f32 = codebooks.astype(jnp.float32)                        # (Q, C, D)
    cb_neg2 = (-2.0 * cb_f32).astype(mm_dtype)                    # (Q, C, D)
    cbt = jnp.transpose(cb_f32, (0, 2, 1)).astype(mm_dtype)       # (Q, D, C)
    cb_sq = jnp.sum(cb_f32 * cb_f32, axis=-1, keepdims=True)      # (Q, C, 1)

    kernel = functools.partial(
        _rvq_kernel, num_quantizers=Q, codebook_size=C, tokens_valid=N)

    out_shapes = (
        jax.ShapeDtypeStruct((Q, n_pad), jnp.int32),              # indices
        jax.ShapeDtypeStruct((Q, D, n_pad), layer_out_dtype),     # layer_out
        jax.ShapeDtypeStruct((num_tiles, 1, Q), jnp.float32),     # loss partials
    )
    out_specs = (
        pl.BlockSpec((Q, tile_n), lambda i: (0, i)),
        pl.BlockSpec((Q, D, tile_n), lambda i: (0, 0, i)),
        pl.BlockSpec((1, 1, Q), lambda i: (i, 0, 0)),
    )
    # Codebook-derived inputs have a constant index_map, so the pipeline only
    # fetches them once; at Q*C*D elements their default double-buffering costs
    # well under 0.5 MiB, so no pl.Buffered(1) override (and no silent
    # try/except fallback).
    in_specs = [
        pl.BlockSpec((D, tile_n), lambda i: (0, i)),
        pl.BlockSpec((Q, C, D), lambda i: (0, 0, 0)),
        pl.BlockSpec((Q, D, C), lambda i: (0, 0, 0)),
        pl.BlockSpec((Q, C, 1), lambda i: (0, 0, 0)),
    ]

    lo_bytes = jnp.dtype(layer_out_dtype).itemsize
    cb_bytes = jnp.dtype(mm_dtype).itemsize
    cost = pl.CostEstimate(
        flops=4 * Q * n_pad * C * D,          # distance + one-hot gather matmuls
        transcendentals=0,
        bytes_accessed=(4 * n_pad * D                          # x
                        + 2 * cb_bytes * Q * C * D + 4 * Q * C  # codebook consts
                        + 4 * Q * n_pad                        # indices
                        + lo_bytes * Q * n_pad * D             # layer_out
                        + 4 * num_tiles * Q))                  # loss partials

    idx, lo, loss = pl.pallas_call(
        kernel,
        grid=(num_tiles,),
        in_specs=in_specs,
        out_specs=out_specs,
        out_shape=out_shapes,
        compiler_params=pltpu.CompilerParams(
            # No revisited accumulator -> fully parallel grid (v7x can shard
            # token tiles across both TensorCores).
            dimension_semantics=("parallel",),
            vmem_limit_bytes=vmem_limit_bytes),
        cost_estimate=cost,
    )(x_dn, cb_neg2, cbt, cb_sq)

    # glue: back to the PyTorch layouts (slices drop the token padding).
    # quantized_out == layer_out of the last stage; no separate HBM array.
    quantized_out = (lo[Q - 1, :, :N].astype(jnp.float32)
                     .reshape(d, b, n).transpose(1, 0, 2))               # b d n
    all_indices = idx[:, :N].reshape(Q, b, n).transpose(1, 2, 0)         # b n Q
    layer_out = lo[:, :, :N].reshape(Q, d, b, n).transpose(2, 1, 3, 0)   # b d n Q
    all_losses = jnp.sum(loss, axis=(0, 1)) / jnp.float32(b * d * n)     # (Q,)
    # project_out is Identity (codebook_dim == dim)
    return quantized_out, all_indices, all_losses, layer_out


def _reference_forward(x, codebooks):
    """Pure-JAX reference of the same semantics (for validation)."""
    b, d, n = x.shape
    Q, C, D = codebooks.shape
    xf = jnp.transpose(x, (0, 2, 1)).reshape(-1, d)
    residual = xf
    qout = jnp.zeros_like(xf)
    idxs, losses, louts = [], [], []
    for q in range(Q):
        cb = codebooks[q]
        scores = jnp.dot(residual, cb.T, precision=jax.lax.Precision.HIGHEST)
        dist = (jnp.sum(residual ** 2, -1, keepdims=True)
                - 2.0 * scores
                + jnp.sum(cb ** 2, -1)[None, :])
        idx = jnp.argmin(dist, axis=-1)
        quant = cb[idx]
        losses.append(jnp.mean((quant - residual) ** 2))
        residual = residual - quant
        qout = qout + quant
        idxs.append(idx)
        louts.append(qout)
    quantized_out = qout.reshape(b, n, d).transpose(0, 2, 1)
    all_indices = jnp.stack(idxs, axis=-1).reshape(b, n, Q).astype(jnp.int32)
    all_losses = jnp.stack(losses)
    layer_out = jnp.stack(louts, axis=0).reshape(Q, b, n, d).transpose(1, 3, 2, 0)
    return quantized_out, all_indices, all_losses, layer_out


if __name__ == "__main__":
    key = jax.random.PRNGKey(0)
    kx, kc = jax.random.split(key)

    # small shapes consistent with the module's forward: x is (b, d, n)
    b, dim, n = 2, 32, 320           # N = 640 tokens -> 3 lane-aligned tiles
    num_quantizers, codebook_size = 4, 128

    x = jax.random.normal(kx, (b, dim, n), jnp.float32)
    codebooks = 0.5 * jax.random.normal(
        kc, (num_quantizers, codebook_size, dim), jnp.float32)

    # Exact (f32) path: argmin / gather parity with the torch reference.
    outs = residual_vq_forward(x, codebooks)
    outs = jax.block_until_ready(outs)
    quantized_out, all_indices, all_losses, layer_out = outs

    assert quantized_out.shape == (b, dim, n)
    assert all_indices.shape == (b, n, num_quantizers)
    assert all_losses.shape == (num_quantizers,)
    assert layer_out.shape == (b, dim, n, num_quantizers)

    ref_q, ref_i, ref_l, ref_lo = _reference_forward(x, codebooks)
    assert jnp.allclose(quantized_out, ref_q, atol=1e-3, rtol=1e-3)
    assert bool(jnp.all(all_indices == ref_i))
    assert jnp.allclose(all_losses, ref_l, atol=1e-4, rtol=1e-3)
    assert jnp.allclose(layer_out, ref_lo, atol=1e-3, rtol=1e-3)

    # Fast path: bf16 MXU matmuls + bf16 layer_out writeback (perf mode).
    fast = residual_vq_forward(x, codebooks, use_bf16_matmul=True,
                               layer_out_dtype=jnp.bfloat16)
    fast = jax.block_until_ready(fast)
    f_q, f_i, f_l, f_lo = fast
    assert f_q.shape == (b, dim, n)
    assert f_i.shape == (b, n, num_quantizers)
    assert f_l.shape == (num_quantizers,)
    assert f_lo.shape == (b, dim, n, num_quantizers)
    assert bool(jnp.all((f_i >= 0) & (f_i < codebook_size)))
    assert bool(jnp.all(jnp.isfinite(f_q)))
    assert bool(jnp.all(jnp.isfinite(f_l)))
    assert float(jnp.mean(jnp.abs(f_q - ref_q))) < 0.1   # loose sanity check

    print("KERNEL_OK")
</pallas_src>

<mosaic_0001>
module attributes {stable_mosaic.version = 11 : i64} {
  func.func @_rvq_kernel(%arg0: i32, %arg1: memref<32x256xf32, #tpu.memory_space<vmem>>, %arg2: memref<4x128x32xf32, #tpu.memory_space<vmem>>, %arg3: memref<4x32x128xf32, #tpu.memory_space<vmem>>, %arg4: memref<4x128x1xf32, #tpu.memory_space<vmem>>, %arg5: memref<4x256xi32, #tpu.memory_space<vmem>>, %arg6: memref<4x32x256xf32, #tpu.memory_space<vmem>>, %arg7: memref<1x1x4xf32, #tpu.memory_space<vmem>>) attributes {dimension_semantics = [#tpu.dimension_semantics<parallel>], iteration_bounds = array<i64: 3>, scalar_prefetch = 0 : i64, scratch_operands = 0 : i64, tpu.core_type = #tpu.core_type<tc>, window_params = [{transform_indices = @transform_0, window_bounds = array<i64: 32, 256>}, {pipeline_mode = #tpu.pipeline_mode<synchronous>, transform_indices = @transform_1, window_bounds = array<i64: 4, 128, 32>}, {pipeline_mode = #tpu.pipeline_mode<synchronous>, transform_indices = @transform_2, window_bounds = array<i64: 4, 32, 128>}, {pipeline_mode = #tpu.pipeline_mode<synchronous>, transform_indices = @transform_3, window_bounds = array<i64: 4, 128, 1>}, {transform_indices = @transform_4, window_bounds = array<i64: 4, 256>}, {transform_indices = @transform_5, window_bounds = array<i64: 4, 32, 256>}, {transform_indices = @transform_6, window_bounds = array<i64: 1, 1, 4>}]} {
    %0 = tpu.iota {dimensions = array<i32: 1>} : vector<1x256xi32>
    %c256_i32 = arith.constant 256 : i32
    %1 = arith.muli %arg0, %c256_i32 : i32
    %2 = vector.broadcast %1 : i32 to vector<1x256xi32>
    %3 = arith.addi %2, %0 : vector<1x256xi32>
    %c640_i32 = arith.constant 640 : i32
    %4 = vector.broadcast %c640_i32 : i32 to vector<1x256xi32>
    %5 = arith.cmpi slt, %3, %4 : vector<1x256xi32>
    %6 = arith.extui %5 : vector<1x256xi1> to vector<1x256xi32>
    %7 = arith.sitofp %6 : vector<1x256xi32> to vector<1x256xf32>
    %c0 = arith.constant 0 : index
    %c0_0 = arith.constant 0 : index
    %8 = vector.load %arg1[%c0, %c0_0] : memref<32x256xf32, #tpu.memory_space<vmem>>, vector<32x256xf32>
    %cst = arith.constant 0.000000e+00 : f32
    %9 = vector.broadcast %cst : f32 to vector<32x256xf32>
    %10 = tpu.iota {dimensions = array<i32: 0>} : vector<128x256xi32>
    %11 = arith.sitofp %10 : vector<128x256xi32> to vector<128x256xf32>
    %12 = tpu.iota {dimensions = array<i32: 2>} : vector<1x1x4xi32>
    %cst_1 = arith.constant 0.000000e+00 : f32
    %13 = vector.broadcast %cst_1 : f32 to vector<1x1x4xf32>
    %c0_2 = arith.constant 0 : index
    %c0_3 = arith.constant 0 : index
    %c0_4 = arith.constant 0 : index
    %14 = vector.load %arg2[%c0_2, %c0_3, %c0_4] : memref<4x128x32xf32, #tpu.memory_space<vmem>>, vector<1x128x32xf32>
    %15 = vector.shape_cast %14 : vector<1x128x32xf32> to vector<128x32xf32>
    %c0_5 = arith.constant 0 : index
    %c0_6 = arith.constant 0 : index
    %c0_7 = arith.constant 0 : index
    %16 = vector.load %arg3[%c0_5, %c0_6, %c0_7] : memref<4x32x128xf32, #tpu.memory_space<vmem>>, vector<1x32x128xf32>
    %17 = vector.shape_cast %16 : vector<1x32x128xf32> to vector<32x128xf32>
    %c0_8 = arith.constant 0 : index
    %c0_9 = arith.constant 0 : index
    %c0_10 = arith.constant 0 : index
    %18 = vector.load %arg4[%c0_8, %c0_9, %c0_10] : memref<4x128x1xf32, #tpu.memory_space<vmem>>, vector<1x128x1xf32>
    %19 = vector.shape_cast %18 : vector<1x128x1xf32> to vector<128x1xf32>
    %cst_11 = arith.constant dense<0.000000e+00> : vector<128x256xf32>
    %20 = tpu.matmul %15, %8, %cst_11 {dimension_numbers = #tpu.dot_dimension_numbers<[1], [0], [0], [1], [0, 0, 1, 1], [], []>} : vector<128x32xf32>, vector<32x256xf32>, vector<128x256xf32> -> vector<128x256xf32>
    %21 = vector.broadcast %19 : vector<128x1xf32> to vector<128x256xf32>
    %22 = arith.addf %21, %20 : vector<128x256xf32>
    %cst_12 = arith.constant dense<0x7F800000> : vector<256xf32>
    %23 = vector.multi_reduction <minimumf>, %22, %cst_12 [0] : vector<128x256xf32> to vector<256xf32>
    %24 = vector.shape_cast %23 : vector<256xf32> to vector<1x256xf32>
    %25 = vector.broadcast %24 : vector<1x256xf32> to vector<128x256xf32>
    %26 = arith.cmpf ole, %22, %25 : vector<128x256xf32>
    %cst_13 = arith.constant 1.280000e+02 : f32
    %27 = vector.broadcast %cst_13 : f32 to vector<128x256xf32>
    %28 = arith.select %26, %11, %27 : vector<128x256xi1>, vector<128x256xf32>
    %cst_14 = arith.constant dense<0x7F800000> : vector<256xf32>
    %29 = vector.multi_reduction <minimumf>, %28, %cst_14 [0] : vector<128x256xf32> to vector<256xf32>
    %30 = vector.shape_cast %29 : vector<256xf32> to vector<1x256xf32>
    %31 = arith.fptosi %30 : vector<1x256xf32> to vector<1x256xi32>
    %32 = vector.broadcast %30 : vector<1x256xf32> to vector<128x256xf32>
    %33 = arith.cmpf oeq, %11, %32 : vector<128x256xf32>
    %34 = arith.extui %33 : vector<128x256xi1> to vector<128x256xi32>
    %35 = arith.sitofp %34 : vector<128x256xi32> to vector<128x256xf32>
    %cst_15 = arith.constant dense<0.000000e+00> : vector<32x256xf32>
    %36 = tpu.matmul %17, %35, %cst_15 {dimension_numbers = #tpu.dot_dimension_numbers<[1], [0], [0], [1], [0, 0, 1, 1], [], []>} : vector<32x128xf32>, vector<128x256xf32>, vector<32x256xf32> -> vector<32x256xf32>
    %37 = arith.subf %36, %8 : vector<32x256xf32>
    %38 = arith.mulf %37, %37 : vector<32x256xf32>
    %cst_16 = arith.constant dense<0.000000e+00> : vector<256xf32>
    %39 = vector.multi_reduction <add>, %38, %cst_16 [0] : vector<32x256xf32> to vector<256xf32>
    %40 = vector.shape_cast %39 : vector<256xf32> to vector<1x256xf32>
    %c0_i32 = arith.constant 0 : i32
    %41 = vector.broadcast %c0_i32 : i32 to vector<1x1x4xi32>
    %42 = arith.cmpi eq, %12, %41 : vector<1x1x4xi32>
    %43 = arith.mulf %40, %7 : vector<1x256xf32>
    %44 = vector.shape_cast %43 : vector<1x256xf32> to vector<1x1x256xf32>
    %cst_17 = arith.constant dense<0.000000e+00> : vector<1xf32>
    %45 = vector.multi_reduction <add>, %44, %cst_17 [1, 2] : vector<1x1x256xf32> to vector<1xf32>
    %46 = vector.shape_cast %45 : vector<1xf32> to vector<1x1x1xf32>
    %47 = vector.extract %46[0, 0, 0] : f32 from vector<1x1x1xf32>
    %cst_18 = arith.constant 0.000000e+00 : f32
    %48 = vector.broadcast %47 : f32 to vector<1x1x4xf32>
    %49 = vector.broadcast %cst_18 : f32 to vector<1x1x4xf32>
    %50 = arith.select %42, %48, %49 : vector<1x1x4xi1>, vector<1x1x4xf32>
    %51 = arith.addf %13, %50 : vector<1x1x4xf32>
    %52 = arith.subf %8, %36 : vector<32x256xf32>
    %53 = arith.addf %9, %36 : vector<32x256xf32>
    %c0_19 = arith.constant 0 : index
    %c0_20 = arith.constant 0 : index
    %c0_21 = arith.constant 0 : index
    %54 = vector.load %arg6[%c0_19, %c0_20, %c0_21] : memref<4x32x256xf32, #tpu.memory_space<vmem>>, vector<1x32x256xf32>
    %55 = vector.shape_cast %54 : vector<1x32x256xf32> to vector<32x256xf32>
    %56 = vector.shape_cast %53 : vector<32x256xf32> to vector<1x32x256xf32>
    tpu.vector_store %arg6[%c0_19, %c0_20, %c0_21], %56 {strides = array<i32>} : memref<4x32x256xf32, #tpu.memory_space<vmem>>, vector<1x32x256xf32>,
    %c1 = arith.constant 1 : index
    %c0_22 = arith.constant 0 : index
    %c0_23 = arith.constant 0 : index
    %57 = vector.load %arg2[%c1, %c0_22, %c0_23] : memref<4x128x32xf32, #tpu.memory_space<vmem>>, vector<1x128x32xf32>
    %58 = vector.shape_cast %57 : vector<1x128x32xf32> to vector<128x32xf32>
    %c1_24 = arith.constant 1 : index
    %c0_25 = arith.constant 0 : index
    %c0_26 = arith.constant 0 : index
    %59 = vector.load %arg3[%c1_24, %c0_25, %c0_26] : memref<4x32x128xf32, #tpu.memory_space<vmem>>, vector<1x32x128xf32>
    %60 = vector.shape_cast %59 : vector<1x32x128xf32> to vector<32x128xf32>
    %c1_27 = arith.constant 1 : index
    %c0_28 = arith.constant 0 : index
    %c0_29 = arith.constant 0 : index
    %61 = vector.load %arg4[%c1_27, %c0_28, %c0_29] : memref<4x128x1xf32, #tpu.memory_space<vmem>>, vector<1x128x1xf32>
    %62 = vector.shape_cast %61 : vector<1x128x1xf32> to vector<128x1xf32>
    %cst_30 = arith.constant dense<0.000000e+00> : vector<128x256xf32>
    %63 = tpu.matmul %58, %52, %cst_30 {dimension_numbers = #tpu.dot_dimension_numbers<[1], [0], [0], [1], [0, 0, 1, 1], [], []>} : vector<128x32xf32>, vector<32x256xf32>, vector<128x256xf32> -> vector<128x256xf32>
    %64 = vector.broadcast %62 : vector<128x1xf32> to vector<128x256xf32>
    %65 = arith.addf %64, %63 : vector<128x256xf32>
    %cst_31 = arith.constant dense<0x7F800000> : vector<256xf32>
    %66 = vector.multi_reduction <minimumf>, %65, %cst_31 [0] : vector<128x256xf32> to vector<256xf32>
    %67 = vector.shape_cast %66 : vector<256xf32> to vector<1x256xf32>
    %68 = vector.broadcast %67 : vector<1x256xf32> to vector<128x256xf32>
    %69 = arith.cmpf ole, %65, %68 : vector<128x256xf32>
    %cst_32 = arith.constant 1.280000e+02 : f32
    %70 = vector.broadcast %cst_32 : f32 to vector<128x256xf32>
    %71 = arith.select %69, %11, %70 : vector<128x256xi1>, vector<128x256xf32>
    %cst_33 = arith.constant dense<0x7F800000> : vector<256xf32>
    %72 = vector.multi_reduction <minimumf>, %71, %cst_33 [0] : vector<128x256xf32> to vector<256xf32>
    %73 = vector.shape_cast %72 : vector<256xf32> to vector<1x256xf32>
    %74 = arith.fptosi %73 : vector<1x256xf32> to vector<1x256xi32>
    %75 = vector.broadcast %73 : vector<1x256xf32> to vector<128x256xf32>
    %76 = arith.cmpf oeq, %11, %75 : vector<128x256xf32>
    %77 = arith.extui %76 : vector<128x256xi1> to vector<128x256xi32>
    %78 = arith.sitofp %77 : vector<128x256xi32> to vector<128x256xf32>
    %cst_34 = arith.constant dense<0.000000e+00> : vector<32x256xf32>
    %79 = tpu.matmul %60, %78, %cst_34 {dimension_numbers = #tpu.dot_dimension_numbers<[1], [0], [0], [1], [0, 0, 1, 1], [], []>} : vector<32x128xf32>, vector<128x256xf32>, vector<32x256xf32> -> vector<32x256xf32>
    %80 = arith.subf %79, %52 : vector<32x256xf32>
    %81 = arith.mulf %80, %80 : vector<32x256xf32>
    %cst_35 = arith.constant dense<0.000000e+00> : vector<256xf32>
    %82 = vector.multi_reduction <add>, %81, %cst_35 [0] : vector<32x256xf32> to vector<256xf32>
    %83 = vector.shape_cast %82 : vector<256xf32> to vector<1x256xf32>
    %c1_i32 = arith.constant 1 : i32
    %84 = vector.broadcast %c1_i32 : i32 to vector<1x1x4xi32>
    %85 = arith.cmpi eq, %12, %84 : vector<1x1x4xi32>
    %86 = arith.mulf %83, %7 : vector<1x256xf32>
    %87 = vector.shape_cast %86 : vector<1x256xf32> to vector<1x1x256xf32>
    %cst_36 = arith.constant dense<0.000000e+00> : vector<1xf32>
    %88 = vector.multi_reduction <add>, %87, %cst_36 [1, 2] : vector<1x1x256xf32> to vector<1xf32>
    %89 = vector.shape_cast %88 : vector<1xf32> to vector<1x1x1xf32>
    %90 = vector.extract %89[0, 0, 0] : f32 from vector<1x1x1xf32>
    %cst_37 = arith.constant 0.000000e+00 : f32
    %91 = vector.broadcast %90 : f32 to vector<1x1x4xf32>
    %92 = vector.broadcast %cst_37 : f32 to vector<1x1x4xf32>
    %93 = arith.select %85, %91, %92 : vector<1x1x4xi1>, vector<1x1x4xf32>
    %94 = arith.addf %51, %93 : vector<1x1x4xf32>
    %95 = arith.subf %52, %79 : vector<32x256xf32>
    %96 = arith.addf %53, %79 : vector<32x256xf32>
    %c1_38 = arith.constant 1 : index
    %c0_39 = arith.constant 0 : index
    %c0_40 = arith.constant 0 : index
    %97 = vector.load %arg6[%c1_38, %c0_39, %c0_40] : memref<4x32x256xf32, #tpu.memory_space<vmem>>, vector<1x32x256xf32>
    %98 = vector.shape_cast %97 : vector<1x32x256xf32> to vector<32x256xf32>
    %99 = vector.shape_cast %96 : vector<32x256xf32> to vector<1x32x256xf32>
    tpu.vector_store %arg6[%c1_38, %c0_39, %c0_40], %99 {strides = array<i32>} : memref<4x32x256xf32, #tpu.memory_space<vmem>>, vector<1x32x256xf32>,
    %c2 = arith.constant 2 : index
    %c0_41 = arith.constant 0 : index
    %c0_42 = arith.constant 0 : index
    %100 = vector.load %arg2[%c2, %c0_41, %c0_42] : memref<4x128x32xf32, #tpu.memory_space<vmem>>, vector<1x128x32xf32>
    %101 = vector.shape_cast %100 : vector<1x128x32xf32> to vector<128x32xf32>
    %c2_43 = arith.constant 2 : index
    %c0_44 = arith.constant 0 : index
    %c0_45 = arith.constant 0 : index
    %102 = vector.load %arg3[%c2_43, %c0_44, %c0_45] : memref<4x32x128xf32, #tpu.memory_space<vmem>>, vector<1x32x128xf32>
    %103 = vector.shape_cast %102 : vector<1x32x128xf32> to vector<32x128xf32>
    %c2_46 = arith.constant 2 : index
    %c0_47 = arith.constant 0 : index
    %c0_48 = arith.constant 0 : index
    %104 = vector.load %arg4[%c2_46, %c0_47, %c0_48] : memref<4x128x1xf32, #tpu.memory_space<vmem>>, vector<1x128x1xf32>
    %105 = vector.shape_cast %104 : vector<1x128x1xf32> to vector<128x1xf32>
    %cst_49 = arith.constant dense<0.000000e+00> : vector<128x256xf32>
    %106 = tpu.matmul %101, %95, %cst_49 {dimension_numbers = #tpu.dot_dimension_numbers<[1], [0], [0], [1], [0, 0, 1, 1], [], []>} : vector<128x32xf32>, vector<32x256xf32>, vector<128x256xf32> -> vector<128x256xf32>
    %107 = vector.broadcast %105 : vector<128x1xf32> to vector<128x256xf32>
    %108 = arith.addf %107, %106 : vector<128x256xf32>
    %cst_50 = arith.constant dense<0x7F800000> : vector<256xf32>
    %109 = vector.multi_reduction <minimumf>, %108, %cst_50 [0] : vector<128x256xf32> to vector<256xf32>
    %110 = vector.shape_cast %109 : vector<256xf32> to vector<1x256xf32>
    %111 = vector.broadcast %110 : vector<1x256xf32> to vector<128x256xf32>
    %112 = arith.cmpf ole, %108, %111 : vector<128x256xf32>
    %cst_51 = arith.constant 1.280000e+02 : f32
    %113 = vector.broadcast %cst_51 : f32 to vector<128x256xf32>
    %114 = arith.select %112, %11, %113 : vector<128x256xi1>, vector<128x256xf32>
    %cst_52 = arith.constant dense<0x7F800000> : vector<256xf32>
    %115 = vector.multi_reduction <minimumf>, %114, %cst_52 [0] : vector<128x256xf32> to vector<256xf32>
    %116 = vector.shape_cast %115 : vector<256xf32> to vector<1x256xf32>
    %117 = arith.fptosi %116 : vector<1x256xf32> to vector<1x256xi32>
    %118 = vector.broadcast %116 : vector<1x256xf32> to vector<128x256xf32>
    %119 = arith.cmpf oeq, %11, %118 : vector<128x256xf32>
    %120 = arith.extui %119 : vector<128x256xi1> to vector<128x256xi32>
    %121 = arith.sitofp %120 : vector<128x256xi32> to vector<128x256xf32>
    %cst_53 = arith.constant dense<0.000000e+00> : vector<32x256xf32>
    %122 = tpu.matmul %103, %121, %cst_53 {dimension_numbers = #tpu.dot_dimension_numbers<[1], [0], [0], [1], [0, 0, 1, 1], [], []>} : vector<32x128xf32>, vector<128x256xf32>, vector<32x256xf32> -> vector<32x256xf32>
    %123 = arith.subf %122, %95 : vector<32x256xf32>
    %124 = arith.mulf %123, %123 : vector<32x256xf32>
    %cst_54 = arith.constant dense<0.000000e+00> : vector<256xf32>
    %125 = vector.multi_reduction <add>, %124, %cst_54 [0] : vector<32x256xf32> to vector<256xf32>
    %126 = vector.shape_cast %125 : vector<256xf32> to vector<1x256xf32>
    %c2_i32 = arith.constant 2 : i32
    %127 = vector.broadcast %c2_i32 : i32 to vector<1x1x4xi32>
    %128 = arith.cmpi eq, %12, %127 : vector<1x1x4xi32>
    %129 = arith.mulf %126, %7 : vector<1x256xf32>
    %130 = vector.shape_cast %129 : vector<1x256xf32> to vector<1x1x256xf32>
    %cst_55 = arith.constant dense<0.000000e+00> : vector<1xf32>
    %131 = vector.multi_reduction <add>, %130, %cst_55 [1, 2] : vector<1x1x256xf32> to vector<1xf32>
    %132 = vector.shape_cast %131 : vector<1xf32> to vector<1x1x1xf32>
    %133 = vector.extract %132[0, 0, 0] : f32 from vector<1x1x1xf32>
    %cst_56 = arith.constant 0.000000e+00 : f32
    %134 = vector.broadcast %133 : f32 to vector<1x1x4xf32>
    %135 = vector.broadcast %cst_56 : f32 to vector<1x1x4xf32>
    %136 = arith.select %128, %134, %135 : vector<1x1x4xi1>, vector<1x1x4xf32>
    %137 = arith.addf %94, %136 : vector<1x1x4xf32>
    %138 = arith.subf %95, %122 : vector<32x256xf32>
    %139 = arith.addf %96, %122 : vector<32x256xf32>
    %c2_57 = arith.constant 2 : index
    %c0_58 = arith.constant 0 : index
    %c0_59 = arith.constant 0 : index
    %140 = vector.load %arg6[%c2_57, %c0_58, %c0_59] : memref<4x32x256xf32, #tpu.memory_space<vmem>>, vector<1x32x256xf32>
    %141 = vector.shape_cast %140 : vector<1x32x256xf32> to vector<32x256xf32>
    %142 = vector.shape_cast %139 : vector<32x256xf32> to vector<1x32x256xf32>
    tpu.vector_store %arg6[%c2_57, %c0_58, %c0_59], %142 {strides = array<i32>} : memref<4x32x256xf32, #tpu.memory_space<vmem>>, vector<1x32x256xf32>,
    %c3 = arith.constant 3 : index
    %c0_60 = arith.constant 0 : index
    %c0_61 = arith.constant 0 : index
    %143 = vector.load %arg2[%c3, %c0_60, %c0_61] : memref<4x128x32xf32, #tpu.memory_space<vmem>>, vector<1x128x32xf32>
    %144 = vector.shape_cast %143 : vector<1x128x32xf32> to vector<128x32xf32>
    %c3_62 = arith.constant 3 : index
    %c0_63 = arith.constant 0 : index
    %c0_64 = arith.constant 0 : index
    %145 = vector.load %arg3[%c3_62, %c0_63, %c0_64] : memref<4x32x128xf32, #tpu.memory_space<vmem>>, vector<1x32x128xf32>
    %146 = vector.shape_cast %145 : vector<1x32x128xf32> to vector<32x128xf32>
    %c3_65 = arith.constant 3 : index
    %c0_66 = arith.constant 0 : index
    %c0_67 = arith.constant 0 : index
    %147 = vector.load %arg4[%c3_65, %c0_66, %c0_67] : memref<4x128x1xf32, #tpu.memory_space<vmem>>, vector<1x128x1xf32>
    %148 = vector.shape_cast %147 : vector<1x128x1xf32> to vector<128x1xf32>
    %cst_68 = arith.constant dense<0.000000e+00> : vector<128x256xf32>
    %149 = tpu.matmul %144, %138, %cst_68 {dimension_numbers = #tpu.dot_dimension_numbers<[1], [0], [0], [1], [0, 0, 1, 1], [], []>} : vector<128x32xf32>, vector<32x256xf32>, vector<128x256xf32> -> vector<128x256xf32>
    %150 = vector.broadcast %148 : vector<128x1xf32> to vector<128x256xf32>
    %151 = arith.addf %150, %149 : vector<128x256xf32>
    %cst_69 = arith.constant dense<0x7F800000> : vector<256xf32>
    %152 = vector.multi_reduction <minimumf>, %151, %cst_69 [0] : vector<128x256xf32> to vector<256xf32>
    %153 = vector.shape_cast %152 : vector<256xf32> to vector<1x256xf32>
    %154 = vector.broadcast %153 : vector<1x256xf32> to vector<128x256xf32>
    %155 = arith.cmpf ole, %151, %154 : vector<128x256xf32>
    %cst_70 = arith.constant 1.280000e+02 : f32
    %156 = vector.broadcast %cst_70 : f32 to vector<128x256xf32>
    %157 = arith.select %155, %11, %156 : vector<128x256xi1>, vector<128x256xf32>
    %cst_71 = arith.constant dense<0x7F800000> : vector<256xf32>
    %158 = vector.multi_reduction <minimumf>, %157, %cst_71 [0] : vector<128x256xf32> to vector<256xf32>
    %159 = vector.shape_cast %158 : vector<256xf32> to vector<1x256xf32>
    %160 = arith.fptosi %159 : vector<1x256xf32> to vector<1x256xi32>
    %161 = vector.broadcast %159 : vector<1x256xf32> to vector<128x256xf32>
    %162 = arith.cmpf oeq, %11, %161 : vector<128x256xf32>
    %163 = arith.extui %162 : vector<128x256xi1> to vector<128x256xi32>
    %164 = arith.sitofp %163 : vector<128x256xi32> to vector<128x256xf32>
    %cst_72 = arith.constant dense<0.000000e+00> : vector<32x256xf32>
    %165 = tpu.matmul %146, %164, %cst_72 {dimension_numbers = #tpu.dot_dimension_numbers<[1], [0], [0], [1], [0, 0, 1, 1], [], []>} : vector<32x128xf32>, vector<128x256xf32>, vector<32x256xf32> -> vector<32x256xf32>
    %166 = arith.subf %165, %138 : vector<32x256xf32>
    %167 = arith.mulf %166, %166 : vector<32x256xf32>
    %cst_73 = arith.constant dense<0.000000e+00> : vector<256xf32>
    %168 = vector.multi_reduction <add>, %167, %cst_73 [0] : vector<32x256xf32> to vector<256xf32>
    %169 = vector.shape_cast %168 : vector<256xf32> to vector<1x256xf32>
    %c3_i32 = arith.constant 3 : i32
    %170 = vector.broadcast %c3_i32 : i32 to vector<1x1x4xi32>
    %171 = arith.cmpi eq, %12, %170 : vector<1x1x4xi32>
    %172 = arith.mulf %169, %7 : vector<1x256xf32>
    %173 = vector.shape_cast %172 : vector<1x256xf32> to vector<1x1x256xf32>
    %cst_74 = arith.constant dense<0.000000e+00> : vector<1xf32>
    %174 = vector.multi_reduction <add>, %173, %cst_74 [1, 2] : vector<1x1x256xf32> to vector<1xf32>
    %175 = vector.shape_cast %174 : vector<1xf32> to vector<1x1x1xf32>
    %176 = vector.extract %175[0, 0, 0] : f32 from vector<1x1x1xf32>
    %cst_75 = arith.constant 0.000000e+00 : f32
    %177 = vector.broadcast %176 : f32 to vector<1x1x4xf32>
    %178 = vector.broadcast %cst_75 : f32 to vector<1x1x4xf32>
    %179 = arith.select %171, %177, %178 : vector<1x1x4xi1>, vector<1x1x4xf32>
    %180 = arith.addf %137, %179 : vector<1x1x4xf32>
    %181 = arith.addf %139, %165 : vector<32x256xf32>
    %c3_76 = arith.constant 3 : index
    %c0_77 = arith.constant 0 : index
    %c0_78 = arith.constant 0 : index
    %182 = vector.load %arg6[%c3_76, %c0_77, %c0_78] : memref<4x32x256xf32, #tpu.memory_space<vmem>>, vector<1x32x256xf32>
    %183 = vector.shape_cast %182 : vector<1x32x256xf32> to vector<32x256xf32>
    %184 = vector.shape_cast %181 : vector<32x256xf32> to vector<1x32x256xf32>
    tpu.vector_store %arg6[%c3_76, %c0_77, %c0_78], %184 {strides = array<i32>} : memref<4x32x256xf32, #tpu.memory_space<vmem>>, vector<1x32x256xf32>,
    %185 = tpu.concatenate %31, %74, %117, %160 in 0 : vector<1x256xi32>, vector<1x256xi32>, vector<1x256xi32>, vector<1x256xi32> -> vector<4x256xi32>
    %c0_79 = arith.constant 0 : index
    %c0_80 = arith.constant 0 : index
    %186 = vector.load %arg5[%c0_79, %c0_80] : memref<4x256xi32, #tpu.memory_space<vmem>>, vector<4x256xi32>
    tpu.vector_store %arg5[%c0_79, %c0_80], %185 {strides = array<i32>} : memref<4x256xi32, #tpu.memory_space<vmem>>, vector<4x256xi32>,
    %c0_81 = arith.constant 0 : index
    %c0_82 = arith.constant 0 : index
    %c0_83 = arith.constant 0 : index
    %187 = vector.load %arg7[%c0_81, %c0_82, %c0_83] : memref<1x1x4xf32, #tpu.memory_space<vmem>>, vector<1x1x4xf32>
    tpu.vector_store %arg7[%c0_81, %c0_82, %c0_83], %180 {strides = array<i32>} : memref<1x1x4xf32, #tpu.memory_space<vmem>>, vector<1x1x4xf32>,
    return
  }
  func.func @transform_0(%arg0: i32) -> (i32, i32) {
    %c0_i32 = arith.constant 0 : i32
    %c0_i32_0 = arith.constant 0 : i32
    return %c0_i32, %arg0 : i32, i32
  }
  func.func @transform_1(%arg0: i32) -> (i32, i32, i32) {
    %c0_i32 = arith.constant 0 : i32
    %c0_i32_0 = arith.constant 0 : i32
    %c0_i32_1 = arith.constant 0 : i32
    %c0_i32_2 = arith.constant 0 : i32
    return %c0_i32, %c0_i32_0, %c0_i32_1 : i32, i32, i32
  }
  func.func @transform_2(%arg0: i32) -> (i32, i32, i32) {
    %c0_i32 = arith.constant 0 : i32
    %c0_i32_0 = arith.constant 0 : i32
    %c0_i32_1 = arith.constant 0 : i32
    %c0_i32_2 = arith.constant 0 : i32
    return %c0_i32, %c0_i32_0, %c0_i32_1 : i32, i32, i32
  }
  func.func @transform_3(%arg0: i32) -> (i32, i32, i32) {
    %c0_i32 = arith.constant 0 : i32
    %c0_i32_0 = arith.constant 0 : i32
    %c0_i32_1 = arith.constant 0 : i32
    %c0_i32_2 = arith.constant 0 : i32
    return %c0_i32, %c0_i32_0, %c0_i32_1 : i32, i32, i32
  }
  func.func @transform_4(%arg0: i32) -> (i32, i32) {
    %c0_i32 = arith.constant 0 : i32
    %c0_i32_0 = arith.constant 0 : i32
    return %c0_i32, %arg0 : i32, i32
  }
  func.func @transform_5(%arg0: i32) -> (i32, i32, i32) {
    %c0_i32 = arith.constant 0 : i32
    %c0_i32_0 = arith.constant 0 : i32
    %c0_i32_1 = arith.constant 0 : i32
    return %c0_i32, %c0_i32_0, %arg0 : i32, i32, i32
  }
  func.func @transform_6(%arg0: i32) -> (i32, i32, i32) {
    %c0_i32 = arith.constant 0 : i32
    %c0_i32_0 = arith.constant 0 : i32
    %c0_i32_1 = arith.constant 0 : i32
    return %arg0, %c0_i32, %c0_i32_0 : i32, i32, i32
  }
}

</mosaic_0001>

<bundles_post_ra>
// kernel: tpu_custom_call.1
= control target key start
LH: loop header
LB: loop body
LE: loop exit
PB: predicated region body
PF: predicated region fallthrough
CT: control target
= control target key end

     0   :  { %s7264_s0 = inlined_call_operand.vmem [shape: f32[32,768], index: 0, kind: input, shape index: {}]   ;;  %s7265_s1 = inlined_call_operand.vmem [shape: f32[4,128,32], index: 1, kind: input, shape index: {}]   ;;  %s7266_s2 = inlined_call_operand.vmem [shape: f32[4,32,128], index: 2, kind: input, shape index: {}]   ;;  %s7267_s3 = inlined_call_operand.vmem [shape: f32[4,128,1], index: 3, kind: input, shape index: {}]   ;;  %s7268_s4 = inlined_call_operand.hbm [shape: s32[4,768], index: 4, kind: output, shape index: {0}]   ;;  %s7269_s5 = inlined_call_operand.hbm [shape: f32[4,32,768], index: 5, kind: output, shape index: {1}]   ;;  %s7270_s6 = inlined_call_operand.hbm [shape: f32[3,1,4], index: 6, kind: output, shape index: {2}]  }
   0x1   :  { %7398 = sst [smem:[#allocation60_spill]] %s7264_s0 }
   0x2   :  { %7399 = sst [smem:[#allocation61_spill]] %s7265_s1 }
   0x3   :  { %7400 = sst [smem:[#allocation62_spill]] %s7266_s2 }
   0x4   :  { %12 = vsyncpa [#allocation4], 0 }
   0x5   :  { %14 = vsyncpa [#allocation4 + $0x1], 0 }
   0x6   :  { %15 = vsyncpa [#allocation6], 0 }
   0x7   :  { %17 = vsyncpa [#allocation6 + $0x1], 0  ;;  %s4517_s21 = smov 0   ;;  %s4519_s22 = smov 0  }
   0x8   :  { %s4521_s23 = smov 0   ;;  %s4523_s24 = smov 0  }
   0x9 LB: > { %s4538_s25 = sadd.s32 4294967295, %s4471_s24   ;;  %s7397_s26 = sadd.s32 4294967294, %s4471_s24   ;;  %s4471_s24 = sphi %s4523_s24, %s7689_s24   ;;  %s4467_s23 = sphi %s4521_s23, %s7688_s23   ;;  %s4463_s22 = sphi %s4519_s22, %s7687_s22   ;;  %s4459_s21 = sphi %s4517_s21, %s7686_s21  }
   0xa   : > { %s4542_s27 = sadd.s32 1, %s4471_s24   ;;  %s30_s28 = sadd.s32 1, %s4467_s23 }
   0xb   : > { %s27_s29 = ssub.s32 %s4471_s24, %s4542_s27  ;;  %p37_p0 = scmp.ne.s32.totalorder %s4467_s23, %s4463_s22 }
   0xc   : > { %p28_p1 = scmp.eq.s32.totalorder %s27_s29, 0  ;;  %p38_p2 = scmp.eq.s32.totalorder %s4471_s24, 0 }
   0xd   : > { %p130_p3 = scmp.eq.s32.totalorder %s4538_s25, 2  ;;  %p135_p4 = scmp.ne.s32.totalorder %s4463_s22, %s4459_s21 }
   0xe   : > { %s4554_s30 = scalar_select %p28_p1, %s4467_s23, %s30_s28  }
   0xf   : > { %p39_p5 = por %p38_p2, %p37_p0  ;;  %p4556_p6 = por %p130_p3, %p37_p0 }
  0x10   : > { %p136_p7 = scmp.eq.s32.totalorder %s7397_s26, 2  ;;  %p3625_p9 = scmp.ge.s32.totalorder %s4471_s24, 3 }
  0x12   : > { %p4562_p8 = por %p136_p7, %p135_p4  ;;  %213 = sbr.rel (%p3625_p9) target bundleno = 39 (0x27), region = 28 }
  0x19   : > { %216 = sbr.rel (!%p39_p5) target bundleno = 39 (0x27), region = 32  ;;  %s218_s9 = sand.u32 (%p39_p5), 1, %s4467_s23  }
  0x1a   : > { %s4097_s10 = sshll.u32 (%p39_p5), %s4471_s24, 4  ;;  %s3626_s11 = sshll.u32 (%p39_p5), %s218_s9, 6 }
  0x1b   : > { %s7403_s0 = sld [smem:[#allocation60_spill]] (%p39_p5)  ;;  %s220_s15 = scalar_lea.vmem (%p39_p5), [#allocation2], %s3626_s11 }
  0x21   : > { %s223_s14 = scalar_lea.vmem %s7403_s0, %s4097_s10 }
  0x22   : > { %v236_v0 = vld [vmem:[%s223_s14] sm:$0xff]  ;;  %v238_v1 = vld [vmem:[%s223_s14 + $0x8] sm:$0xff]  ;;  %v240_v2 = vld [vmem:[%s223_s14 + $0x30] sm:$0xff] }
  0x23   : > { %237 = vst [vmem:[%s220_s15] sm:$0xff] %v236_v0  ;;  %239 = vst [vmem:[%s220_s15 + $0x8] sm:$0xff] %v238_v1  ;;  %v242_v3 = vld [vmem:[%s223_s14 + $0x38] sm:$0xff]  ;;  %v244_v4 = vld [vmem:[%s223_s14 + $0x60] sm:$0xff] }
  0x24   : > { %241 = vst [vmem:[%s220_s15 + $0x10] sm:$0xff] %v240_v2  ;;  %v246_v5 = vld [vmem:[%s223_s14 + $0x68] sm:$0xff]  ;;  %243 = vst [vmem:[%s220_s15 + $0x18] sm:$0xff] %v242_v3  ;;  %v248_v6 = vld [vmem:[%s223_s14 + $0x90] sm:$0xff] }
  0x25   : > { %245 = vst [vmem:[%s220_s15 + $0x20] sm:$0xff] %v244_v4  ;;  %247 = vst [vmem:[%s220_s15 + $0x28] sm:$0xff] %v246_v5  ;;  %v250_v7 = vld [vmem:[%s223_s14 + $0x98] sm:$0xff] }
  0x26   : > { %249 = vst [vmem:[%s220_s15 + $0x30] sm:$0xff] %v248_v6  ;;  %251 = vst [vmem:[%s220_s15 + $0x38] sm:$0xff] %v250_v7 }
  0x27 PF: > { %p3629_p10 = scmp.ge.s32.totalorder %s4471_s24, 1  ;;  %p256_p11 = scmp.lt.s32.totalorder %s4471_s24, 4 }
  0x29   : > { %p257_p12 = pnand %p3629_p10, %p256_p11 }
  0x2b   : > { %260 = sbr.rel (%p257_p12) target bundleno = 2698 (0xa8a), region = 55 }
  0x32   : > { %s4575_s16 = sand.u32 1, %s4463_s22   ;;  %v380_v8 = vld [vmem:[%s7267_s3 + $0x10] sm:$0xff]  ;;  %v378_v9 = vld [vmem:[%s7267_s3] sm:$0xff]  ;;  %v4473_v10 = vmov 0   ;;  %v381_v11 = vld [vmem:[%s7267_s3 + $0x18] sm:$0xff]  ;;  %v7272_v16 = vmov 0.0  }
  0x33   : > { %4340 = vset.pattern.permute.xlu1 %v4473_v10  ;;  %4339 = vset.pattern.permute.xlu0 %v4473_v10  ;;  %s3630_s28 = sshll.u32 %s4575_s16, 6  ;;  %v379_v12 = vld [vmem:[%s7267_s3 + $0x8] sm:$0xff]  ;;  %v382_v27 = vld [vmem:[%s7267_s3 + $0x20] sm:$0xff]  ;;  %s7404_s1 = sld [smem:[#allocation61_spill]]  ;;  %vm7271_vm0 = vcmask 261120   ;;  %v385_v29 = vld [vmem:[%s7267_s3 + $0x38] sm:$0xff] }
  0x34   : > { %616 = vperm.xlu1 %4340, %v380_v8   ;;  %606 = vperm.xlu0 %4339, %v378_v9   ;;  %s4590_s12 = scalar_lea.vmem [#allocation2], %s3630_s28  ;;  %v383_v26 = vld [vmem:[%s7267_s3 + $0x28] sm:$0xff]  ;;  %v384_v30 = vld [vmem:[%s7267_s3 + $0x30] sm:$0xff]  ;;  %v386_v33 = vld [vmem:[%s7267_s3 + $0x40] sm:$0xff]  ;;  %s7420_s2 = sld [smem:[#allocation62_spill]] }
  0x35   : > { %v318_v13 = vld [vmem:[%s4590_s12 + $0x8] sm:$0xff]  ;;  %v320_v14 = vld [vmem:[%s4590_s12 + $0x18] sm:$0xff]  ;;  %v317_v15 = vld [vmem:[%s4590_s12] sm:$0xff]  ;;  %507 = vmatprep.mubr.f32.mxu0 %v7272_v16  ;;  %1026 = vmatprep.mubr.f32.mxu1 %v7272_v16  ;;  %s3632_s18 = sshll.u32 %s4575_s16, 8  ;;  %s3633_s20 = sshll.u32 %s4538_s25, 8 }
  0x36   : > { %v4100_v17 = vpack.c.bf16 %v320_v14, %v318_v13  ;;  %v319_v18 = vld [vmem:[%s4590_s12 + $0x10] sm:$0xff]  ;;  %v322_v19 = vld [vmem:[%s4590_s12 + $0x28] sm:$0xff]  ;;  %v324_v20 = vld [vmem:[%s4590_s12 + $0x38] sm:$0xff]  ;;  %s5293_s19 = scalar_lea.vmem [#allocation5], %s3632_s18  ;;  %s3631_s29 = sshll.u32 %s4575_s16, 3 }
  0x37   : > { %v4102_v21 = vpack.c.bf16 %v319_v18, %v317_v15  ;;  %v4104_v22 = vpack.c.bf16 %v324_v20, %v322_v19  ;;  %v321_v23 = vld [vmem:[%s4590_s12 + $0x20] sm:$0xff]  ;;  %v323_v24 = vld [vmem:[%s4590_s12 + $0x30] sm:$0xff]  ;;  %v387_v32 = vld [vmem:[%s7267_s3 + $0x48] sm:$0xff]  ;;  %s7068_s9 = scalar_lea.vmem [#allocation3], %s3631_s29  ;;  %s7161_s10 = scalar_lea.hbm %s7269_s5, %s3633_s20 }
  0x38   : > { %4101 = vmatprep.subr.bf16.mxu0 %v4100_v17  ;;  %621 = vperm.xlu1 %4340, %v381_v11   ;;  %v4106_v25 = vpack.c.bf16 %v323_v24, %v321_v23  ;;  %v389_v35 = vld [vmem:[%s7267_s3 + $0x58] sm:$0xff]  ;;  %v388_v36 = vld [vmem:[%s7267_s3 + $0x50] sm:$0xff]  ;;  %v391_v38 = vld [vmem:[%s7267_s3 + $0x68] sm:$0xff]  ;;  %s3453_s11 = sand.u32 1, %s4538_s25   ;;  %s3485_s13 = sshll.u32 %s5293_s19, 4  ;;  %s7165_s13 = int_to_ptr.vmem [resolvable:$true] %s3485_s13 }
  0x39   : > { %4103 = vmatpush1.bf16.msra.mxu0 %v4102_v21  ;;  %611 = vperm.xlu0 %4339, %v379_v12   ;;  %v358_v28 = vld [vmem:[%s7404_s1] sm:$0xff]  ;;  %v359_v31 = vld [vmem:[%s7404_s1 + $0x8] sm:$0xff]  ;;  %v360_v34 = vld [vmem:[%s7404_s1 + $0x10] sm:$0xff]  ;;  %s7167_s14 = scalar_lea.sflag [#allocation6], %s3453_s11  ;;  %s4349_s15 = scalar_lea.vmem %s7165_s13, 4096 }
  0x3a   : > { %4105 = vmatprep.subr.bf16.mxu0 %v4104_v22  ;;  %v361_v37 = vld [vmem:[%s7404_s1 + $0x18] sm:$0xff]  ;;  %v390_v39 = vld [vmem:[%s7267_s3 + $0x60] sm:$0xff]  ;;  %v392_v42 = vld [vmem:[%s7267_s3 + $0x70] sm:$0xff]  ;;  %p4350_p13 = scmp.ne.s32.totalorder %s7165_s13, %s4349_s15  ;;  %s4476_s17 = smov [#allocation5]  }
  0x3b   : > { %v362_v40 = vld [vmem:[%s7404_s1 + $0x20] sm:$0xff]  ;;  %v393_v41 = vld [vmem:[%s7267_s3 + $0x78] sm:$0xff]  ;;  %v363_v43 = vld [vmem:[%s7404_s1 + $0x28] sm:$0xff]  ;;  %s4353_s18 = sshll.u32 %s4476_s17, 4  ;;  %s4354_s18 = int_to_ptr.vmem [resolvable:$false] %s4353_s18 }
  0x3c   : > { %631 = vperm.xlu1 %4340, %v383_v26   ;;  %v3737_v44 = vld [vmem:[%s7267_s3 + $0x88] sm:$0xff]  ;;  %v3736_v45 = vld [vmem:[%s7267_s3 + $0x80] sm:$0xff]  ;;  %v364_v46 = vld [vmem:[%s7404_s1 + $0x30] sm:$0xff]  ;;  %p4351_p0 = pnand %p4350_p13, %p4556_p6  ;;  %p4356_p2 = scmp.lt.s32.totalorder %s7165_s13, %s4354_s18 }
  0x3d   : > { %4107 = vmatpush1.bf16.msra.mxu0 %v4106_v25  ;;  %626 = vperm.xlu0 %4339, %v382_v27   ;;  %v3739_v47 = vld [vmem:[%s7267_s3 + $0x98] sm:$0xff]  ;;  %v3738_v48 = vld [vmem:[%s7267_s3 + $0x90] sm:$0xff]  ;;  %v3741_v50 = vld [vmem:[%s7267_s3 + $0xa8] sm:$0xff] }
  0x3e   : > { %v365_v49 = vld [vmem:[%s7404_s1 + $0x38] sm:$0xff]  ;;  %v3740_v51 = vld [vmem:[%s7267_s3 + $0xa0] sm:$0xff]  ;;  %v3742_v54 = vld [vmem:[%s7267_s3 + $0xb0] sm:$0xff]  ;;  %p4352_p1 = pneg %p4351_p0 }
  0x3f   : > { %v366_v52 = vld [vmem:[%s7404_s1 + $0x40] sm:$0xff]  ;;  %v3743_v53 = vld [vmem:[%s7267_s3 + $0xb8] sm:$0xff]  ;;  %v367_v55 = vld [vmem:[%s7404_s1 + $0x48] sm:$0xff] }
  0x40   : > { %3636 = vmatmul.mubr.msk.f32.vlgmr.msra.gmra.mrb[0].mxu0 %vm7271_vm0, %v358_v28  ;;  %641 = vperm.xlu1 %4340, %v385_v29   ;;  %v3745_v56 = vld [vmem:[%s7267_s3 + $0xc8] sm:$0xff]  ;;  %v3744_v57 = vld [vmem:[%s7267_s3 + $0xc0] sm:$0xff]  ;;  %v368_v58 = vld [vmem:[%s7404_s1 + $0x50] sm:$0xff] }
  0x41   : > { %513 = vmatprep.mubr.f32.mxu0 %v7272_v16  ;;  %636 = vperm.xlu0 %4339, %v384_v30   ;;  %v3747_v59 = vld [vmem:[%s7267_s3 + $0xd8] sm:$0xff]  ;;  %v3746_v60 = vld [vmem:[%s7267_s3 + $0xd0] sm:$0xff]  ;;  %v3749_v62 = vld [vmem:[%s7267_s3 + $0xe8] sm:$0xff] }
  0x42   : > { %v369_v61 = vld [vmem:[%s7404_s1 + $0x58] sm:$0xff]  ;;  %v3748_v63 = vld [vmem:[%s7267_s3 + $0xe0] sm:$0xff]  ;;  %v3750_v2 = vld [vmem:[%s7267_s3 + $0xf0] sm:$0xff] }
  0x43   : > { %v370_v0 = vld [vmem:[%s7404_s1 + $0x60] sm:$0xff]  ;;  %v3751_v1 = vld [vmem:[%s7267_s3 + $0xf8] sm:$0xff]  ;;  %v371_v3 = vld [vmem:[%s7404_s1 + $0x68] sm:$0xff] }
  0x44   : > { %3637 = vmatmul.mubr.msk.f32.gmra.mrb[2].mxu0 %vm7271_vm0, %v359_v31  ;;  %651 = vperm.xlu1 %4340, %v387_v32   ;;  %v3861_v4 = vld [vmem:[%s7267_s3 + $0x108] sm:$0xff]  ;;  %v3860_v5 = vld [vmem:[%s7267_s3 + $0x100] sm:$0xff]  ;;  %v372_v6 = vld [vmem:[%s7404_s1 + $0x70] sm:$0xff] }
  0x45   : > { %519 = vmatprep.mubr.f32.mxu0 %v7272_v16  ;;  %646 = vperm.xlu0 %4339, %v386_v33   ;;  %v3863_v7 = vld [vmem:[%s7267_s3 + $0x118] sm:$0xff]  ;;  %v3862_v8 = vld [vmem:[%s7267_s3 + $0x110] sm:$0xff]  ;;  %v3865_v10 = vld [vmem:[%s7267_s3 + $0x128] sm:$0xff] }
  0x46   : > { %v373_v9 = vld [vmem:[%s7404_s1 + $0x78] sm:$0xff]  ;;  %v3864_v11 = vld [vmem:[%s7267_s3 + $0x120] sm:$0xff]  ;;  %v3866_v13 = vld [vmem:[%s7267_s3 + $0x130] sm:$0xff] }
  0x47   : > { %v3867_v12 = vld [vmem:[%s7267_s3 + $0x138] sm:$0xff]  ;;  %v3869_v14 = vld [vmem:[%s7267_s3 + $0x148] sm:$0xff]  ;;  %v3868_v15 = vld [vmem:[%s7267_s3 + $0x140] sm:$0xff] }
  0x48   : > { %3638 = vmatmul.mubr.msk.f32.gmra.mrb[4].mxu0 %vm7271_vm0, %v360_v34  ;;  %661 = vperm.xlu1 %4340, %v389_v35   ;;  %v3871_v17 = vld [vmem:[%s7267_s3 + $0x158] sm:$0xff]  ;;  %v3870_v18 = vld [vmem:[%s7267_s3 + $0x150] sm:$0xff]  ;;  %v3873_v19 = vld [vmem:[%s7267_s3 + $0x168] sm:$0xff] }
  0x49   : > { %525 = vmatprep.mubr.f32.mxu0 %v7272_v16  ;;  %656 = vperm.xlu0 %4339, %v388_v36   ;;  %v3872_v20 = vld [vmem:[%s7267_s3 + $0x160] sm:$0xff]  ;;  %v3875_v21 = vld [vmem:[%s7267_s3 + $0x178] sm:$0xff]  ;;  %v3874_v22 = vld [vmem:[%s7267_s3 + $0x170] sm:$0xff] }
  0x4a   : > { %v3985_v23 = vld [vmem:[%s7267_s3 + $0x188] sm:$0xff]  ;;  %v3984_v24 = vld [vmem:[%s7267_s3 + $0x180] sm:$0xff]  ;;  %v3987_v25 = vld [vmem:[%s7267_s3 + $0x198] sm:$0xff] }
  0x4b   : > { %v3986_v26 = vld [vmem:[%s7267_s3 + $0x190] sm:$0xff]  ;;  %v3989_v27 = vld [vmem:[%s7267_s3 + $0x1a8] sm:$0xff]  ;;  %v3988_v28 = vld [vmem:[%s7267_s3 + $0x1a0] sm:$0xff] }
  0x4c   : > { %3639 = vmatmul.mubr.msk.f32.gmra.mrb[6].mxu0 %vm7271_vm0, %v361_v37  ;;  %671 = vperm.xlu1 %4340, %v391_v38   ;;  %v3991_v29 = vld [vmem:[%s7267_s3 + $0x1b8] sm:$0xff]  ;;  %v3990_v30 = vld [vmem:[%s7267_s3 + $0x1b0] sm:$0xff]  ;;  %v3993_v31 = vld [vmem:[%s7267_s3 + $0x1c8] sm:$0xff] }
  0x4d   : > { %531 = vmatprep.mubr.f32.mxu0 %v7272_v16  ;;  %666 = vperm.xlu0 %4339, %v390_v39   ;;  %v3992_v32 = vld [vmem:[%s7267_s3 + $0x1c0] sm:$0xff]  ;;  %v3995_v33 = vld [vmem:[%s7267_s3 + $0x1d8] sm:$0xff]  ;;  %v3994_v34 = vld [vmem:[%s7267_s3 + $0x1d0] sm:$0xff] }
  0x4e   : > { %v3997_v35 = vld [vmem:[%s7267_s3 + $0x1e8] sm:$0xff]  ;;  %v3996_v36 = vld [vmem:[%s7267_s3 + $0x1e0] sm:$0xff]  ;;  %v3999_v37 = vld [vmem:[%s7267_s3 + $0x1f8] sm:$0xff] }
  0x4f   : > { %v3998_v38 = vld [vmem:[%s7267_s3 + $0x1f0] sm:$0xff] }
  0x50   : > { %3640 = vmatmul.mubr.msk.f32.gmra.mrb[8].mxu0 %vm7271_vm0, %v362_v40  ;;  %681 = vperm.xlu1 %4340, %v393_v41  }
  0x51   : > { %537 = vmatprep.mubr.f32.mxu0 %v7272_v16  ;;  %676 = vperm.xlu0 %4339, %v392_v42  }
  0x54   : > { %3641 = vmatmul.mubr.msk.f32.gmra.mrb[10].mxu0 %vm7271_vm0, %v363_v43  ;;  %1383 = vperm.xlu1 %4340, %v3737_v44  }
  0x55   : > { %543 = vmatprep.mubr.f32.mxu0 %v7272_v16  ;;  %1378 = vperm.xlu0 %4339, %v3736_v45  }
  0x58   : > { %3642 = vmatmul.mubr.msk.f32.gmra.mrb[12].mxu0 %vm7271_vm0, %v364_v46  ;;  %1393 = vperm.xlu1 %4340, %v3739_v47  }
  0x59   : > { %549 = vmatprep.mubr.f32.mxu0 %v7272_v16  ;;  %1388 = vperm.xlu0 %4339, %v3738_v48  }
  0x5c   : > { %3643 = vmatmul.mubr.msk.f32.gmra.mrb[14].mxu0 %vm7271_vm0, %v365_v49  ;;  %1403 = vperm.xlu1 %4340, %v3741_v50  }
  0x5d   : > { %555 = vmatprep.mubr.f32.mxu0 %v7272_v16  ;;  %1398 = vperm.xlu0 %4339, %v3740_v51  }
  0x60   : > { %3644 = vmatmul.mubr.msk.f32.gmra.mrb[16].mxu0 %vm7271_vm0, %v366_v52  ;;  %1413 = vperm.xlu1 %4340, %v3743_v53  }
  0x61   : > { %561 = vmatprep.mubr.f32.mxu0 %v7272_v16  ;;  %1408 = vperm.xlu0 %4339, %v3742_v54  }
  0x64   : > { %3645 = vmatmul.mubr.msk.f32.gmra.mrb[18].mxu0 %vm7271_vm0, %v367_v55  ;;  %1423 = vperm.xlu1 %4340, %v3745_v56  }
  0x65   : > { %567 = vmatprep.mubr.f32.mxu0 %v7272_v16  ;;  %1418 = vperm.xlu0 %4339, %v3744_v57  }
  0x68   : > { %3646 = vmatmul.mubr.msk.f32.gmra.mrb[20].mxu0 %vm7271_vm0, %v368_v58  ;;  %1433 = vperm.xlu1 %4340, %v3747_v59  }
  0x69   : > { %573 = vmatprep.mubr.f32.mxu0 %v7272_v16  ;;  %1428 = vperm.xlu0 %4339, %v3746_v60  }
  0x6c   : > { %3647 = vmatmul.mubr.msk.f32.gmra.mrb[22].mxu0 %vm7271_vm0, %v369_v61  ;;  %1443 = vperm.xlu1 %4340, %v3749_v62  }
  0x6d   : > { %579 = vmatprep.mubr.f32.mxu0 %v7272_v16  ;;  %1438 = vperm.xlu0 %4339, %v3748_v63  }
  0x70   : > { %3648 = vmatmul.mubr.msk.f32.gmra.mrb[24].mxu0 %vm7271_vm0, %v370_v0  ;;  %1453 = vperm.xlu1 %4340, %v3751_v1  }
  0x71   : > { %585 = vmatprep.mubr.f32.mxu0 %v7272_v16  ;;  %1448 = vperm.xlu0 %4339, %v3750_v2  }
  0x74   : > { %3649 = vmatmul.mubr.msk.f32.gmra.mrb[26].mxu0 %vm7271_vm0, %v371_v3  ;;  %2155 = vperm.xlu1 %4340, %v3861_v4  }
  0x75   : > { %591 = vmatprep.mubr.f32.mxu0 %v7272_v16  ;;  %2150 = vperm.xlu0 %4339, %v3860_v5  }
  0x78   : > { %3650 = vmatmul.mubr.msk.f32.gmra.mrb[28].mxu0 %vm7271_vm0, %v372_v6  ;;  %2165 = vperm.xlu1 %4340, %v3863_v7  }
  0x79   : > { %597 = vmatprep.mubr.f32.mxu0 %v7272_v16  ;;  %2160 = vperm.xlu0 %4339, %v3862_v8  }
  0x7c   : > { %3651 = vmatmul.mubr.msk.f32.gmra.mrb[30].mxu0 %vm7271_vm0, %v373_v9  ;;  %2175 = vperm.xlu1 %4340, %v3865_v10  }
  0x7d   : > { %2170 = vperm.xlu0 %4339, %v3864_v11   ;;  %1798 = vmatprep.mubr.f32.mxu0 %v7272_v16 }
  0x80   : > { %2185 = vperm.xlu1 %4340, %v3867_v12  }
  0x81   : > { %2180 = vperm.xlu0 %4339, %v3866_v13  }
  0x84   : > { %2195 = vperm.xlu1 %4340, %v3869_v14  }
  0x85   : > { %2190 = vperm.xlu0 %4339, %v3868_v15  }
  0x88   : > { %2205 = vperm.xlu1 %4340, %v3871_v17  }
  0x89   : > { %2200 = vperm.xlu0 %4339, %v3870_v18  }
  0x8c   : > { %2215 = vperm.xlu1 %4340, %v3873_v19  }
  0x8d   : > { %2210 = vperm.xlu0 %4339, %v3872_v20  }
  0x90   : > { %2225 = vperm.xlu1 %4340, %v3875_v21  }
  0x91   : > { %2220 = vperm.xlu0 %4339, %v3874_v22  }
  0x94   : > { %2927 = vperm.xlu1 %4340, %v3985_v23  }
  0x95   : > { %2922 = vperm.xlu0 %4339, %v3984_v24  }
  0x98   : > { %2937 = vperm.xlu1 %4340, %v3987_v25  }
  0x99   : > { %2932 = vperm.xlu0 %4339, %v3986_v26  }
  0x9c   : > { %2947 = vperm.xlu1 %4340, %v3989_v27  }
  0x9d   : > { %2942 = vperm.xlu0 %4339, %v3988_v28  }
  0xa0   : > { %2957 = vperm.xlu1 %4340, %v3991_v29  }
  0xa1   : > { %2952 = vperm.xlu0 %4339, %v3990_v30  }
  0xa4   : > { %2967 = vperm.xlu1 %4340, %v3993_v31  }
  0xa5   : > { %2962 = vperm.xlu0 %4339, %v3992_v32  }
  0xa8   : > { %2977 = vperm.xlu1 %4340, %v3995_v33  }
  0xa9   : > { %2972 = vperm.xlu0 %4339, %v3994_v34  }
  0xac   : > { %2987 = vperm.xlu1 %4340, %v3997_v35  }
  0xad   : > { %2982 = vperm.xlu0 %4339, %v3996_v36  }
  0xb0   : > { %2997 = vperm.xlu1 %4340, %v3999_v37  }
  0xb1   : > { %2992 = vperm.xlu0 %4339, %v3998_v38  }
  0xb3   : > { %v607_v41 = vpop.permute.xlu0 %606  ;;  %v617_v44 = vpop.permute.xlu1 %616 }
  0xb7   : > { %v622_v53 = vpop.permute.xlu1 %621 }
  0xb8   : > { %v612_v49 = vpop.permute.xlu0 %611 }
  0xbb   : > { %v632_v5 = vpop.permute.xlu1 %631 }
  0xbc   : > { %v627_v62 = vpop.permute.xlu0 %626 }
  0xbf   : > { %v642_v20 = vpop.permute.xlu1 %641 }
  0xc0   : > { %v637_v12 = vpop.permute.xlu0 %636 }
  0xc3   : > { %v652_v34 = vpop.permute.xlu1 %651 }
  0xc4   : > { %v647_v27 = vpop.permute.xlu0 %646 }
 0x113   : > { %v509_v39 = vpop.f32.mrb[0].mxu0 }
 0x114   : > { %v511_v40 = vpop.f32.mrb[1].mxu0  ;;  %v4862_v46 = vadd.f32 %v607_v41, %v509_v39 }
 0x115   : > { %v4866_v50 = vadd.f32 %v607_v41, %v511_v40  ;;  %v657_v41 = vpop.permute.xlu0 %656 }
 0x117   : > { %v515_v42 = vpop.f32.mrb[2].mxu0 }
 0x118   : > { %v517_v43 = vpop.f32.mrb[3].mxu0  ;;  %v4874_v56 = vadd.f32 %v612_v49, %v515_v42 }
 0x119   : > { %v4878_v59 = vadd.f32 %v612_v49, %v517_v43 }
 0x11b   : > { %v521_v45 = vpop.f32.mrb[4].mxu0 }
 0x11c   : > { %v4864_v47 = vadd.f32 %v617_v44, %v521_v45  ;;  %v523_v48 = vpop.f32.mrb[5].mxu0 }
 0x11d   : > { %v4868_v51 = vadd.f32 %v617_v44, %v523_v48 }
 0x11e   : > { %v716_v52 = vmin.f32 %v4862_v46, %v4864_v47 }
 0x11f   : > { %v737_v54 = vmin.f32 %v4866_v50, %v4868_v51  ;;  %v527_v55 = vpop.f32.mrb[6].mxu0 }
 0x120   : > { %v4876_v57 = vadd.f32 %v622_v53, %v527_v55  ;;  %v529_v58 = vpop.f32.mrb[7].mxu0 }
 0x121   : > { %v4880_v60 = vadd.f32 %v622_v53, %v529_v58 }
 0x122   : > { %v717_v61 = vmin.f32 %v4874_v56, %v4876_v57 }
 0x123   : > { %v738_v63 = vmin.f32 %v4878_v59, %v4880_v60  ;;  %v533_v0 = vpop.f32.mrb[8].mxu0 }
 0x124   : > { %v4886_v1 = vadd.f32 %v627_v62, %v533_v0  ;;  %v535_v2 = vpop.f32.mrb[9].mxu0 }
 0x125   : > { %v4888_v3 = vadd.f32 %v627_v62, %v535_v2 }
 0x126   : > { %v718_v4 = vmin.f32 %v716_v52, %v4886_v1  ;;  %v662_v52 = vpop.permute.xlu1 %661 }
 0x127   : > { %v739_v6 = vmin.f32 %v737_v54, %v4888_v3  ;;  %v539_v7 = vpop.f32.mrb[10].mxu0 }
 0x128   : > { %v4892_v8 = vadd.f32 %v632_v5, %v539_v7  ;;  %v541_v9 = vpop.f32.mrb[11].mxu0 }
 0x129   : > { %v4894_v10 = vadd.f32 %v632_v5, %v541_v9 }
 0x12a   : > { %v719_v11 = vmin.f32 %v717_v61, %v4892_v8  ;;  %v672_v9 = vpop.permute.xlu1 %671 }
 0x12b   : > { %v740_v13 = vmin.f32 %v738_v63, %v4894_v10  ;;  %v545_v14 = vpop.f32.mrb[12].mxu0  ;;  %v667_v63 = vpop.permute.xlu0 %666 }
 0x12c   : > { %v4898_v15 = vadd.f32 %v637_v12, %v545_v14  ;;  %v547_v17 = vpop.f32.mrb[13].mxu0 }
 0x12d   : > { %v4900_v18 = vadd.f32 %v637_v12, %v547_v17 }
 0x12e   : > { %v720_v19 = vmin.f32 %v718_v4, %v4898_v15 }
 0x12f   : > { %v741_v21 = vmin.f32 %v739_v6, %v4900_v18  ;;  %v551_v22 = vpop.f32.mrb[14].mxu0 }
 0x130   : > { %v4904_v23 = vadd.f32 %v642_v20, %v551_v22  ;;  %v553_v24 = vpop.f32.mrb[15].mxu0 }
 0x131   : > { %v4906_v25 = vadd.f32 %v642_v20, %v553_v24  ;;  %v677_v20 = vpop.permute.xlu0 %676 }
 0x132   : > { %v721_v26 = vmin.f32 %v719_v11, %v4904_v23 }
 0x133   : > { %v742_v28 = vmin.f32 %v740_v13, %v4906_v25  ;;  %v557_v29 = vpop.f32.mrb[16].mxu0 }
 0x134   : > { %v4910_v30 = vadd.f32 %v647_v27, %v557_v29  ;;  %v559_v31 = vpop.f32.mrb[17].mxu0  ;;  %v682_v29 = vpop.permute.xlu1 %681 }
 0x135   : > { %v4912_v32 = vadd.f32 %v647_v27, %v559_v31 }
 0x136   : > { %v722_v33 = vmin.f32 %v720_v19, %v4910_v30 }
 0x137   : > { %v743_v35 = vmin.f32 %v741_v21, %v4912_v32  ;;  %v563_v36 = vpop.f32.mrb[18].mxu0 }
 0x138   : > { %v4916_v37 = vadd.f32 %v652_v34, %v563_v36  ;;  %v565_v38 = vpop.f32.mrb[19].mxu0 }
 0x139   : > { %v4918_v39 = vadd.f32 %v652_v34, %v565_v38 }
 0x13a   : > { %v723_v40 = vmin.f32 %v721_v26, %v4916_v37 }
 0x13b   : > { %v744_v42 = vmin.f32 %v742_v28, %v4918_v39  ;;  %v569_v43 = vpop.f32.mrb[20].mxu0 }
 0x13c   : > { %v4922_v44 = vadd.f32 %v657_v41, %v569_v43  ;;  %v571_v45 = vpop.f32.mrb[21].mxu0 }
 0x13d   : > { %v4924_v48 = vadd.f32 %v657_v41, %v571_v45 }
 0x13e   : > { %v724_v49 = vmin.f32 %v722_v33, %v4922_v44 }
 0x13f   : > { %v745_v53 = vmin.f32 %v743_v35, %v4924_v48  ;;  %v575_v54 = vpop.f32.mrb[22].mxu0 }
 0x140   : > { %v4928_v55 = vadd.f32 %v662_v52, %v575_v54  ;;  %v577_v58 = vpop.f32.mrb[23].mxu0 }
 0x141   : > { %v4930_v61 = vadd.f32 %v662_v52, %v577_v58 }
 0x142   : > { %v725_v62 = vmin.f32 %v723_v40, %v4928_v55  ;;  %v304_v40 = vlaneseq }
 0x143   : > { %v746_v0 = vmin.f32 %v744_v42, %v4930_v61  ;;  %v581_v2 = vpop.f32.mrb[24].mxu0 }
 0x144   : > { %v4934_v4 = vadd.f32 %v667_v63, %v581_v2  ;;  %v583_v5 = vpop.f32.mrb[25].mxu0 }
 0x145   : > { %v4936_v6 = vadd.f32 %v667_v63, %v583_v5 }
 0x146   : > { %v726_v7 = vmin.f32 %v724_v49, %v4934_v4  ;;  %v326_v49 = vshrl.u32 %v304_v40, 7 }
 0x147   : > { %v747_v11 = vmin.f32 %v745_v53, %v4936_v6  ;;  %v587_v12 = vpop.f32.mrb[26].mxu0 }
 0x148   : > { %v4940_v13 = vadd.f32 %v672_v9, %v587_v12  ;;  %v589_v14 = vpop.f32.mrb[27].mxu0  ;;  %v328_v63 = vadd.s32 16, %v326_v49  ;;  %v330_v5 = vadd.s32 32, %v326_v49  ;;  %v333_v12 = vadd.s32 56, %v326_v49 }
 0x149   : > { %v4942_v17 = vadd.f32 %v672_v9, %v589_v14  ;;  %v332_v9 = vadd.s32 48, %v326_v49  ;;  %v334_v14 = vadd.s32 64, %v326_v49 }
 0x14a   : > { %v727_v19 = vmin.f32 %v725_v62, %v4940_v13  ;;  %v327_v62 = vadd.s32 8, %v326_v49 }
 0x14b   : > { %v748_v21 = vmin.f32 %v746_v0, %v4942_v17  ;;  %v593_v22 = vpop.f32.mrb[28].mxu0  ;;  %v329_v0 = vadd.s32 24, %v326_v49 }
 0x14c   : > { %v4946_v24 = vadd.f32 %v677_v20, %v593_v22  ;;  %v595_v26 = vpop.f32.mrb[29].mxu0  ;;  %v337_v22 = vadd.s32 88, %v326_v49 }
 0x14d   : > { %v4948_v27 = vadd.f32 %v677_v20, %v595_v26  ;;  %v338_v26 = vadd.s32 96, %v326_v49 }
 0x14e   : > { %v728_v28 = vmin.f32 %v726_v7, %v4946_v24  ;;  %v331_v7 = vadd.s32 40, %v326_v49 }
 0x14f   : > { %v749_v31 = vmin.f32 %v747_v11, %v4948_v27  ;;  %v599_v33 = vpop.f32.mrb[30].mxu0 }
 0x150   : > { %v4952_v34 = vadd.f32 %v682_v29, %v599_v33  ;;  %v601_v35 = vpop.f32.mrb[31].mxu0  ;;  %v4961_v33 = vcvt.s32.f32 %v326_v49 }
 0x151   : > { %v4954_v36 = vadd.f32 %v682_v29, %v601_v35  ;;  %v339_v29 = vadd.s32 104, %v326_v49  ;;  %v4963_v35 = vcvt.s32.f32 %v327_v62  ;;  %v5011_v62 = vcvt.s32.f32 %v334_v14 }
 0x152   : > { %v729_v38 = vmin.f32 %v727_v19, %v4952_v34  ;;  %v335_v19 = vadd.s32 72, %v326_v49 }
 0x153   : > { %v750_v41 = vmin.f32 %v748_v21, %v4954_v36  ;;  %v336_v21 = vadd.s32 80, %v326_v49 }
 0x154   : > { %v730_v42 = vmin.f32 %v728_v28, %v729_v38  ;;  %v4965_v38 = vcvt.s32.f32 %v328_v63  ;;  %v5013_v63 = vcvt.s32.f32 %v335_v19 }
 0x155   : > { %v751_v43 = vmin.f32 %v749_v31, %v750_v41  ;;  %v4959_v31 = vadd.s32 112, %v326_v49  ;;  %v4967_v41 = vcvt.s32.f32 %v329_v0 }
 0x156   : > { %v731_v45 = vrot.slane %v730_v42, 4 }
 0x157   : > { %v752_v52 = vrot.slane %v751_v43, 4 }
 0x158   : > { %v732_v53 = vmin.f32 %v730_v42, %v731_v45  ;;  %v4969_v42 = vcvt.s32.f32 %v330_v5  ;;  %v4973_v45 = vcvt.s32.f32 %v331_v7 }
 0x159   : > { %v753_v54 = vmin.f32 %v751_v43, %v752_v52  ;;  %v4975_v52 = vcvt.s32.f32 %v332_v9  ;;  %v5033_v9 = vcvt.s32.f32 %v336_v21 }
 0x15a   : > { %v733_v58 = vrot.slane %v732_v53, 2 }
 0x15b   : > { %v754_v2 = vrot.slane %v753_v54, 2 }
 0x15c   : > { %v734_v11 = vmin.f32 %v732_v53, %v733_v58  ;;  %v4977_v53 = vcvt.s32.f32 %v333_v12  ;;  %v341_v58 = vadd.s32 120, %v326_v49  ;;  %v5039_v12 = vcvt.s32.f32 %v339_v29 }
 0x15d   : > { %v755_v20 = vmin.f32 %v753_v54, %v754_v2 }
 0x15e   : > { %v735_v28 = vrot.slane %v734_v11, 1  ;;  %7407 = vst [vmem:[#allocation12_spill] sm:$0xff] %v5039_v12 }
 0x15f   : > { %v756_v54 = vrot.slane %v755_v20, 1 }
 0x160   : > { %v4971_v43 = vmin.f32 %v734_v11, %v735_v28  ;;  %v5035_v11 = vcvt.s32.f32 %v337_v22  ;;  %v5100_v28 = vcvt.s32.f32 %v341_v58 }
 0x161   : > { %v5015_v0 = vmin.f32 %v755_v20, %v756_v54 }
 0x162   : > { %vm758_vm1 = vcmp.le.f32.partialorder %v4862_v46, %v4971_v43  ;;  %vm760_vm2 = vcmp.le.f32.partialorder %v4874_v56, %v4971_v43  ;;  %vm762_vm3 = vcmp.le.f32.partialorder %v4864_v47, %v4971_v43  ;;  %vm764_vm4 = vcmp.le.f32.partialorder %v4876_v57, %v4971_v43  ;;  %7405 = vst [vmem:[#allocation10_spill] sm:$0xff] %v5035_v11 }
 0x163   : > { %vm766_vm5 = vcmp.le.f32.partialorder %v4886_v1, %v4971_v43  ;;  %vm768_vm6 = vcmp.le.f32.partialorder %v4892_v8, %v4971_v43  ;;  %vm770_vm7 = vcmp.le.f32.partialorder %v4898_v15, %v4971_v43  ;;  %vm772_vm8 = vcmp.le.f32.partialorder %v4904_v23, %v4971_v43  ;;  %7409 = vst [vmem:[#allocation14_spill] sm:$0xff] %v5100_v28 }
 0x164   : > { %vm774_vm9 = vcmp.le.f32.partialorder %v4910_v30, %v4971_v43  ;;  %vm776_vm10 = vcmp.le.f32.partialorder %v4916_v37, %v4971_v43  ;;  %vm778_vm11 = vcmp.le.f32.partialorder %v4922_v44, %v4971_v43  ;;  %vm780_vm12 = vcmp.le.f32.partialorder %v4928_v55, %v4971_v43 }
 0x165   : > { %vm782_vm13 = vcmp.le.f32.partialorder %v4934_v4, %v4971_v43  ;;  %vm784_vm14 = vcmp.le.f32.partialorder %v4940_v13, %v4971_v43  ;;  %v790_v2 = vsel %vm758_vm1, %v4961_v33, 128.0  ;;  %v792_v5 = vsel %vm760_vm2, %v4963_v35, 128.0 }
 0x166   : > { %v794_v49 = vsel %vm762_vm3, %v4965_v38, 128.0  ;;  %v796_v7 = vsel %vm764_vm4, %v4967_v41, 128.0  ;;  %v5037_v46 = vcvt.s32.f32 %v338_v26  ;;  %v798_v56 = vsel %vm766_vm5, %v4969_v42, 128.0 }
 0x167   : > { %v800_v47 = vsel %vm768_vm6, %v4973_v45, 128.0  ;;  %v802_v57 = vsel %vm770_vm7, %v4975_v52, 128.0  ;;  %v804_v14 = vsel %vm772_vm8, %v4977_v53, 128.0  ;;  %v822_v19 = vmin.f32 %v790_v2, %v794_v49 }
 0x168   : > { %7406 = vst [vmem:[#allocation11_spill] sm:$0xff] %v5037_v46  ;;  %v823_v20 = vmin.f32 %v792_v5, %v796_v7  ;;  %vm759_vm1 = vcmp.le.f32.partialorder %v4866_v50, %v5015_v0  ;;  %vm761_vm2 = vcmp.le.f32.partialorder %v4878_v59, %v5015_v0  ;;  %vm763_vm3 = vcmp.le.f32.partialorder %v4868_v51, %v5015_v0 }
 0x169   : > { %vm765_vm4 = vcmp.le.f32.partialorder %v4880_v60, %v5015_v0  ;;  %v824_v1 = vmin.f32 %v822_v19, %v798_v56  ;;  %vm775_vm0 = vcmp.le.f32.partialorder %v4912_v32, %v5015_v0  ;;  %vm777_vm15 = vcmp.le.f32.partialorder %v4918_v39, %v5015_v0 }
 0x16a   : > { %v825_v8 = vmin.f32 %v823_v20, %v800_v47  ;;  %vm783_vm7 = vcmp.le.f32.partialorder %v4936_v6, %v5015_v0  ;;  %vm785_vm8 = vcmp.le.f32.partialorder %v4942_v17, %v5015_v0  ;;  %v806_v21 = vsel %vm774_vm9, %v5011_v62, 128.0 }
 0x16b   : > { %v826_v15 = vmin.f32 %v824_v1, %v802_v57  ;;  %v808_v22 = vsel %vm776_vm10, %v5013_v63, 128.0  ;;  %vm787_vm6 = vcmp.le.f32.partialorder %v4948_v27, %v5015_v0  ;;  %vm789_vm5 = vcmp.le.f32.partialorder %v4954_v36, %v5015_v0  ;;  %v374_v36 = vld [vmem:[%s7420_s2] sm:$0xff] }
 0x16c   : > { %v827_v23 = vmin.f32 %v825_v8, %v804_v14  ;;  %v5098_v26 = vcvt.s32.f32 %v4959_v31  ;;  %v810_v30 = vsel %vm778_vm11, %v5033_v9, 128.0  ;;  %v812_v37 = vsel %vm780_vm12, %v5035_v11, 128.0 }
 0x16d   : > { %v828_v29 = vmin.f32 %v826_v15, %v806_v21  ;;  %v791_v31 = vsel %vm759_vm1, %v4961_v33, 128.0  ;;  %v793_v58 = vsel %vm761_vm2, %v4963_v35, 128.0  ;;  %v795_v44 = vsel %vm763_vm3, %v4965_v38, 128.0 }
 0x16e   : > { %7408 = vst [vmem:[#allocation13_spill] sm:$0xff] %v5098_v26  ;;  %v829_v54 = vmin.f32 %v827_v23, %v808_v22  ;;  %v797_v55 = vsel %vm765_vm4, %v4967_v41, 128.0  ;;  %v814_v50 = vsel %vm782_vm13, %v5037_v46, 128.0  ;;  %v816_v59 = vsel %vm784_vm14, %v5039_v12, 128.0 }
 0x16f   : > { %v830_v2 = vmin.f32 %v828_v29, %v810_v30  ;;  %vm7410_vm9 = vcmp.le.f32.partialorder %v4946_v24, %v4971_v43  ;;  %vm7411_vm10 = vcmp.le.f32.partialorder %v4952_v34, %v4971_v43  ;;  %v843_v56 = vmin.f32 %v791_v31, %v795_v44 }
 0x170   : > { %v831_v5 = vmin.f32 %v829_v54, %v812_v37  ;;  %v818_v51 = vsel %vm7410_vm9, %v5098_v26, 128.0  ;;  %v820_v60 = vsel %vm7411_vm10, %v5100_v28, 128.0  ;;  %v844_v4 = vmin.f32 %v793_v58, %v797_v55 }
 0x171   : > { %v832_v49 = vmin.f32 %v830_v2, %v814_v50  ;;  %vm7412_vm11 = vcmp.le.f32.partialorder %v4888_v3, %v5015_v0  ;;  %vm7413_vm12 = vcmp.le.f32.partialorder %v4894_v10, %v5015_v0  ;;  %vm7414_vm13 = vcmp.le.f32.partialorder %v4900_v18, %v5015_v0 }
 0x172   : > { %v833_v7 = vmin.f32 %v831_v5, %v816_v59  ;;  %v799_v13 = vsel %vm7412_vm11, %v4969_v42, 128.0  ;;  %v801_v24 = vsel %vm7413_vm12, %v4973_v45, 128.0  ;;  %v803_v34 = vsel %vm7414_vm13, %v4975_v52, 128.0 }
 0x173   : > { %v834_v47 = vmin.f32 %v832_v49, %v818_v51  ;;  %v845_v14 = vmin.f32 %v843_v56, %v799_v13  ;;  %v846_v19 = vmin.f32 %v844_v4, %v801_v24  ;;  %vm7415_vm14 = vcmp.le.f32.partialorder %v4906_v25, %v5015_v0  ;;  %v377_v56 = vld [vmem:[%s7420_s2 + $0x18] sm:$0xff]  ;;  %v4342_v24 = vld [vmem:[%s4590_s12 + $0x8] sm:$0xff] }
 0x174   : > { %v835_v57 = vmin.f32 %v833_v7, %v820_v60  ;;  %v805_v43 = vsel %vm7415_vm14, %v4977_v53, 128.0  ;;  %v807_v10 = vsel %vm775_vm0, %v5011_v62, 128.0  ;;  %v809_v15 = vsel %vm777_vm15, %v5013_v63, 128.0  ;;  %v376_v60 = vld [vmem:[%s7420_s2 + $0x10] sm:$0xff] }
 0x175   : > { %v847_v3 = vmin.f32 %v845_v14, %v803_v34  ;;  %v848_v1 = vmin.f32 %v846_v19, %v805_v43  ;;  %vm7416_vm1 = vcmp.le.f32.partialorder %v4924_v48, %v5015_v0  ;;  %vm7417_vm2 = vcmp.le.f32.partialorder %v4930_v61, %v5015_v0  ;;  %v375_v0 = vld [vmem:[%s7420_s2 + $0x8] sm:$0xff] }
 0x176   : > { %v836_v20 = vmin.f32 %v834_v47, %v835_v57  ;;  %v811_v25 = vsel %vm7416_vm1, %v5033_v9, 128.0  ;;  %v813_v22 = vsel %vm7417_vm2, %v5035_v11, 128.0  ;;  %v815_v39 = vsel %vm783_vm7, %v5037_v46, 128.0  ;;  %v4341_v57 = vld [vmem:[%s4590_s12] sm:$0xff] }
 0x177   : > { %v849_v18 = vmin.f32 %v847_v3, %v807_v10  ;;  %v850_v23 = vmin.f32 %v848_v1, %v809_v15  ;;  %v817_v54 = vsel %vm785_vm8, %v5039_v12, 128.0  ;;  %v819_v61 = vsel %vm787_vm6, %v5098_v26, 128.0 }
 0x178   : > { %v837_v8 = vrot.slane %v836_v20, 4  ;;  %v821_v31 = vsel %vm789_vm5, %v5100_v28, 128.0  ;;  %v7274_v27 = vmov 1.0|1.0  }
 0x179   : > { %v851_v32 = vmin.f32 %v849_v18, %v811_v25  ;;  %v852_v29 = vmin.f32 %v850_v23, %v813_v22 }
 0x17a   : > { %v838_v21 = vmin.f32 %v836_v20, %v837_v8  ;;  %v4343_v20 = vld [vmem:[%s4590_s12 + $0x10] sm:$0xff]  ;;  %v4344_v8 = vld [vmem:[%s4590_s12 + $0x18] sm:$0xff] }
 0x17b   : > { %v853_v30 = vmin.f32 %v851_v32, %v815_v39  ;;  %v854_v48 = vmin.f32 %v852_v29, %v817_v54  ;;  %v4345_v54 = vld [vmem:[%s4590_s12 + $0x20] sm:$0xff] }
 0x17c   : > { %v839_v37 = vrot.slane %v838_v21, 2 }
 0x17d   : > { %v855_v6 = vmin.f32 %v853_v30, %v819_v61  ;;  %v856_v58 = vmin.f32 %v854_v48, %v821_v31  ;;  %v4346_v31 = vld [vmem:[%s4590_s12 + $0x28] sm:$0xff] }
 0x17e   : > { %v840_v5 = vmin.f32 %v838_v21, %v839_v37 }
 0x17f   : > { %v857_v2 = vmin.f32 %v855_v6, %v856_v58 }
 0x180   : > { %v841_v55 = vrot.slane %v840_v5, 1 }
 0x181   : > { %v858_v44 = vrot.slane %v857_v2, 4 }
 0x182   : > { %v5190_v49 = vmin.f32 %v840_v5, %v841_v55 }
 0x183   : > { %v859_v17 = vmin.f32 %v857_v2, %v858_v44 }
 0x184   : > { %7418 = vst [vmem:[#allocation15_spill] sm:$0xff] %v5190_v49  ;;  %vm866_vm0 = vcmp.eq.f32.partialorder %v4961_v33, %v5190_v49  ;;  %vm868_vm15 = vcmp.eq.f32.partialorder %v4963_v35, %v5190_v49  ;;  %vm870_vm10 = vcmp.eq.f32.partialorder %v4965_v38, %v5190_v49  ;;  %vm872_vm11 = vcmp.eq.f32.partialorder %v4967_v41, %v5190_v49 }
 0x185   : > { %v860_v50 = vrot.slane %v859_v17, 2  ;;  %vm4110_vm8 = vmpackc.low %vm868_vm15, %vm866_vm0  ;;  %vm874_vm2 = vcmp.eq.f32.partialorder %v4969_v42, %v5190_v49  ;;  %vm876_vm0 = vcmp.eq.f32.partialorder %v4973_v45, %v5190_v49 }
 0x186   : > { %vm4114_vm14 = vmpackc.low %vm872_vm11, %vm870_vm10 }
 0x187   : > { %v861_v59 = vmin.f32 %v859_v17, %v860_v50  ;;  %v4347_v17 = vld [vmem:[%s4590_s12 + $0x30] sm:$0xff] }
 0x189   : > { %v862_v7 = vrot.slane %v861_v59, 1 }
 0x18b   : > { %v5192_v51 = vmin.f32 %v861_v59, %v862_v7  ;;  %v5357_v7 = vand.u32 127, %v304_v40 }
 0x18d   : > { %7419 = vst [vmem:[#allocation16_spill] sm:$0xff] %v5192_v51  ;;  %vm867_vm3 = vcmp.eq.f32.partialorder %v4961_v33, %v5192_v51  ;;  %vm869_vm4 = vcmp.eq.f32.partialorder %v4963_v35, %v5192_v51  ;;  %vm871_vm5 = vcmp.eq.f32.partialorder %v4965_v38, %v5192_v51  ;;  %vm873_vm6 = vcmp.eq.f32.partialorder %v4967_v41, %v5192_v51 }
 0x18e   : > { %vm4108_vm7 = vmpackc.low %vm869_vm4, %vm867_vm3  ;;  %vm875_vm12 = vcmp.eq.f32.partialorder %v4969_v42, %v5192_v51  ;;  %vm877_vm13 = vcmp.eq.f32.partialorder %v4973_v45, %v5192_v51  ;;  %vm879_vm15 = vcmp.eq.f32.partialorder %v4975_v52, %v5192_v51  ;;  %vm881_vm3 = vcmp.eq.f32.partialorder %v4977_v53, %v5192_v51  ;;  %7434 = vst [vmem:[#allocation30_spill] sm:$0xff] %v5357_v7 }
 0x18f   : > { %4109 = vmatprep.subr.msk.bf16.mxu1 %vm4108_vm7, %v7274_v27  ;;  %vm4112_vm9 = vmpackc.low %vm873_vm6, %vm871_vm5  ;;  %vm878_vm6 = vcmp.eq.f32.partialorder %v4975_v52, %v5190_v49  ;;  %vm880_vm7 = vcmp.eq.f32.partialorder %v4977_v53, %v5190_v49 }
 0x190   : > { %4111 = vmatpush1.bf16.msk.msra.mxu1 %vm4110_vm8, %v7274_v27  ;;  %vm4116_vm1 = vmpackc.low %vm877_vm13, %vm875_vm12  ;;  %vm883_vm8 = vcmp.eq.f32.partialorder %v5011_v62, %v5192_v51  ;;  %vm882_vm12 = vcmp.eq.f32.partialorder %v5011_v62, %v5190_v49  ;;  %vm884_vm13 = vcmp.eq.f32.partialorder %v5013_v63, %v5190_v49 }
 0x191   : > { %4113 = vmatprep.subr.msk.bf16.mxu1 %vm4112_vm9, %v7274_v27  ;;  %vm4118_vm4 = vmpackc.low %vm876_vm0, %vm874_vm2  ;;  %vm885_vm9 = vcmp.eq.f32.partialorder %v5013_v63, %v5192_v51 }
 0x192   : > { %vm4120_vm5 = vmpackc.low %vm881_vm3, %vm879_vm15  ;;  %vm886_vm15 = vcmp.eq.f32.partialorder %v5033_v9, %v5190_v49  ;;  %vm888_vm3 = vcmp.eq.f32.partialorder %v5035_v11, %v5190_v49 }
 0x193   : > { %vm4122_vm10 = vmpackc.low %vm880_vm7, %vm878_vm6 }
 0x194   : > { %4115 = vmatpush1.bf16.msk.msra.mxu1 %vm4114_vm14, %v7274_v27  ;;  %vm4124_vm11 = vmpackc.low %vm885_vm9, %vm883_vm8  ;;  %vm887_vm14 = vcmp.eq.f32.partialorder %v5033_v9, %v5192_v51  ;;  %vm890_vm8 = vcmp.eq.f32.partialorder %v5037_v46, %v5190_v49  ;;  %vm892_vm9 = vcmp.eq.f32.partialorder %v5039_v12, %v5190_v49 }
 0x195   : > { %4117 = vmatprep.subr.msk.bf16.mxu1 %vm4116_vm1, %v7274_v27  ;;  %vm889_vm1 = vcmp.eq.f32.partialorder %v5035_v11, %v5192_v51  ;;  %vm4126_vm2 = vmpackc.low %vm884_vm13, %vm882_vm12 }
 0x196   : > { %vm4128_vm0 = vmpackc.low %vm889_vm1, %vm887_vm14  ;;  %vm894_vm14 = vcmp.eq.f32.partialorder %v5098_v26, %v5190_v49  ;;  %vm896_vm1 = vcmp.eq.f32.partialorder %v5100_v28, %v5190_v49 }
 0x197   : > { %vm4130_vm6 = vmpackc.low %vm888_vm3, %vm886_vm15 }
 0x198   : > { %4119 = vmatpush1.bf16.msk.msra.mxu1 %vm4118_vm4, %v7274_v27  ;;  %vm891_vm4 = vcmp.eq.f32.partialorder %v5037_v46, %v5192_v51  ;;  %vm4134_vm12 = vmpackc.low %vm892_vm9, %vm890_vm8 }
 0x199   : > { %4121 = vmatprep.subr.msk.bf16.mxu1 %vm4120_vm5, %v7274_v27  ;;  %vm893_vm5 = vcmp.eq.f32.partialorder %v5039_v12, %v5192_v51 }
 0x19a   : > { %vm4132_vm7 = vmpackc.low %vm893_vm5, %vm891_vm4 }
 0x19c   : > { %4123 = vmatpush1.bf16.msk.msra.mxu1 %vm4122_vm10, %v7274_v27  ;;  %vm895_vm10 = vcmp.eq.f32.partialorder %v5098_v26, %v5192_v51 }
 0x19d   : > { %4125 = vmatprep.subr.msk.bf16.mxu1 %vm4124_vm11, %v7274_v27  ;;  %vm897_vm11 = vcmp.eq.f32.partialorder %v5100_v28, %v5192_v51 }
 0x19e   : > { %vm4136_vm13 = vmpackc.low %vm897_vm11, %vm895_vm10 }
 0x1a0   : > { %4127 = vmatpush1.bf16.msk.msra.mxu1 %vm4126_vm2, %v7274_v27  ;;  %vm4138_vm2 = vmpackc.low %vm896_vm1, %vm894_vm14 }
 0x1a1   : > { %4129 = vmatprep.subr.msk.bf16.mxu1 %vm4128_vm0, %v7274_v27  ;;  %vm7438_vm0 = vcmask 261120  }
 0x1a2   : > { %vm7439_vm3 = vmmov %vm7438_vm0 }
 0x1a3   : > { %vm7442_vm5 = vmmov %vm7438_vm0 }
 0x1a4   : > { %4131 = vmatpush1.bf16.msk.msra.mxu1 %vm4130_vm6, %v7274_v27  ;;  %vm7334_vm6 = vcmask 1040384   ;;  %vm7444_vm8 = vmmov %vm7438_vm0 }
 0x1a5   : > { %4133 = vmatprep.subr.msk.bf16.mxu1 %vm4132_vm7, %v7274_v27  ;;  %vm7443_vm7 = vmmov %vm7438_vm0 }
 0x1a6   : > { %vm7445_vm9 = vmmov %vm7438_vm0 }
 0x1a7   : > { %vm7446_vm10 = vmmov %vm7438_vm0 }
 0x1a8   : > { %4135 = vmatpush1.bf16.msk.msra.mxu1 %vm4134_vm12, %v7274_v27  ;;  %vm7447_vm11 = vmmov %vm7438_vm0 }
 0x1a9   : > { %4137 = vmatprep.subr.msk.bf16.mxu1 %vm4136_vm13, %v7274_v27  ;;  %vm7448_vm12 = vmmov %vm7438_vm0 }
 0x1aa   : > { %vm7449_vm13 = vmmov %vm7438_vm0 }
 0x1ab   : > { %vm7450_vm14 = vmmov %vm7438_vm0 }
 0x1ac   : > { %4139 = vmatpush1.bf16.msk.msra.mxu1 %vm4138_vm2, %v7274_v27  ;;  %vm7451_vm1 = vmmov %vm7438_vm0 }
 0x1ad   : > { %vm7452_vm2 = vmmov %vm7438_vm0 }
 0x1af   : > { %1027 = vmatmul.mubr.f32.vlgmr.msra.gmra.mrb[0].mxu1 %v374_v36 }
 0x1b0   : > { %1032 = vmatprep.mubr.f32.mxu1 %v7272_v16 }
 0x1b3   : > { %1033 = vmatmul.mubr.f32.gmra.mrb[2].mxu1 %v375_v0 }
 0x1b4   : > { %1038 = vmatprep.mubr.f32.mxu1 %v7272_v16 }
 0x1b7   : > { %1039 = vmatmul.mubr.f32.gmra.mrb[4].mxu1 %v376_v60  ;;  %v4348_v60 = vld [vmem:[%s4590_s12 + $0x38] sm:$0xff]  ;;  %s4355_s12 = scalar_lea.vmem %s4354_s18, 8192 }
 0x1b8   : > { %1044 = vmatprep.mubr.f32.mxu1 %v7272_v16  ;;  %p4357_p3 = scmp.lt.s32.totalorder %s4355_s12, %s4349_s15 }
 0x1ba   : > { %p4358_p4 = por %p4357_p3, %p4356_p2 }
 0x1bb   : > { %1045 = vmatmul.mubr.f32.gmra.mrb[6].mxu1 %v377_v56 }
 0x1bc   : > { %1279 = vmatprep.mubr.f32.mxu1 %v7272_v16  ;;  %p4359_p5 = pnand %p4358_p4, %p4352_p1 }
 0x282   : > { %v5291_v4 = vpop.f32.mrb[0].mxu1 }
 0x283   : > { %7421 = vst [vmem:[#allocation17_spill] sm:$0xff] %v5291_v4  ;;  %1120 = vst [vmem:[%s5293_s19] sm:$0xff] %v5291_v4  ;;  %v5297_v47 = vpop.f32.mrb[1].mxu1  ;;  %v1051_v13 = vsub.f32 %v5291_v4, %v4341_v57  ;;  %v5327_v23 = vsub.f32 %v4341_v57, %v5291_v4 }
 0x284   : > { %7422 = vst [vmem:[#allocation18_spill] sm:$0xff] %v5297_v47  ;;  %1121 = vst [vmem:[%s5293_s19 + $0x8] sm:$0xff] %v5297_v47  ;;  %v1052_v14 = vsub.f32 %v5297_v47, %v4342_v24  ;;  %v5317_v1 = vsub.f32 %v4342_v24, %v5297_v47 }
 0x285   : > { %v1059_v18 = vmul.f32 %v1051_v13, %v1051_v13  ;;  %7428 = vst [vmem:[#allocation24_spill] sm:$0xff] %v5327_v23 }
 0x286   : > { %v5305_v19 = vpop.f32.mrb[2].mxu1  ;;  %7426 = vst [vmem:[#allocation22_spill] sm:$0xff] %v5317_v1  ;;  %v1060_v25 = vmul.f32 %v1052_v14, %v1052_v14 }
 0x287   : > { %7423 = vst [vmem:[#allocation19_spill] sm:$0xff] %v5305_v19  ;;  %v1053_v34 = vsub.f32 %v5305_v19, %v4343_v20  ;;  %v5310_v43 = vsub.f32 %v4343_v20, %v5305_v19  ;;  %1122 = vst [vmem:[%s5293_s19 + $0x10] sm:$0xff] %v5305_v19  ;;  %v5314_v3 = vpop.f32.mrb[3].mxu1 }
 0x288   : > { %7425 = vst [vmem:[#allocation21_spill] sm:$0xff] %v5314_v3  ;;  %v1054_v10 = vsub.f32 %v5314_v3, %v4344_v8  ;;  %v5322_v15 = vsub.f32 %v4344_v8, %v5314_v3  ;;  %1123 = vst [vmem:[%s5293_s19 + $0x18] sm:$0xff] %v5314_v3 }
 0x289   : > { %7424 = vst [vmem:[#allocation20_spill] sm:$0xff] %v5310_v43  ;;  %v1061_v21 = vmul.f32 %v1053_v34, %v1053_v34  ;;  %v4142_v37 = vpack.c.bf16 %v5310_v43, %v5327_v23 }
 0x28a   : > { %7427 = vst [vmem:[#allocation23_spill] sm:$0xff] %v5322_v15  ;;  %v1062_v22 = vmul.f32 %v1054_v10, %v1054_v10  ;;  %v5329_v32 = vpop.f32.mrb[4].mxu1  ;;  %v4140_v29 = vpack.c.bf16 %v5322_v15, %v5317_v1  ;;  %v306_v10 = vadd.s32 128, %v5357_v7 }
 0x28b   : > { %7429 = vst [vmem:[#allocation25_spill] sm:$0xff] %v5329_v32  ;;  %v1067_v39 = vadd.f32 %v1061_v21, %v1059_v18  ;;  %v1055_v30 = vsub.f32 %v5329_v32, %v4345_v54  ;;  %1124 = vst [vmem:[%s5293_s19 + $0x20] sm:$0xff] %v5329_v32  ;;  %v5337_v48 = vpop.f32.mrb[5].mxu1  ;;  %v5370_v13 = vsub.f32 %v4345_v54, %v5329_v32  ;;  %v308_v18 = vstv %s3633_s20 }
 0x28c   : > { %7430 = vst [vmem:[#allocation26_spill] sm:$0xff] %v5337_v48  ;;  %v1076_v61 = vadd.f32 %v1062_v22, %v1060_v25  ;;  %v1056_v6 = vsub.f32 %v5337_v48, %v4346_v31  ;;  %1125 = vst [vmem:[%s5293_s19 + $0x28] sm:$0xff] %v5337_v48  ;;  %4141 = vmatprep.subr.bf16.mxu1 %v4140_v29  ;;  %v5360_v0 = vsub.f32 %v4346_v31, %v5337_v48  ;;  %v3716_v25 = vld [vmem:[%s7404_s1 + $0x80] sm:$0xff] }
 0x28d   : > { %v1063_v58 = vmul.f32 %v1055_v30, %v1055_v30  ;;  %4143 = vmatpush1.bf16.msra.mxu1 %v4142_v37  ;;  %7437 = vst [vmem:[#allocation33_spill] sm:$0xff] %v5370_v13  ;;  %v310_v30 = vadd.s32 %v308_v18, %v306_v10  ;;  %v3717_v37 = vld [vmem:[%s7404_s1 + $0x88] sm:$0xff]  ;;  %v3720_v10 = vld [vmem:[%s7404_s1 + $0xa0] sm:$0xff] }
 0x28e   : > { %v1064_v2 = vmul.f32 %v1056_v6, %v1056_v6  ;;  %v5345_v5 = vpop.f32.mrb[6].mxu1  ;;  %7435 = vst [vmem:[#allocation31_spill] sm:$0xff] %v5360_v0 }
 0x28f   : > { %7431 = vst [vmem:[#allocation27_spill] sm:$0xff] %v5345_v5  ;;  %v1068_v44 = vadd.f32 %v1067_v39, %v1063_v58  ;;  %v1057_v55 = vsub.f32 %v5345_v5, %v4347_v17  ;;  %v5350_v50 = vsub.f32 %v4347_v17, %v5345_v5  ;;  %1126 = vst [vmem:[%s5293_s19 + $0x30] sm:$0xff] %v5345_v5  ;;  %v5354_v59 = vpop.f32.mrb[7].mxu1  ;;  %vm312_vm4 = vcmp.lt.s32.totalorder %v310_v30, 640 }
 0x290   : > { %7433 = vst [vmem:[#allocation29_spill] sm:$0xff] %v5354_v59  ;;  %v1077_v36 = vadd.f32 %v1076_v61, %v1064_v2  ;;  %v1058_v56 = vsub.f32 %v5354_v59, %v4348_v60  ;;  %v5365_v57 = vsub.f32 %v4348_v60, %v5354_v59  ;;  %1127 = vst [vmem:[%s5293_s19 + $0x38] sm:$0xff] %v5354_v59  ;;  %v3718_v2 = vld [vmem:[%s7404_s1 + $0x90] sm:$0xff] }
 0x291   : > { %7432 = vst [vmem:[#allocation28_spill] sm:$0xff] %v5350_v50  ;;  %v1065_v24 = vmul.f32 %v1057_v55, %v1057_v55  ;;  %v4146_v34 = vpack.c.bf16 %v5350_v50, %v5370_v13  ;;  %v309_v39 = vadd.s32 %v308_v18, %v5357_v7  ;;  %v5414_v18 = vpop.permute.xlu0 %1378 }
 0x292   : > { %7436 = vst [vmem:[#allocation32_spill] sm:$0xff] %v5365_v57  ;;  %v1066_v40 = vmul.f32 %v1058_v56, %v1058_v56  ;;  %v4144_v14 = vpack.c.bf16 %v5365_v57, %v5360_v0 }
 0x293   : > { %v1069_v20 = vadd.f32 %v1068_v44, %v1065_v24  ;;  %vm311_vm15 = vcmp.lt.s32.totalorder %v309_v39, 640  ;;  %v3719_v24 = vld [vmem:[%s7404_s1 + $0x98] sm:$0xff] }
 0x294   : > { %v1078_v8 = vadd.f32 %v1077_v36, %v1066_v40  ;;  %4145 = vmatprep.subr.bf16.mxu1 %v4144_v14  ;;  %v5395_v17 = vsel %vm311_vm15, 1.0, %v7272_v16  ;;  %v5398_v36 = vsel %vm312_vm4, 1.0, %v7272_v16  ;;  %vm7453_vm15 = vmmov %vm7438_vm0 }
 0x295   : > { %v1070_v21 = vrot.slane %v1069_v20, 4  ;;  %4147 = vmatpush1.bf16.msra.mxu1 %v4146_v34  ;;  %7440 = vst [vmem:[#allocation34_spill] sm:$0xff] %v5395_v17  ;;  %7441 = vst [vmem:[#allocation35_spill] sm:$0xff] %v5398_v36 }
 0x296   : > { %v1079_v22 = vrot.slane %v1078_v8, 4 }
 0x297   : > { %v1071_v29 = vadd.f32 %v1070_v21, %v1069_v20  ;;  %v3721_v21 = vld [vmem:[%s7404_s1 + $0xa8] sm:$0xff] }
 0x298   : > { %v1080_v54 = vadd.f32 %v1079_v22, %v1078_v8  ;;  %3752 = vmatmul.mubr.msk.f32.vlgmr.msra.gmra.mrb[8].mxu1 %vm7438_vm0, %v3716_v25  ;;  %v5421_v25 = vpop.permute.xlu0 %1388  ;;  %v3722_v22 = vld [vmem:[%s7404_s1 + $0xb0] sm:$0xff] }
 0x299   : > { %1285 = vmatprep.mubr.f32.mxu1 %v7272_v16  ;;  %v1072_v61 = vrot.slane %v1071_v29, 2 }
 0x29a   : > { %v1081_v31 = vrot.slane %v1080_v54, 2 }
 0x29b   : > { %v1073_v6 = vadd.f32 %v1072_v61, %v1071_v29  ;;  %v3723_v29 = vld [vmem:[%s7404_s1 + $0xb8] sm:$0xff]  ;;  %v3726_v61 = vld [vmem:[%s7404_s1 + $0xd0] sm:$0xff] }
 0x29c   : > { %3753 = vmatmul.mubr.msk.f32.gmra.mrb[10].mxu1 %vm7439_vm3, %v3717_v37  ;;  %v1082_v58 = vadd.f32 %v1081_v31, %v1080_v54  ;;  %v5433_v39 = vpop.permute.xlu0 %1398  ;;  %v3724_v54 = vld [vmem:[%s7404_s1 + $0xc0] sm:$0xff]  ;;  %v3725_v37 = vld [vmem:[%s7404_s1 + $0xc8] sm:$0xff]  ;;  %vm7454_vm3 = vmmov %vm7438_vm0 }
 0x29d   : > { %1291 = vmatprep.mubr.f32.mxu1 %v7272_v16  ;;  %v1074_v44 = vrot.slane %v1073_v6, 1 }
 0x29e   : > { %v1083_v55 = vrot.slane %v1082_v58, 1 }
 0x29f   : > { %v1075_v60 = vadd.f32 %v1074_v44, %v1073_v6  ;;  %v3727_v6 = vld [vmem:[%s7404_s1 + $0xd8] sm:$0xff]  ;;  %v3729_v44 = vld [vmem:[%s7404_s1 + $0xe8] sm:$0xff] }
 0x2a0   : > { %3754 = vmatmul.mubr.msk.f32.gmra.mrb[12].mxu1 %vm7442_vm5, %v3718_v2  ;;  %v1084_v56 = vadd.f32 %v1083_v55, %v1082_v58  ;;  %v5440_v30 = vpop.permute.xlu0 %1408  ;;  %v3728_v2 = vld [vmem:[%s7404_s1 + $0xe0] sm:$0xff] }
 0x2a1   : > { %1297 = vmatprep.mubr.f32.mxu1 %v7272_v16  ;;  %v1086_v40 = vmul.f32 %v5395_v17, %v1075_v60  ;;  %v3730_v60 = vld [vmem:[%s7404_s1 + $0xf0] sm:$0xff] }
 0x2a2   : > { %v1087_v14 = vmul.f32 %v5398_v36, %v1084_v56 }
 0x2a3   : > { %v1089_v20 = vsel %vm7334_vm6, %v1086_v40, 0.0 }
 0x2a4   : > { %3755 = vmatmul.mubr.msk.f32.gmra.mrb[14].mxu1 %vm7443_vm7, %v3719_v24  ;;  %v1090_v34 = vsel %vm7334_vm6, %v1087_v14, 0.0  ;;  %v5452_v31 = vpop.permute.xlu0 %1418  ;;  %v3731_v24 = vld [vmem:[%s7404_s1 + $0xf8] sm:$0xff] }
 0x2a5   : > { %1303 = vmatprep.mubr.f32.mxu1 %v7272_v16  ;;  %v1091_v8 = vadd.f32 %v1090_v34, %v1089_v20 }
 0x2a7   : > { %1092 = vadd.xlane.f32.xlu0 %v1091_v8 }
 0x2a8   : > { %3756 = vmatmul.mubr.msk.f32.gmra.mrb[16].mxu1 %vm7444_vm8, %v3720_v10  ;;  %v5459_v58 = vpop.permute.xlu0 %1428 }
 0x2a9   : > { %1309 = vmatprep.mubr.f32.mxu1 %v7272_v16 }
 0x2ac   : > { %3757 = vmatmul.mubr.msk.f32.gmra.mrb[18].mxu1 %vm7445_vm9, %v3721_v21  ;;  %v5471_v55 = vpop.permute.xlu0 %1438 }
 0x2ad   : > { %1315 = vmatprep.mubr.f32.mxu1 %v7272_v16 }
 0x2b0   : > { %3758 = vmatmul.mubr.msk.f32.gmra.mrb[20].mxu1 %vm7446_vm10, %v3722_v22  ;;  %v5478_v56 = vpop.permute.xlu0 %1448 }
 0x2b1   : > { %1321 = vmatprep.mubr.f32.mxu1 %v7272_v16 }
 0x2b4   : > { %3759 = vmatmul.mubr.msk.f32.gmra.mrb[22].mxu1 %vm7447_vm11, %v3723_v29  ;;  %v5487_v40 = vpop.permute.xlu0 %2150 }
 0x2b5   : > { %1327 = vmatprep.mubr.f32.mxu1 %v7272_v16  ;;  %7455 = vst [vmem:[#allocation36_spill] sm:$0xff] %v5487_v40 }
 0x2b8   : > { %3760 = vmatmul.mubr.msk.f32.gmra.mrb[24].mxu1 %vm7448_vm12, %v3724_v54  ;;  %v5489_v14 = vpop.permute.xlu0 %2160 }
 0x2b9   : > { %1333 = vmatprep.mubr.f32.mxu1 %v7272_v16  ;;  %7456 = vst [vmem:[#allocation37_spill] sm:$0xff] %v5489_v14 }
 0x2bc   : > { %3761 = vmatmul.mubr.msk.f32.gmra.mrb[26].mxu1 %vm7449_vm13, %v3725_v37  ;;  %v5491_v20 = vpop.permute.xlu0 %2170 }
 0x2bd   : > { %1339 = vmatprep.mubr.f32.mxu1 %v7272_v16  ;;  %7457 = vst [vmem:[#allocation38_spill] sm:$0xff] %v5491_v20 }
 0x2c0   : > { %3762 = vmatmul.mubr.msk.f32.gmra.mrb[28].mxu1 %vm7450_vm14, %v3726_v61  ;;  %v5493_v34 = vpop.permute.xlu0 %2180 }
 0x2c1   : > { %1345 = vmatprep.mubr.f32.mxu1 %v7272_v16  ;;  %7458 = vst [vmem:[#allocation39_spill] sm:$0xff] %v5493_v34 }
 0x2c4   : > { %3763 = vmatmul.mubr.msk.f32.gmra.mrb[30].mxu1 %vm7451_vm1, %v3727_v6  ;;  %v5495_v8 = vpop.permute.xlu0 %2190 }
 0x2c5   : > { %1351 = vmatprep.mubr.f32.mxu1 %v7272_v16  ;;  %7459 = vst [vmem:[#allocation40_spill] sm:$0xff] %v5495_v8  ;;  %v1384_v8 = vpop.permute.xlu1 %1383 }
 0x2c8   : > { %3764 = vmatmul.mubr.msk.f32.gmra.mrb[32].mxu1 %vm7452_vm2, %v3728_v2  ;;  %v5497_v10 = vpop.permute.xlu0 %2200 }
 0x2c9   : > { %1357 = vmatprep.mubr.f32.mxu1 %v7272_v16  ;;  %7460 = vst [vmem:[#allocation41_spill] sm:$0xff] %v5497_v10 }
 0x2cc   : > { %3765 = vmatmul.mubr.msk.f32.gmra.mrb[34].mxu1 %vm7438_vm0, %v3729_v44  ;;  %v5499_v21 = vpop.permute.xlu0 %2210 }
 0x2cd   : > { %1363 = vmatprep.mubr.f32.mxu1 %v7272_v16  ;;  %7461 = vst [vmem:[#allocation42_spill] sm:$0xff] %v5499_v21 }
 0x2d0   : > { %3766 = vmatmul.mubr.msk.f32.gmra.mrb[36].mxu1 %vm7453_vm15, %v3730_v60  ;;  %v5501_v22 = vpop.permute.xlu0 %2220 }
 0x2d1   : > { %1369 = vmatprep.mubr.f32.mxu1 %v7272_v16  ;;  %7462 = vst [vmem:[#allocation43_spill] sm:$0xff] %v5501_v22 }
 0x2d4   : > { %3767 = vmatmul.mubr.msk.f32.gmra.mrb[38].mxu1 %vm7454_vm3, %v3731_v24  ;;  %v5503_v29 = vpop.permute.xlu0 %2922 }
 0x2d5   : > { %2570 = vmatprep.mubr.f32.mxu1 %v7272_v16  ;;  %7463 = vst [vmem:[#allocation44_spill] sm:$0xff] %v5503_v29 }
 0x2d8   : > { %v5505_v54 = vpop.permute.xlu0 %2932 }
 0x2d9   : > { %7464 = vst [vmem:[#allocation45_spill] sm:$0xff] %v5505_v54 }
 0x2dc   : > { %v5507_v37 = vpop.permute.xlu0 %2942 }
 0x2dd   : > { %7465 = vst [vmem:[#allocation46_spill] sm:$0xff] %v5507_v37 }
 0x2e0   : > { %v5509_v61 = vpop.permute.xlu0 %2952 }
 0x2e1   : > { %7466 = vst [vmem:[#allocation47_spill] sm:$0xff] %v5509_v61 }
 0x2e4   : > { %v5511_v6 = vpop.permute.xlu0 %2962 }
 0x2e5   : > { %7467 = vst [vmem:[#allocation48_spill] sm:$0xff] %v5511_v6 }
 0x2e8   : > { %v5513_v2 = vpop.permute.xlu0 %2972 }
 0x2e9   : > { %7468 = vst [vmem:[#allocation49_spill] sm:$0xff] %v5513_v2 }
 0x2ec   : > { %v5515_v44 = vpop.permute.xlu0 %2982 }
 0x2ed   : > { %7469 = vst [vmem:[#allocation50_spill] sm:$0xff] %v5515_v44 }
 0x2f0   : > { %v5517_v60 = vpop.permute.xlu0 %2992 }
 0x2f1   : > { %7470 = vst [vmem:[#allocation51_spill] sm:$0xff] %v5517_v60 }
 0x334   : > { %v1093_v24 = vpop.xlane.xlu0 %1092 }
 0x335   : > { %v1094_v16 = vrot.slane %v1093_v24, 4 }
 0x337   : > { %v1095_v27 = vadd.f32 %v1094_v16, %v1093_v24 }
 0x339   : > { %v1096_v7 = vrot.slane %v1095_v27, 2 }
 0x33b   : > { %v1097_v22 = vadd.f32 %v1096_v7, %v1095_v27 }
 0x33d   : > { %v1098_v29 = vrot.slane %v1097_v22, 1 }
 0x33f   : > { %v1099_v21 = vadd.f32 %v1098_v29, %v1097_v22 }
 0x341   : > { %4264 = vpush %v1099_v21  ;;  %v1394_v21 = vpop.permute.xlu1 %1393 }
 0x36b   : > { %v1281_v54 = vpop.f32.mrb[8].mxu1 }
 0x36c   : > { %v1283_v37 = vpop.f32.mrb[9].mxu1  ;;  %v5520_v2 = vadd.f32 %v5414_v18, %v1281_v54 }
 0x36d   : > { %v5526_v16 = vadd.f32 %v5414_v18, %v1283_v37 }
 0x36f   : > { %v1287_v10 = vpop.f32.mrb[10].mxu1 }
 0x370   : > { %v1289_v61 = vpop.f32.mrb[11].mxu1  ;;  %v5535_v54 = vadd.f32 %v1384_v8, %v1287_v10 }
 0x371   : > { %v5539_v34 = vadd.f32 %v1384_v8, %v1289_v61  ;;  %v1404_v8 = vpop.permute.xlu1 %1403 }
 0x373   : > { %v1293_v6 = vpop.f32.mrb[12].mxu1 }
 0x374   : > { %v5523_v44 = vadd.f32 %v5421_v25, %v1293_v6  ;;  %v1295_v60 = vpop.f32.mrb[13].mxu1 }
 0x375   : > { %v5529_v27 = vadd.f32 %v5421_v25, %v1295_v60 }
 0x376   : > { %v1488_v7 = vmin.f32 %v5520_v2, %v5523_v44 }
 0x377   : > { %v1509_v22 = vmin.f32 %v5526_v16, %v5529_v27  ;;  %v1299_v29 = vpop.f32.mrb[14].mxu1 }
 0x378   : > { %v5537_v24 = vadd.f32 %v1394_v21, %v1299_v29  ;;  %v1301_v6 = vpop.f32.mrb[15].mxu1 }
 0x379   : > { %v5541_v18 = vadd.f32 %v1394_v21, %v1301_v6 }
 0x37a   : > { %v1489_v25 = vmin.f32 %v5535_v54, %v5537_v24 }
 0x37b   : > { %v1510_v37 = vmin.f32 %v5539_v34, %v5541_v18  ;;  %v1305_v60 = vpop.f32.mrb[16].mxu1 }
 0x37c   : > { %v5548_v20 = vadd.f32 %v5433_v39, %v1305_v60  ;;  %v1307_v14 = vpop.f32.mrb[17].mxu1 }
 0x37d   : > { %v5551_v10 = vadd.f32 %v5433_v39, %v1307_v14 }
 0x37e   : > { %v1490_v29 = vmin.f32 %v1488_v7, %v5548_v20 }
 0x37f   : > { %v1511_v61 = vmin.f32 %v1509_v22, %v5551_v10  ;;  %v1311_v21 = vpop.f32.mrb[18].mxu1  ;;  %v1414_v22 = vpop.permute.xlu1 %1413 }
 0x380   : > { %v5555_v6 = vadd.f32 %v1404_v8, %v1311_v21  ;;  %v1313_v40 = vpop.f32.mrb[19].mxu1 }
 0x381   : > { %v5557_v36 = vadd.f32 %v1404_v8, %v1313_v40 }
 0x382   : > { %v1491_v17 = vmin.f32 %v1489_v25, %v5555_v6 }
 0x383   : > { %v1512_v60 = vmin.f32 %v1510_v37, %v5557_v36  ;;  %v1317_v59 = vpop.f32.mrb[20].mxu1 }
 0x384   : > { %v5562_v57 = vadd.f32 %v5440_v30, %v1317_v59  ;;  %v1319_v39 = vpop.f32.mrb[21].mxu1 }
 0x385   : > { %v5565_v14 = vadd.f32 %v5440_v30, %v1319_v39  ;;  %v1424_v39 = vpop.permute.xlu1 %1423 }
 0x386   : > { %v1492_v7 = vmin.f32 %v1490_v29, %v5562_v57 }
 0x387   : > { %v1513_v21 = vmin.f32 %v1511_v61, %v5565_v14  ;;  %v1323_v5 = vpop.f32.mrb[22].mxu1 }
 0x388   : > { %v5569_v40 = vadd.f32 %v1414_v22, %v1323_v5  ;;  %v1325_v8 = vpop.f32.mrb[23].mxu1 }
 0x389   : > { %v5571_v25 = vadd.f32 %v1414_v22, %v1325_v8 }
 0x38a   : > { %v1493_v37 = vmin.f32 %v1491_v17, %v5569_v40 }
 0x38b   : > { %v1514_v59 = vmin.f32 %v1512_v60, %v5571_v25  ;;  %v1329_v50 = vpop.f32.mrb[24].mxu1 }
 0x38c   : > { %v5576_v48 = vadd.f32 %v5452_v31, %v1329_v50  ;;  %v1331_v30 = vpop.f32.mrb[25].mxu1 }
 0x38d   : > { %v5579_v29 = vadd.f32 %v5452_v31, %v1331_v30  ;;  %v1434_v30 = vpop.permute.xlu1 %1433 }
 0x38e   : > { %v1494_v61 = vmin.f32 %v1492_v7, %v5576_v48 }
 0x38f   : > { %v1515_v5 = vmin.f32 %v1513_v21, %v5579_v29  ;;  %v1335_v0 = vpop.f32.mrb[26].mxu1 }
 0x390   : > { %v5583_v22 = vadd.f32 %v1424_v39, %v1335_v0  ;;  %v1337_v8 = vpop.f32.mrb[27].mxu1 }
 0x391   : > { %v5585_v17 = vadd.f32 %v1424_v39, %v1337_v8 }
 0x392   : > { %v1495_v60 = vmin.f32 %v1493_v37, %v5583_v22 }
 0x393   : > { %v1516_v50 = vmin.f32 %v1514_v59, %v5585_v17  ;;  %v1341_v32 = vpop.f32.mrb[28].mxu1 }
 0x394   : > { %v5590_v13 = vadd.f32 %v5459_v58, %v1341_v32  ;;  %v1343_v31 = vpop.f32.mrb[29].mxu1 }
 0x395   : > { %v5593_v7 = vadd.f32 %v5459_v58, %v1343_v31  ;;  %v1444_v31 = vpop.permute.xlu1 %1443 }
 0x396   : > { %v1496_v21 = vmin.f32 %v1494_v61, %v5590_v13 }
 0x397   : > { %v1517_v0 = vmin.f32 %v1515_v5, %v5593_v7  ;;  %v1347_v3 = vpop.f32.mrb[30].mxu1 }
 0x398   : > { %v5597_v39 = vadd.f32 %v1434_v30, %v1347_v3  ;;  %v1349_v8 = vpop.f32.mrb[31].mxu1 }
 0x399   : > { %v5599_v37 = vadd.f32 %v1434_v30, %v1349_v8 }
 0x39a   : > { %v1497_v59 = vmin.f32 %v1495_v60, %v5597_v39 }
 0x39b   : > { %v1518_v32 = vmin.f32 %v1516_v50, %v5599_v37  ;;  %v1353_v15 = vpop.f32.mrb[32].mxu1 }
 0x39c   : > { %v5604_v19 = vadd.f32 %v5471_v55, %v1353_v15  ;;  %v1355_v58 = vpop.f32.mrb[33].mxu1 }
 0x39d   : > { %v5607_v61 = vadd.f32 %v5471_v55, %v1355_v58  ;;  %v1454_v58 = vpop.permute.xlu1 %1453 }
 0x39e   : > { %v1498_v5 = vmin.f32 %v1496_v21, %v5604_v19 }
 0x39f   : > { %v1519_v3 = vmin.f32 %v1517_v0, %v5607_v61  ;;  %v1359_v43 = vpop.f32.mrb[34].mxu1 }
 0x3a0   : > { %v5611_v30 = vadd.f32 %v1444_v31, %v1359_v43  ;;  %v1361_v8 = vpop.f32.mrb[35].mxu1 }
 0x3a1   : > { %v5613_v60 = vadd.f32 %v1444_v31, %v1361_v8 }
 0x3a2   : > { %v1499_v50 = vmin.f32 %v1497_v59, %v5611_v30 }
 0x3a3   : > { %v1520_v15 = vmin.f32 %v1518_v32, %v5613_v60  ;;  %v1365_v1 = vpop.f32.mrb[36].mxu1 }
 0x3a4   : > { %v5618_v23 = vadd.f32 %v5478_v56, %v1365_v1  ;;  %v1367_v55 = vpop.f32.mrb[37].mxu1 }
 0x3a5   : > { %v5621_v21 = vadd.f32 %v5478_v56, %v1367_v55 }
 0x3a6   : > { %v1500_v0 = vmin.f32 %v1498_v5, %v5618_v23 }
 0x3a7   : > { %v1521_v43 = vmin.f32 %v1519_v3, %v5621_v21  ;;  %v1371_v47 = vpop.f32.mrb[38].mxu1 }
 0x3a8   : > { %v5625_v31 = vadd.f32 %v1454_v58, %v1371_v47  ;;  %v1373_v8 = vpop.f32.mrb[39].mxu1 }
 0x3a9   : > { %v5627_v59 = vadd.f32 %v1454_v58, %v1373_v8 }
 0x3aa   : > { %v1501_v32 = vmin.f32 %v1499_v50, %v5625_v31 }
 0x3ab   : > { %v1522_v1 = vmin.f32 %v1520_v15, %v5627_v59 }
 0x3ac   : > { %v1502_v4 = vmin.f32 %v1500_v0, %v1501_v32 }
 0x3ad   : > { %v1523_v51 = vmin.f32 %v1521_v43, %v1522_v1 }
 0x3ae   : > { %v1503_v49 = vrot.slane %v1502_v4, 4 }
 0x3af   : > { %v1524_v56 = vrot.slane %v1523_v51, 4 }
 0x3b0   : > { %v1504_v55 = vmin.f32 %v1502_v4, %v1503_v49 }
 0x3b1   : > { %v1525_v28 = vmin.f32 %v1523_v51, %v1524_v56  ;;  %v7472_v56 = vld [vmem:[#allocation11_spill] sm:$0xff] }
 0x3b2   : > { %v1505_v5 = vrot.slane %v1504_v55, 2 }
 0x3b3   : > { %v1526_v26 = vrot.slane %v1525_v28, 2 }
 0x3b4   : > { %v1506_v12 = vmin.f32 %v1504_v55, %v1505_v5  ;;  %v7473_v55 = vld [vmem:[#allocation12_spill] sm:$0xff] }
 0x3b5   : > { %v1527_v3 = vmin.f32 %v1525_v28, %v1526_v26 }
 0x3b6   : > { %v1507_v46 = vrot.slane %v1506_v12, 1 }
 0x3b7   : > { %v1528_v11 = vrot.slane %v1527_v3, 1 }
 0x3b8   : > { %v5631_v47 = vmin.f32 %v1506_v12, %v1507_v46 }
 0x3b9   : > { %v5665_v46 = vmin.f32 %v1527_v3, %v1528_v11 }
 0x3ba   : > { %vm1530_vm4 = vcmp.le.f32.partialorder %v5520_v2, %v5631_v47  ;;  %vm1532_vm5 = vcmp.le.f32.partialorder %v5535_v54, %v5631_v47  ;;  %vm1534_vm7 = vcmp.le.f32.partialorder %v5523_v44, %v5631_v47  ;;  %vm1536_vm8 = vcmp.le.f32.partialorder %v5537_v24, %v5631_v47 }
 0x3bb   : > { %vm1538_vm9 = vcmp.le.f32.partialorder %v5548_v20, %v5631_v47  ;;  %vm1540_vm10 = vcmp.le.f32.partialorder %v5555_v6, %v5631_v47  ;;  %vm1542_vm11 = vcmp.le.f32.partialorder %v5562_v57, %v5631_v47  ;;  %vm1544_vm12 = vcmp.le.f32.partialorder %v5569_v40, %v5631_v47 }
 0x3bc   : > { %vm1546_vm13 = vcmp.le.f32.partialorder %v5576_v48, %v5631_v47  ;;  %vm1548_vm14 = vcmp.le.f32.partialorder %v5583_v22, %v5631_v47  ;;  %vm1550_vm1 = vcmp.le.f32.partialorder %v5590_v13, %v5631_v47  ;;  %vm1552_vm2 = vcmp.le.f32.partialorder %v5597_v39, %v5631_v47  ;;  %v7471_v48 = vld [vmem:[#allocation10_spill] sm:$0xff] }
 0x3bd   : > { %vm1554_vm0 = vcmp.le.f32.partialorder %v5604_v19, %v5631_v47  ;;  %vm1556_vm15 = vcmp.le.f32.partialorder %v5611_v30, %v5631_v47  ;;  %v1562_v12 = vsel %vm1530_vm4, %v4961_v33, 128.0  ;;  %v1564_v26 = vsel %vm1532_vm5, %v4963_v35, 128.0 }
 0x3be   : > { %v1566_v28 = vsel %vm1534_vm7, %v4965_v38, 128.0  ;;  %v1568_v11 = vsel %vm1536_vm8, %v4967_v41, 128.0  ;;  %v1570_v49 = vsel %vm1538_vm9, %v4969_v42, 128.0  ;;  %v1572_v51 = vsel %vm1540_vm10, %v4973_v45, 128.0 }
 0x3bf   : > { %v1574_v4 = vsel %vm1542_vm11, %v4975_v52, 128.0  ;;  %v1576_v2 = vsel %vm1544_vm12, %v4977_v53, 128.0  ;;  %v1594_v44 = vmin.f32 %v1562_v12, %v1566_v28  ;;  %v1595_v54 = vmin.f32 %v1564_v26, %v1568_v11  ;;  %v7474_v12 = vld [vmem:[#allocation13_spill] sm:$0xff]  ;;  %v7476_v26 = vld [vmem:[#allocation14_spill] sm:$0xff] }
 0x3c0   : > { %vm1531_vm4 = vcmp.le.f32.partialorder %v5526_v16, %v5665_v46  ;;  %vm1533_vm5 = vcmp.le.f32.partialorder %v5539_v34, %v5665_v46  ;;  %vm1535_vm7 = vcmp.le.f32.partialorder %v5529_v27, %v5665_v46  ;;  %vm1537_vm8 = vcmp.le.f32.partialorder %v5541_v18, %v5665_v46 }
 0x3c1   : > { %v1596_v57 = vmin.f32 %v1594_v44, %v1570_v49  ;;  %v1597_v20 = vmin.f32 %v1595_v54, %v1572_v51  ;;  %vm1547_vm6 = vcmp.le.f32.partialorder %v5579_v29, %v5665_v46  ;;  %vm1549_vm3 = vcmp.le.f32.partialorder %v5585_v17, %v5665_v46 }
 0x3c2   : > { %vm1555_vm11 = vcmp.le.f32.partialorder %v5607_v61, %v5665_v46  ;;  %vm1557_vm12 = vcmp.le.f32.partialorder %v5613_v60, %v5665_v46  ;;  %v1578_v40 = vsel %vm1546_vm13, %v5011_v62, 128.0  ;;  %v1580_v50 = vsel %vm1548_vm14, %v5013_v63, 128.0 }
 0x3c3   : > { %v1598_v24 = vmin.f32 %v1596_v57, %v1574_v4  ;;  %v1599_v6 = vmin.f32 %v1597_v20, %v1576_v2  ;;  %vm1559_vm10 = vcmp.le.f32.partialorder %v5621_v21, %v5665_v46  ;;  %vm1561_vm9 = vcmp.le.f32.partialorder %v5627_v59, %v5665_v46 }
 0x3c4   : > { %v1582_v58 = vsel %vm1550_vm1, %v5033_v9, 128.0  ;;  %v1584_v43 = vsel %vm1552_vm2, %v7471_v48, 128.0  ;;  %v1563_v22 = vsel %vm1531_vm4, %v4961_v33, 128.0  ;;  %v1565_v8 = vsel %vm1533_vm5, %v4963_v35, 128.0 }
 0x3c5   : > { %v1600_v15 = vmin.f32 %v1598_v24, %v1578_v40  ;;  %v1601_v0 = vmin.f32 %v1599_v6, %v1580_v50  ;;  %v1567_v13 = vsel %vm1535_vm7, %v4965_v38, 128.0  ;;  %v1569_v39 = vsel %vm1537_vm8, %v4967_v41, 128.0 }
 0x3c6   : > { %v1586_v16 = vsel %vm1554_vm0, %v7472_v56, 128.0  ;;  %v1588_v34 = vsel %vm1556_vm15, %v7473_v55, 128.0  ;;  %vm7475_vm13 = vcmp.le.f32.partialorder %v5618_v23, %v5631_v47  ;;  %vm7477_vm14 = vcmp.le.f32.partialorder %v5625_v31, %v5631_v47 }
 0x3c7   : > { %v1602_v32 = vmin.f32 %v1600_v15, %v1582_v58  ;;  %v1603_v1 = vmin.f32 %v1601_v0, %v1584_v43  ;;  %v1590_v27 = vsel %vm7475_vm13, %v7474_v12, 128.0  ;;  %v1592_v18 = vsel %vm7477_vm14, %v7476_v26, 128.0 }
 0x3c8   : > { %v1615_v28 = vmin.f32 %v1563_v22, %v1567_v13  ;;  %v1616_v19 = vmin.f32 %v1565_v8, %v1569_v39  ;;  %vm7478_vm1 = vcmp.le.f32.partialorder %v5551_v10, %v5665_v46  ;;  %vm7479_vm2 = vcmp.le.f32.partialorder %v5557_v36, %v5665_v46  ;;  %v7484_v39 = vld [vmem:[#allocation15_spill] sm:$0xff] }
 0x3c9   : > { %v1604_v5 = vmin.f32 %v1602_v32, %v1586_v16  ;;  %v1605_v3 = vmin.f32 %v1603_v1, %v1588_v34  ;;  %v1571_v30 = vsel %vm7478_vm1, %v4969_v42, 128.0  ;;  %v1573_v23 = vsel %vm7479_vm2, %v4973_v45, 128.0 }
 0x3ca   : > { %v1617_v51 = vmin.f32 %v1615_v28, %v1571_v30  ;;  %v1618_v4 = vmin.f32 %v1616_v19, %v1573_v23  ;;  %vm7480_vm0 = vcmp.le.f32.partialorder %v5565_v14, %v5665_v46  ;;  %vm7481_vm15 = vcmp.le.f32.partialorder %v5571_v25, %v5665_v46  ;;  %v7488_v19 = vld [vmem:[#allocation16_spill] sm:$0xff] }
 0x3cb   : > { %v1606_v11 = vmin.f32 %v1604_v5, %v1590_v27  ;;  %v1607_v49 = vmin.f32 %v1605_v3, %v1592_v18  ;;  %v1575_v31 = vsel %vm7480_vm0, %v4975_v52, 128.0  ;;  %v1577_v47 = vsel %vm7481_vm15, %v4977_v53, 128.0 }
 0x3cc   : > { %v1619_v10 = vmin.f32 %v1617_v51, %v1575_v31  ;;  %v1620_v44 = vmin.f32 %v1618_v4, %v1577_v47  ;;  %v1579_v36 = vsel %vm1547_vm6, %v5011_v62, 128.0  ;;  %v1581_v57 = vsel %vm1549_vm3, %v5013_v63, 128.0  ;;  %v3732_v4 = vld [vmem:[%s7420_s2 + $0x20] sm:$0xff]  ;;  %v3733_v31 = vld [vmem:[%s7420_s2 + $0x28] sm:$0xff]  ;;  %v3734_v47 = vld [vmem:[%s7420_s2 + $0x30] sm:$0xff] }
 0x3cd   : > { %v1608_v2 = vmin.f32 %v1606_v11, %v1607_v49  ;;  %vm7482_vm4 = vcmp.le.f32.partialorder %v5593_v7, %v5665_v46  ;;  %vm7483_vm5 = vcmp.le.f32.partialorder %v5599_v37, %v5665_v46  ;;  %v1587_v17 = vsel %vm1555_vm11, %v7472_v56, 128.0 }
 0x3ce   : > { %v1621_v14 = vmin.f32 %v1619_v10, %v1579_v36  ;;  %v1622_v20 = vmin.f32 %v1620_v44, %v1581_v57  ;;  %v1583_v25 = vsel %vm7482_vm4, %v5033_v9, 128.0  ;;  %v1585_v6 = vsel %vm7483_vm5, %v7471_v48, 128.0  ;;  %v3735_v10 = vld [vmem:[%s7420_s2 + $0x38] sm:$0xff] }
 0x3cf   : > { %v1609_v54 = vrot.slane %v1608_v2, 4  ;;  %v1589_v15 = vsel %vm1557_vm12, %v7473_v55, 128.0  ;;  %v1591_v37 = vsel %vm1559_vm10, %v7474_v12, 128.0  ;;  %v1593_v43 = vsel %vm1561_vm9, %v7476_v26, 128.0 }
 0x3d0   : > { %v1623_v29 = vmin.f32 %v1621_v14, %v1583_v25  ;;  %v1624_v40 = vmin.f32 %v1622_v20, %v1585_v6  ;;  %v4260_v16 = vtrunc.f32 %v7484_v39  ;;  %vm7485_vm6 = vcmask 1040384   ;;  %v7494_v14 = vld [vmem:[#allocation18_spill] sm:$0xff] }
 0x3d1   : > { %v1610_v24 = vmin.f32 %v1608_v2, %v1609_v54  ;;  %v7487_v28 = vmov 1.0|1.0   ;;  %v4262_v11 = vtrunc.f32 %v7488_v19  ;;  %v7491_v2 = vmov 0.0   ;;  %v7492_v54 = vld [vmem:[#allocation17_spill] sm:$0xff]  ;;  %v7497_v6 = vld [vmem:[#allocation22_spill] sm:$0xff] }
 0x3d2   : > { %v1625_v7 = vmin.f32 %v1623_v29, %v1587_v17  ;;  %v1626_v0 = vmin.f32 %v1624_v40, %v1589_v15  ;;  %v4261_v3 = vcvt.f32.s32 %v4260_v16 }
 0x3d3   : > { %v1611_v50 = vrot.slane %v1610_v24, 2  ;;  %v4263_v30 = vcvt.f32.s32 %v4262_v11 }
 0x3d4   : > { %v1627_v61 = vmin.f32 %v1625_v7, %v1591_v37  ;;  %v1628_v22 = vmin.f32 %v1626_v0, %v1593_v43  ;;  %v7500_v7 = vld [vmem:[#allocation19_spill] sm:$0xff] }
 0x3d5   : > { %v1612_v58 = vmin.f32 %v1610_v24, %v1611_v50  ;;  %v7496_v24 = vld [vmem:[#allocation24_spill] sm:$0xff]  ;;  %v7503_v43 = vld [vmem:[#allocation23_spill] sm:$0xff] }
 0x3d6   : > { %v1629_v32 = vmin.f32 %v1627_v61, %v1628_v22  ;;  %v7498_v50 = vld [vmem:[#allocation20_spill] sm:$0xff] }
 0x3d7   : > { %v1613_v8 = vrot.slane %v1612_v58, 1 }
 0x3d8   : > { %v1630_v1 = vrot.slane %v1629_v32, 4 }
 0x3d9   : > { %v5827_v60 = vmin.f32 %v1612_v58, %v1613_v8  ;;  %v7505_v8 = vld [vmem:[#allocation21_spill] sm:$0xff] }
 0x3da   : > { %v1631_v13 = vmin.f32 %v1629_v32, %v1630_v1 }
 0x3db   : > { %v4266_v5 = vtrunc.f32 %v5827_v60  ;;  %vm1638_vm3 = vcmp.eq.f32.partialorder %v4961_v33, %v5827_v60  ;;  %vm1640_vm7 = vcmp.eq.f32.partialorder %v4963_v35, %v5827_v60  ;;  %vm1642_vm1 = vcmp.eq.f32.partialorder %v4965_v38, %v5827_v60 }
 0x3dc   : > { %v1632_v34 = vrot.slane %v1631_v13, 2  ;;  %vm4150_vm13 = vmpackc.low %vm1640_vm7, %vm1638_vm3  ;;  %vm1644_vm2 = vcmp.eq.f32.partialorder %v4967_v41, %v5827_v60  ;;  %vm1648_vm3 = vcmp.eq.f32.partialorder %v4973_v45, %v5827_v60 }
 0x3dd   : > { %v4267_v27 = vcvt.f32.s32 %v4266_v5  ;;  %vm4154_vm4 = vmpackc.low %vm1644_vm2, %vm1642_vm1 }
 0x3de   : > { %v1633_v21 = vmin.f32 %v1631_v13, %v1632_v34 }
 0x3df   : > { %v5832_v59 = vsel %vm7485_vm6, %v4261_v3, %v4267_v27  ;;  %vm1646_vm6 = vcmp.eq.f32.partialorder %v4969_v42, %v5827_v60  ;;  %v7508_v3 = vld [vmem:[#allocation33_spill] sm:$0xff] }
 0x3e0   : > { %v1634_v18 = vrot.slane %v1633_v21, 1  ;;  %7486 = vst [vmem:[#allocation15_spill] sm:$0xff] %v5832_v59 }
 0x3e2   : > { %v5834_v46 = vmin.f32 %v1633_v21, %v1634_v18  ;;  %v7509_v18 = vld [vmem:[#allocation25_spill] sm:$0xff] }
 0x3e4   : > { %vm1639_vm8 = vcmp.eq.f32.partialorder %v4961_v33, %v5834_v46  ;;  %vm1641_vm9 = vcmp.eq.f32.partialorder %v4963_v35, %v5834_v46  ;;  %vm1643_vm10 = vcmp.eq.f32.partialorder %v4965_v38, %v5834_v46  ;;  %vm1645_vm11 = vcmp.eq.f32.partialorder %v4967_v41, %v5834_v46 }
 0x3e5   : > { %vm4148_vm12 = vmpackc.low %vm1641_vm9, %vm1639_vm8  ;;  %vm1647_vm0 = vcmp.eq.f32.partialorder %v4969_v42, %v5834_v46  ;;  %vm1649_vm15 = vcmp.eq.f32.partialorder %v4973_v45, %v5834_v46  ;;  %v4268_v49 = vtrunc.f32 %v5834_v46  ;;  %vm1651_vm7 = vcmp.eq.f32.partialorder %v4975_v52, %v5834_v46 }
 0x3e6   : > { %4149 = vmatprep.subr.msk.bf16.mxu0 %vm4148_vm12, %v7487_v28  ;;  %vm4152_vm14 = vmpackc.low %vm1645_vm11, %vm1643_vm10  ;;  %vm1653_vm8 = vcmp.eq.f32.partialorder %v4977_v53, %v5834_v46  ;;  %vm7489_vm9 = vcmask 1040384   ;;  %vm1650_vm12 = vcmp.eq.f32.partialorder %v4975_v52, %v5827_v60  ;;  %vm1657_vm1 = vcmp.eq.f32.partialorder %v5013_v63, %v5834_v46 }
 0x3e7   : > { %4151 = vmatpush1.bf16.msk.msra.mxu0 %vm4150_vm13, %v7487_v28  ;;  %v4269_v23 = vcvt.f32.s32 %v4268_v49  ;;  %vm4156_vm5 = vmpackc.low %vm1649_vm15, %vm1647_vm0  ;;  %vm1652_vm13 = vcmp.eq.f32.partialorder %v4977_v53, %v5827_v60  ;;  %vm1654_vm15 = vcmp.eq.f32.partialorder %v5011_v62, %v5827_v60 }
 0x3e8   : > { %4153 = vmatprep.subr.msk.bf16.mxu0 %vm4152_vm14, %v7487_v28  ;;  %vm4158_vm10 = vmpackc.low %vm1648_vm3, %vm1646_vm6  ;;  %vm1655_vm14 = vcmp.eq.f32.partialorder %v5011_v62, %v5834_v46  ;;  %vm1661_vm6 = vcmp.eq.f32.partialorder %v7471_v48, %v5834_v46 }
 0x3e9   : > { %v5872_v51 = vsel %vm7489_vm9, %v4263_v30, %v4269_v23  ;;  %vm4160_vm11 = vmpackc.low %vm1653_vm8, %vm1651_vm7  ;;  %vm1658_vm8 = vcmp.eq.f32.partialorder %v5033_v9, %v5827_v60  ;;  %vm1660_vm9 = vcmp.eq.f32.partialorder %v7471_v48, %v5827_v60  ;;  %v7511_v30 = vld [vmem:[#allocation31_spill] sm:$0xff] }
 0x3ea   : > { %7490 = vst [vmem:[#allocation16_spill] sm:$0xff] %v5872_v51  ;;  %vm4162_vm2 = vmpackc.low %vm1652_vm13, %vm1650_vm12 }
 0x3eb   : > { %4155 = vmatpush1.bf16.msk.msra.mxu0 %vm4154_vm4, %v7487_v28  ;;  %vm4164_vm0 = vmpackc.low %vm1657_vm1, %vm1655_vm14  ;;  %vm1656_vm4 = vcmp.eq.f32.partialorder %v5013_v63, %v5827_v60  ;;  %vm1662_vm14 = vcmp.eq.f32.partialorder %v7472_v56, %v5827_v60  ;;  %vm1664_vm1 = vcmp.eq.f32.partialorder %v7473_v55, %v5827_v60 }
 0x3ec   : > { %4157 = vmatprep.subr.msk.bf16.mxu0 %vm4156_vm5, %v7487_v28  ;;  %vm1659_vm5 = vcmp.eq.f32.partialorder %v5033_v9, %v5834_v46  ;;  %vm4166_vm3 = vmpackc.low %vm1656_vm4, %vm1654_vm15 }
 0x3ed   : > { %vm4168_vm7 = vmpackc.low %vm1661_vm6, %vm1659_vm5  ;;  %vm1666_vm5 = vcmp.eq.f32.partialorder %v7474_v12, %v5827_v60  ;;  %vm1668_vm6 = vcmp.eq.f32.partialorder %v7476_v26, %v5827_v60 }
 0x3ee   : > { %vm4170_vm12 = vmpackc.low %vm1660_vm9, %vm1658_vm8 }
 0x3ef   : > { %4159 = vmatpush1.bf16.msk.msra.mxu0 %vm4158_vm10, %v7487_v28  ;;  %vm1663_vm10 = vcmp.eq.f32.partialorder %v7472_v56, %v5834_v46  ;;  %vm4174_vm15 = vmpackc.low %vm1664_vm1, %vm1662_vm14 }
 0x3f0   : > { %4161 = vmatprep.subr.msk.bf16.mxu0 %vm4160_vm11, %v7487_v28  ;;  %vm1665_vm11 = vcmp.eq.f32.partialorder %v7473_v55, %v5834_v46 }
 0x3f1   : > { %vm4172_vm13 = vmpackc.low %vm1665_vm11, %vm1663_vm10  ;;  %vm7529_vm10 = vcmask 1040384  }
 0x3f3   : > { %4163 = vmatpush1.bf16.msk.msra.mxu0 %vm4162_vm2, %v7487_v28  ;;  %vm1667_vm2 = vcmp.eq.f32.partialorder %v7474_v12, %v5834_v46 }
 0x3f4   : > { %4165 = vmatprep.subr.msk.bf16.mxu0 %vm4164_vm0, %v7487_v28  ;;  %vm1669_vm0 = vcmp.eq.f32.partialorder %v7476_v26, %v5834_v46 }
 0x3f5   : > { %vm4176_vm4 = vmpackc.low %vm1669_vm0, %vm1667_vm2 }
 0x3f7   : > { %4167 = vmatpush1.bf16.msk.msra.mxu0 %vm4166_vm3, %v7487_v28  ;;  %vm4178_vm3 = vmpackc.low %vm1668_vm6, %vm1666_vm5 }
 0x3f8   : > { %4169 = vmatprep.subr.msk.bf16.mxu0 %vm4168_vm7, %v7487_v28  ;;  %vm7524_vm7 = vcmask 261120  }
 0x3f9   : > { %vm7525_vm8 = vmmov %vm7524_vm7 }
 0x3fa   : > { %vm7526_vm9 = vmmov %vm7524_vm7 }
 0x3fb   : > { %4171 = vmatpush1.bf16.msk.msra.mxu0 %vm4170_vm12, %v7487_v28  ;;  %vm7530_vm11 = vmmov %vm7524_vm7 }
 0x3fc   : > { %4173 = vmatprep.subr.msk.bf16.mxu0 %vm4172_vm13, %v7487_v28  ;;  %vm7531_vm12 = vmmov %vm7529_vm10 }
 0x3fd   : > { %vm7532_vm13 = vmmov %vm7524_vm7 }
 0x3fe   : > { %vm7533_vm14 = vmmov %vm7524_vm7 }
 0x3ff   : > { %4175 = vmatpush1.bf16.msk.msra.mxu0 %vm4174_vm15, %v7487_v28  ;;  %vm7534_vm1 = vmmov %vm7524_vm7 }
 0x400   : > { %4177 = vmatprep.subr.msk.bf16.mxu0 %vm4176_vm4, %v7487_v28  ;;  %vm7535_vm2 = vmmov %vm7534_vm1 }
 0x401   : > { %vm7536_vm0 = vmmov %vm7534_vm1 }
 0x402   : > { %vm7537_vm15 = vmmov %vm7536_vm0 }
 0x403   : > { %4179 = vmatpush1.bf16.msk.msra.mxu0 %vm4178_vm3, %v7487_v28  ;;  %vm7538_vm4 = vmmov %vm7536_vm0 }
 0x404   : > { %vm7539_vm5 = vmmov %vm7536_vm0 }
 0x405   : > { %vm7540_vm6 = vmmov %vm7536_vm0 }
 0x406   : > { %1799 = vmatmul.mubr.f32.vlgmr.msra.gmra.mrb[32].mxu0 %v3732_v4  ;;  %v7512_v4 = vld [vmem:[#allocation26_spill] sm:$0xff]  ;;  %vm7541_vm3 = vmmov %vm7536_vm0 }
 0x407   : > { %1804 = vmatprep.mubr.f32.mxu0 %v7491_v2 }
 0x40a   : > { %1805 = vmatmul.mubr.f32.gmra.mrb[34].mxu0 %v3733_v31 }
 0x40b   : > { %1810 = vmatprep.mubr.f32.mxu0 %v7491_v2 }
 0x40e   : > { %1811 = vmatmul.mubr.f32.gmra.mrb[36].mxu0 %v3734_v47 }
 0x40f   : > { %1816 = vmatprep.mubr.f32.mxu0 %v7491_v2 }
 0x412   : > { %1817 = vmatmul.mubr.f32.gmra.mrb[38].mxu0 %v3735_v10 }
 0x413   : > { %2051 = vmatprep.mubr.f32.mxu0 %v7491_v2 }
 0x4d9   : > { %v1800_v44 = vpop.f32.mrb[32].mxu0 }
 0x4da   : > { %v5938_v36 = vadd.f32 %v1800_v44, %v7492_v54  ;;  %v1802_v57 = vpop.f32.mrb[33].mxu0  ;;  %v1823_v25 = vsub.f32 %v1800_v44, %v7496_v24  ;;  %v5967_v60 = vsub.f32 %v7496_v24, %v1800_v44 }
 0x4db   : > { %v5941_v20 = vadd.f32 %v1802_v57, %v7494_v14  ;;  %v1824_v29 = vsub.f32 %v1802_v57, %v7497_v6  ;;  %v5957_v37 = vsub.f32 %v7497_v6, %v1802_v57  ;;  %v7515_v14 = vld [vmem:[#allocation28_spill] sm:$0xff]  ;;  %v7517_v6 = vld [vmem:[#allocation27_spill] sm:$0xff] }
 0x4dc   : > { %7493 = vst [vmem:[#allocation17_spill] sm:$0xff] %v5938_v36  ;;  %3832 = vst [vmem:[%s5293_s19 + $0x40] sm:$0xff] %v5938_v36  ;;  %v1831_v1 = vmul.f32 %v1823_v25, %v1823_v25  ;;  %v7559_v36 = vld [vmem:[#allocation43_spill] sm:$0xff] }
 0x4dd   : > { %7495 = vst [vmem:[#allocation18_spill] sm:$0xff] %v5941_v20  ;;  %3833 = vst [vmem:[%s5293_s19 + $0x48] sm:$0xff] %v5941_v20  ;;  %v1806_v40 = vpop.f32.mrb[34].mxu0  ;;  %v1832_v39 = vmul.f32 %v1824_v29, %v1824_v29 }
 0x4de   : > { %v1825_v17 = vsub.f32 %v1806_v40, %v7498_v50  ;;  %v5951_v15 = vsub.f32 %v7498_v50, %v1806_v40  ;;  %v5954_v0 = vadd.f32 %v1806_v40, %v7500_v7  ;;  %v1808_v58 = vpop.f32.mrb[35].mxu0  ;;  %7502 = vst [vmem:[#allocation20_spill] sm:$0xff] %v5957_v37  ;;  %7507 = vst [vmem:[#allocation21_spill] sm:$0xff] %v5967_v60 }
 0x4df   : > { %v1826_v61 = vsub.f32 %v1808_v58, %v7503_v43  ;;  %v5961_v22 = vsub.f32 %v7503_v43, %v1808_v58  ;;  %v5964_v32 = vadd.f32 %v1808_v58, %v7505_v8  ;;  %v7521_v43 = vld [vmem:[#allocation29_spill] sm:$0xff] }
 0x4e0   : > { %7499 = vst [vmem:[#allocation24_spill] sm:$0xff] %v5951_v15  ;;  %7501 = vst [vmem:[#allocation22_spill] sm:$0xff] %v5954_v0  ;;  %v1833_v13 = vmul.f32 %v1825_v17, %v1825_v17  ;;  %v4182_v11 = vpack.c.bf16 %v5951_v15, %v5967_v60  ;;  %v7519_v17 = vld [vmem:[#allocation32_spill] sm:$0xff] }
 0x4e1   : > { %7504 = vst [vmem:[#allocation19_spill] sm:$0xff] %v5961_v22  ;;  %7506 = vst [vmem:[#allocation23_spill] sm:$0xff] %v5964_v32  ;;  %v1834_v16 = vmul.f32 %v1826_v61, %v1826_v61  ;;  %v1812_v34 = vpop.f32.mrb[36].mxu0  ;;  %v4180_v5 = vpack.c.bf16 %v5961_v22, %v5957_v37  ;;  %v7557_v22 = vld [vmem:[#allocation41_spill] sm:$0xff]  ;;  %v7558_v37 = vld [vmem:[#allocation42_spill] sm:$0xff] }
 0x4e2   : > { %3834 = vst [vmem:[%s5293_s19 + $0x50] sm:$0xff] %v5954_v0  ;;  %3835 = vst [vmem:[%s5293_s19 + $0x58] sm:$0xff] %v5964_v32  ;;  %v1839_v21 = vadd.f32 %v1833_v13, %v1831_v1  ;;  %v1827_v27 = vsub.f32 %v1812_v34, %v7508_v3  ;;  %v5977_v46 = vadd.f32 %v1812_v34, %v7509_v18  ;;  %v1814_v19 = vpop.f32.mrb[37].mxu0 }
 0x4e3   : > { %v1848_v49 = vadd.f32 %v1834_v16, %v1832_v39  ;;  %v1828_v23 = vsub.f32 %v1814_v19, %v7511_v30  ;;  %v5983_v31 = vadd.f32 %v1814_v19, %v7512_v4  ;;  %4181 = vmatprep.subr.bf16.mxu0 %v4180_v5  ;;  %v5988_v44 = vsub.f32 %v7511_v30, %v1814_v19 }
 0x4e4   : > { %7510 = vst [vmem:[#allocation33_spill] sm:$0xff] %v5977_v46  ;;  %v1835_v47 = vmul.f32 %v1827_v27, %v1827_v27  ;;  %3836 = vst [vmem:[%s5293_s19 + $0x60] sm:$0xff] %v5977_v46  ;;  %4183 = vmatpush1.bf16.msra.mxu0 %v4182_v11  ;;  %v6007_v8 = vsub.f32 %v7508_v3, %v1812_v34  ;;  %v3840_v34 = vld [vmem:[%s7404_s1 + $0x100] sm:$0xff] }
 0x4e5   : > { %7513 = vst [vmem:[#allocation25_spill] sm:$0xff] %v5983_v31  ;;  %v1836_v10 = vmul.f32 %v1828_v23, %v1828_v23  ;;  %7514 = vst [vmem:[#allocation31_spill] sm:$0xff] %v5988_v44  ;;  %v1818_v54 = vpop.f32.mrb[38].mxu0  ;;  %v7556_v46 = vld [vmem:[#allocation40_spill] sm:$0xff] }
 0x4e6   : > { %3837 = vst [vmem:[%s5293_s19 + $0x68] sm:$0xff] %v5983_v31  ;;  %v1840_v57 = vadd.f32 %v1839_v21, %v1835_v47  ;;  %v1829_v24 = vsub.f32 %v1818_v54, %v7515_v14  ;;  %v5994_v25 = vsub.f32 %v7515_v14, %v1818_v54  ;;  %v5997_v29 = vadd.f32 %v1818_v54, %v7517_v6  ;;  %v1820_v40 = vpop.f32.mrb[39].mxu0  ;;  %v3842_v47 = vld [vmem:[%s7404_s1 + $0x110] sm:$0xff] }
 0x4e7   : > { %v1849_v50 = vadd.f32 %v1848_v49, %v1836_v10  ;;  %v1830_v7 = vsub.f32 %v1820_v40, %v7519_v17  ;;  %v6001_v58 = vsub.f32 %v7519_v17, %v1820_v40  ;;  %v6004_v61 = vadd.f32 %v1820_v40, %v7521_v43  ;;  %7523 = vst [vmem:[#allocation29_spill] sm:$0xff] %v6007_v8  ;;  %v3841_v49 = vld [vmem:[%s7404_s1 + $0x108] sm:$0xff]  ;;  %v7527_v6 = vld [vmem:[#allocation34_spill] sm:$0xff] }
 0x4e8   : > { %7516 = vst [vmem:[#allocation26_spill] sm:$0xff] %v5994_v25  ;;  %7518 = vst [vmem:[#allocation28_spill] sm:$0xff] %v5997_v29  ;;  %v1837_v1 = vmul.f32 %v1829_v24, %v1829_v24  ;;  %v4186_v5 = vpack.c.bf16 %v5994_v25, %v6007_v8  ;;  %v3843_v24 = vld [vmem:[%s7404_s1 + $0x118] sm:$0xff] }
 0x4e9   : > { %7520 = vst [vmem:[#allocation27_spill] sm:$0xff] %v6001_v58  ;;  %7522 = vst [vmem:[#allocation32_spill] sm:$0xff] %v6004_v61  ;;  %v1838_v13 = vmul.f32 %v1830_v7, %v1830_v7  ;;  %v4184_v39 = vpack.c.bf16 %v6001_v58, %v5988_v44  ;;  %v7555_v25 = vld [vmem:[#allocation39_spill] sm:$0xff] }
 0x4ea   : > { %3838 = vst [vmem:[%s5293_s19 + $0x70] sm:$0xff] %v5997_v29  ;;  %3839 = vst [vmem:[%s5293_s19 + $0x78] sm:$0xff] %v6004_v61  ;;  %v1841_v16 = vadd.f32 %v1840_v57, %v1837_v1 }
 0x4eb   : > { %v1850_v21 = vadd.f32 %v1849_v50, %v1838_v13  ;;  %4185 = vmatprep.subr.bf16.mxu0 %v4184_v39  ;;  %v7528_v50 = vld [vmem:[#allocation35_spill] sm:$0xff]  ;;  %v3845_v39 = vld [vmem:[%s7404_s1 + $0x128] sm:$0xff] }
 0x4ec   : > { %v1842_v27 = vrot.slane %v1841_v16, 4  ;;  %4187 = vmatpush1.bf16.msra.mxu0 %v4186_v5  ;;  %v3844_v13 = vld [vmem:[%s7404_s1 + $0x120] sm:$0xff]  ;;  %v3847_v5 = vld [vmem:[%s7404_s1 + $0x138] sm:$0xff] }
 0x4ed   : > { %v1851_v3 = vrot.slane %v1850_v21, 4 }
 0x4ee   : > { %v1843_v18 = vadd.f32 %v1842_v27, %v1841_v16  ;;  %v3846_v16 = vld [vmem:[%s7404_s1 + $0x130] sm:$0xff]  ;;  %v3849_v27 = vld [vmem:[%s7404_s1 + $0x148] sm:$0xff] }
 0x4ef   : > { %v1852_v19 = vadd.f32 %v1851_v3, %v1850_v21  ;;  %3876 = vmatmul.mubr.msk.f32.vlgmr.msra.gmra.mrb[40].mxu0 %vm7524_vm7, %v3840_v34  ;;  %v3848_v21 = vld [vmem:[%s7404_s1 + $0x140] sm:$0xff]  ;;  %v3850_v34 = vld [vmem:[%s7404_s1 + $0x150] sm:$0xff]  ;;  %v3851_v3 = vld [vmem:[%s7404_s1 + $0x158] sm:$0xff] }
 0x4f0   : > { %v1844_v11 = vrot.slane %v1843_v18, 2  ;;  %2057 = vmatprep.mubr.f32.mxu0 %v7491_v2  ;;  %vm7542_vm7 = vmmov %vm7536_vm0 }
 0x4f1   : > { %v1853_v30 = vrot.slane %v1852_v19, 2 }
 0x4f2   : > { %v1845_v23 = vadd.f32 %v1844_v11, %v1843_v18  ;;  %v3852_v18 = vld [vmem:[%s7404_s1 + $0x160] sm:$0xff]  ;;  %v3854_v11 = vld [vmem:[%s7404_s1 + $0x170] sm:$0xff] }
 0x4f3   : > { %3877 = vmatmul.mubr.msk.f32.gmra.mrb[42].mxu0 %vm7525_vm8, %v3841_v49  ;;  %v1854_v4 = vadd.f32 %v1853_v30, %v1852_v19  ;;  %v3853_v19 = vld [vmem:[%s7404_s1 + $0x168] sm:$0xff]  ;;  %v3855_v49 = vld [vmem:[%s7404_s1 + $0x178] sm:$0xff]  ;;  %vm7543_vm8 = vmmov %vm7536_vm0  ;;  %v2156_v30 = vpop.permute.xlu1 %2155 }
 0x4f4   : > { %2063 = vmatprep.mubr.f32.mxu0 %v7491_v2  ;;  %v1846_v10 = vrot.slane %v1845_v23, 1 }
 0x4f5   : > { %v1855_v54 = vrot.slane %v1854_v4, 1 }
 0x4f6   : > { %v1847_v57 = vadd.f32 %v1846_v10, %v1845_v23 }
 0x4f7   : > { %3878 = vmatmul.mubr.msk.f32.gmra.mrb[44].mxu0 %vm7526_vm9, %v3842_v47  ;;  %v1856_v14 = vadd.f32 %v1855_v54, %v1854_v4  ;;  %v2166_v23 = vpop.permute.xlu1 %2165 }
 0x4f8   : > { %2069 = vmatprep.mubr.f32.mxu0 %v7491_v2  ;;  %v1858_v40 = vmul.f32 %v7527_v6, %v1847_v57 }
 0x4f9   : > { %v1859_v17 = vmul.f32 %v7528_v50, %v1856_v14 }
 0x4fa   : > { %v1860_v7 = vsel %vm7529_vm10, %v1858_v40, 0.0 }
 0x4fb   : > { %3879 = vmatmul.mubr.msk.f32.gmra.mrb[46].mxu0 %vm7530_vm11, %v3843_v24  ;;  %v1861_v43 = vsel %vm7531_vm12, %v1859_v17, 0.0  ;;  %v2176_v4 = vpop.permute.xlu1 %2175 }
 0x4fc   : > { %2075 = vmatprep.mubr.f32.mxu0 %v7491_v2  ;;  %v1862_v1 = vadd.f32 %v1861_v43, %v1860_v7 }
 0x4fe   : > { %1863 = vadd.xlane.f32.xlu1 %v1862_v1 }
 0x4ff   : > { %3880 = vmatmul.mubr.msk.f32.gmra.mrb[48].mxu0 %vm7532_vm13, %v3844_v13  ;;  %v2186_v47 = vpop.permute.xlu1 %2185 }
 0x500   : > { %2081 = vmatprep.mubr.f32.mxu0 %v7491_v2 }
 0x503   : > { %3881 = vmatmul.mubr.msk.f32.gmra.mrb[50].mxu0 %vm7533_vm14, %v3845_v39  ;;  %v6101_v10 = vpop.permute.xlu1 %2195 }
 0x504   : > { %2087 = vmatprep.mubr.f32.mxu0 %v7491_v2 }
 0x507   : > { %3882 = vmatmul.mubr.msk.f32.gmra.mrb[52].mxu0 %vm7534_vm1, %v3846_v16  ;;  %v6103_v54 = vpop.permute.xlu1 %2205 }
 0x508   : > { %2093 = vmatprep.mubr.f32.mxu0 %v7491_v2 }
 0x50b   : > { %3883 = vmatmul.mubr.msk.f32.gmra.mrb[54].mxu0 %vm7535_vm2, %v3847_v5  ;;  %v6105_v57 = vpop.permute.xlu1 %2215 }
 0x50c   : > { %2099 = vmatprep.mubr.f32.mxu0 %v7491_v2 }
 0x50f   : > { %3884 = vmatmul.mubr.msk.f32.gmra.mrb[56].mxu0 %vm7536_vm0, %v3848_v21  ;;  %v6107_v14 = vpop.permute.xlu1 %2225 }
 0x510   : > { %2105 = vmatprep.mubr.f32.mxu0 %v7491_v2 }
 0x513   : > { %3885 = vmatmul.mubr.msk.f32.gmra.mrb[58].mxu0 %vm7537_vm15, %v3849_v27  ;;  %v6109_v24 = vpop.permute.xlu1 %2927 }
 0x514   : > { %2111 = vmatprep.mubr.f32.mxu0 %v7491_v2  ;;  %7544 = vst [vmem:[#allocation52_spill] sm:$0xff] %v6109_v24 }
 0x517   : > { %3886 = vmatmul.mubr.msk.f32.gmra.mrb[60].mxu0 %vm7538_vm4, %v3850_v34  ;;  %v6111_v40 = vpop.permute.xlu1 %2937 }
 0x518   : > { %2117 = vmatprep.mubr.f32.mxu0 %v7491_v2  ;;  %7545 = vst [vmem:[#allocation53_spill] sm:$0xff] %v6111_v40 }
 0x51b   : > { %3887 = vmatmul.mubr.msk.f32.gmra.mrb[62].mxu0 %vm7539_vm5, %v3851_v3  ;;  %v6113_v17 = vpop.permute.xlu1 %2947 }
 0x51c   : > { %2123 = vmatprep.mubr.f32.mxu0 %v7491_v2  ;;  %7546 = vst [vmem:[#allocation54_spill] sm:$0xff] %v6113_v17 }
 0x51f   : > { %3888 = vmatmul.mubr.msk.f32.gmra.mrb[64].mxu0 %vm7540_vm6, %v3852_v18  ;;  %v6115_v7 = vpop.permute.xlu1 %2957 }
 0x520   : > { %2129 = vmatprep.mubr.f32.mxu0 %v7491_v2  ;;  %7547 = vst [vmem:[#allocation55_spill] sm:$0xff] %v6115_v7 }
 0x523   : > { %3889 = vmatmul.mubr.msk.f32.gmra.mrb[66].mxu0 %vm7541_vm3, %v3853_v19  ;;  %v6117_v43 = vpop.permute.xlu1 %2967 }
 0x524   : > { %2135 = vmatprep.mubr.f32.mxu0 %v7491_v2  ;;  %7548 = vst [vmem:[#allocation56_spill] sm:$0xff] %v6117_v43  ;;  %v7552_v43 = vld [vmem:[#allocation36_spill] sm:$0xff] }
 0x527   : > { %3890 = vmatmul.mubr.msk.f32.gmra.mrb[68].mxu0 %vm7542_vm7, %v3854_v11  ;;  %v6119_v1 = vpop.permute.xlu1 %2977 }
 0x528   : > { %2141 = vmatprep.mubr.f32.mxu0 %v7491_v2  ;;  %7549 = vst [vmem:[#allocation57_spill] sm:$0xff] %v6119_v1  ;;  %v7553_v1 = vld [vmem:[#allocation37_spill] sm:$0xff] }
 0x52b   : > { %3891 = vmatmul.mubr.msk.f32.gmra.mrb[70].mxu0 %vm7543_vm8, %v3855_v49  ;;  %v6121_v13 = vpop.permute.xlu1 %2987 }
 0x52c   : > { %3342 = vmatprep.mubr.f32.mxu0 %v7491_v2  ;;  %7550 = vst [vmem:[#allocation58_spill] sm:$0xff] %v6121_v13 }
 0x52f   : > { %v6123_v39 = vpop.permute.xlu1 %2997 }
 0x530   : > { %7551 = vst [vmem:[#allocation59_spill] sm:$0xff] %v6123_v39 }
 0x58b   : > { %v1864_v16 = vpop.xlane.xlu1 %1863 }
 0x58c   : > { %v1865_v5 = vrot.slane %v1864_v16, 4 }
 0x58e   : > { %v1866_v21 = vadd.f32 %v1865_v5, %v1864_v16 }
 0x590   : > { %v1867_v27 = vrot.slane %v1866_v21, 2 }
 0x592   : > { %v1868_v34 = vadd.f32 %v1867_v27, %v1866_v21 }
 0x594   : > { %v1869_v3 = vrot.slane %v1868_v34, 1 }
 0x596   : > { %v1870_v18 = vadd.f32 %v1869_v3, %v1868_v34 }
 0x598   : > { %4270 = vpush %v1870_v18 }
 0x5c2   : > { %v2053_v19 = vpop.f32.mrb[40].mxu0 }
 0x5c3   : > { %v2055_v11 = vpop.f32.mrb[41].mxu0  ;;  %v6126_v40 = vadd.f32 %v7552_v43, %v2053_v19 }
 0x5c4   : > { %v6132_v24 = vadd.f32 %v7552_v43, %v2055_v11  ;;  %v7554_v11 = vld [vmem:[#allocation38_spill] sm:$0xff] }
 0x5c6   : > { %v2059_v49 = vpop.f32.mrb[42].mxu0 }
 0x5c7   : > { %v2061_v7 = vpop.f32.mrb[43].mxu0  ;;  %v6141_v34 = vadd.f32 %v2156_v30, %v2059_v49 }
 0x5c8   : > { %v6145_v18 = vadd.f32 %v2156_v30, %v2061_v7 }
 0x5ca   : > { %v2065_v17 = vpop.f32.mrb[44].mxu0 }
 0x5cb   : > { %v6129_v13 = vadd.f32 %v7553_v1, %v2065_v17  ;;  %v2067_v39 = vpop.f32.mrb[45].mxu0 }
 0x5cc   : > { %v6135_v16 = vadd.f32 %v7553_v1, %v2067_v39 }
 0x5cd   : > { %v2260_v5 = vmin.f32 %v6126_v40, %v6129_v13 }
 0x5ce   : > { %v2281_v21 = vmin.f32 %v6132_v24, %v6135_v16  ;;  %v2071_v27 = vpop.f32.mrb[46].mxu0 }
 0x5cf   : > { %v6143_v3 = vadd.f32 %v2166_v23, %v2071_v27  ;;  %v2073_v17 = vpop.f32.mrb[47].mxu0 }
 0x5d0   : > { %v6147_v19 = vadd.f32 %v2166_v23, %v2073_v17 }
 0x5d1   : > { %v2261_v43 = vmin.f32 %v6141_v34, %v6143_v3 }
 0x5d2   : > { %v2282_v1 = vmin.f32 %v6145_v18, %v6147_v19  ;;  %v2077_v39 = vpop.f32.mrb[48].mxu0 }
 0x5d3   : > { %v6154_v50 = vadd.f32 %v7554_v11, %v2077_v39  ;;  %v2079_v6 = vpop.f32.mrb[49].mxu0 }
 0x5d4   : > { %v6157_v49 = vadd.f32 %v7554_v11, %v2079_v6 }
 0x5d5   : > { %v2262_v27 = vmin.f32 %v2260_v5, %v6154_v50 }
 0x5d6   : > { %v2283_v30 = vmin.f32 %v2281_v21, %v6157_v49  ;;  %v2083_v23 = vpop.f32.mrb[50].mxu0 }
 0x5d7   : > { %v6161_v7 = vadd.f32 %v2176_v4, %v2083_v23  ;;  %v2085_v17 = vpop.f32.mrb[51].mxu0 }
 0x5d8   : > { %v6163_v61 = vadd.f32 %v2176_v4, %v2085_v17 }
 0x5d9   : > { %v2263_v58 = vmin.f32 %v2261_v43, %v6161_v7 }
 0x5da   : > { %v2284_v29 = vmin.f32 %v2282_v1, %v6163_v61  ;;  %v2089_v39 = vpop.f32.mrb[52].mxu0 }
 0x5db   : > { %v6168_v31 = vadd.f32 %v7555_v25, %v2089_v39  ;;  %v2091_v6 = vpop.f32.mrb[53].mxu0 }
 0x5dc   : > { %v6171_v11 = vadd.f32 %v7555_v25, %v2091_v6 }
 0x5dd   : > { %v2264_v5 = vmin.f32 %v2262_v27, %v6168_v31 }
 0x5de   : > { %v2285_v21 = vmin.f32 %v2283_v30, %v6171_v11  ;;  %v2095_v23 = vpop.f32.mrb[54].mxu0 }
 0x5df   : > { %v6175_v44 = vadd.f32 %v2186_v47, %v2095_v23  ;;  %v2097_v4 = vpop.f32.mrb[55].mxu0 }
 0x5e0   : > { %v6177_v17 = vadd.f32 %v2186_v47, %v2097_v4 }
 0x5e1   : > { %v2265_v43 = vmin.f32 %v2263_v58, %v6175_v44 }
 0x5e2   : > { %v2286_v1 = vmin.f32 %v2284_v29, %v6177_v17  ;;  %v2101_v39 = vpop.f32.mrb[56].mxu0 }
 0x5e3   : > { %v6182_v8 = vadd.f32 %v7556_v46, %v2101_v39  ;;  %v2103_v25 = vpop.f32.mrb[57].mxu0 }
 0x5e4   : > { %v6185_v6 = vadd.f32 %v7556_v46, %v2103_v25 }
 0x5e5   : > { %v2266_v27 = vmin.f32 %v2264_v5, %v6182_v8 }
 0x5e6   : > { %v2287_v30 = vmin.f32 %v2285_v21, %v6185_v6  ;;  %v2107_v23 = vpop.f32.mrb[58].mxu0 }
 0x5e7   : > { %v6190_v47 = vadd.f32 %v6101_v10, %v2107_v23  ;;  %v2109_v4 = vpop.f32.mrb[59].mxu0 }
 0x5e8   : > { %v6193_v58 = vadd.f32 %v6101_v10, %v2109_v4 }
 0x5e9   : > { %v2267_v29 = vmin.f32 %v2265_v43, %v6190_v47 }
 0x5ea   : > { %v2288_v39 = vmin.f32 %v2286_v1, %v6193_v58  ;;  %v2113_v32 = vpop.f32.mrb[60].mxu0 }
 0x5eb   : > { %v6198_v46 = vadd.f32 %v7557_v22, %v2113_v32  ;;  %v2115_v25 = vpop.f32.mrb[61].mxu0 }
 0x5ec   : > { %v6201_v5 = vadd.f32 %v7557_v22, %v2115_v25 }
 0x5ed   : > { %v2268_v21 = vmin.f32 %v2266_v27, %v6198_v46 }
 0x5ee   : > { %v2289_v23 = vmin.f32 %v2287_v30, %v6201_v5  ;;  %v2119_v0 = vpop.f32.mrb[62].mxu0 }
 0x5ef   : > { %v6206_v10 = vadd.f32 %v6103_v54, %v2119_v0  ;;  %v2121_v4 = vpop.f32.mrb[63].mxu0 }
 0x5f0   : > { %v6209_v43 = vadd.f32 %v6103_v54, %v2121_v4 }
 0x5f1   : > { %v2269_v1 = vmin.f32 %v2267_v29, %v6206_v10 }
 0x5f2   : > { %v2290_v32 = vmin.f32 %v2288_v39, %v6209_v43  ;;  %v2125_v15 = vpop.f32.mrb[64].mxu0 }
 0x5f3   : > { %v6214_v22 = vadd.f32 %v7558_v37, %v2125_v15  ;;  %v2127_v25 = vpop.f32.mrb[65].mxu0 }
 0x5f4   : > { %v6217_v27 = vadd.f32 %v7558_v37, %v2127_v25 }
 0x5f5   : > { %v2270_v30 = vmin.f32 %v2268_v21, %v6214_v22 }
 0x5f6   : > { %v2291_v0 = vmin.f32 %v2289_v23, %v6217_v27  ;;  %v2131_v60 = vpop.f32.mrb[66].mxu0 }
 0x5f7   : > { %v6222_v54 = vadd.f32 %v6105_v57, %v2131_v60  ;;  %v2133_v4 = vpop.f32.mrb[67].mxu0 }
 0x5f8   : > { %v6225_v29 = vadd.f32 %v6105_v57, %v2133_v4 }
 0x5f9   : > { %v2271_v39 = vmin.f32 %v2269_v1, %v6222_v54 }
 0x5fa   : > { %v2292_v15 = vmin.f32 %v2290_v32, %v6225_v29  ;;  %v2137_v20 = vpop.f32.mrb[68].mxu0 }
 0x5fb   : > { %v6230_v37 = vadd.f32 %v7559_v36, %v2137_v20  ;;  %v2139_v25 = vpop.f32.mrb[69].mxu0 }
 0x5fc   : > { %v6233_v21 = vadd.f32 %v7559_v36, %v2139_v25 }
 0x5fd   : > { %v2272_v23 = vmin.f32 %v2270_v30, %v6230_v37 }
 0x5fe   : > { %v2293_v60 = vmin.f32 %v2291_v0, %v6233_v21  ;;  %v2143_v2 = vpop.f32.mrb[70].mxu0 }
 0x5ff   : > { %v6238_v57 = vadd.f32 %v6107_v14, %v2143_v2  ;;  %v2145_v4 = vpop.f32.mrb[71].mxu0 }
 0x600   : > { %v6241_v1 = vadd.f32 %v6107_v14, %v2145_v4 }
 0x601   : > { %v2273_v32 = vmin.f32 %v2271_v39, %v6238_v57 }
 0x602   : > { %v2294_v20 = vmin.f32 %v2292_v15, %v6241_v1 }
 0x603   : > { %v2274_v51 = vmin.f32 %v2272_v23, %v2273_v32 }
 0x604   : > { %v2295_v28 = vmin.f32 %v2293_v60, %v2294_v20 }
 0x605   : > { %v2275_v36 = vrot.slane %v2274_v51, 4 }
 0x606   : > { %v2296_v25 = vrot.slane %v2295_v28, 4 }
 0x607   : > { %v2276_v59 = vmin.f32 %v2274_v51, %v2275_v36 }
 0x608   : > { %v2297_v30 = vmin.f32 %v2295_v28, %v2296_v25  ;;  %v7561_v25 = vld [vmem:[#allocation11_spill] sm:$0xff] }
 0x609   : > { %v2277_v26 = vrot.slane %v2276_v59, 2 }
 0x60a   : > { %v2298_v0 = vrot.slane %v2297_v30, 2 }
 0x60b   : > { %v2278_v12 = vmin.f32 %v2276_v59, %v2277_v26 }
 0x60c   : > { %v2299_v55 = vmin.f32 %v2297_v30, %v2298_v0  ;;  %v7562_v30 = vld [vmem:[#allocation12_spill] sm:$0xff] }
 0x60d   : > { %v2279_v2 = vrot.slane %v2278_v12, 1 }
 0x60e   : > { %v2300_v48 = vrot.slane %v2299_v55, 1 }
 0x60f   : > { %v6245_v56 = vmin.f32 %v2278_v12, %v2279_v2 }
 0x610   : > { %v6279_v12 = vmin.f32 %v2299_v55, %v2300_v48 }
 0x611   : > { %vm2302_vm9 = vcmp.le.f32.partialorder %v6126_v40, %v6245_v56  ;;  %vm2304_vm10 = vcmp.le.f32.partialorder %v6141_v34, %v6245_v56  ;;  %vm2306_vm11 = vcmp.le.f32.partialorder %v6129_v13, %v6245_v56  ;;  %vm2308_vm12 = vcmp.le.f32.partialorder %v6143_v3, %v6245_v56 }
 0x612   : > { %vm2310_vm13 = vcmp.le.f32.partialorder %v6154_v50, %v6245_v56  ;;  %vm2312_vm14 = vcmp.le.f32.partialorder %v6161_v7, %v6245_v56  ;;  %vm2314_vm1 = vcmp.le.f32.partialorder %v6168_v31, %v6245_v56  ;;  %vm2316_vm2 = vcmp.le.f32.partialorder %v6175_v44, %v6245_v56 }
 0x613   : > { %vm2318_vm0 = vcmp.le.f32.partialorder %v6182_v8, %v6245_v56  ;;  %vm2320_vm15 = vcmp.le.f32.partialorder %v6190_v47, %v6245_v56  ;;  %vm2322_vm4 = vcmp.le.f32.partialorder %v6198_v46, %v6245_v56  ;;  %vm2324_vm5 = vcmp.le.f32.partialorder %v6206_v10, %v6245_v56  ;;  %v7560_v8 = vld [vmem:[#allocation10_spill] sm:$0xff] }
 0x614   : > { %vm2326_vm6 = vcmp.le.f32.partialorder %v6214_v22, %v6245_v56  ;;  %vm2328_vm3 = vcmp.le.f32.partialorder %v6222_v54, %v6245_v56  ;;  %v2334_v26 = vsel %vm2302_vm9, %v4961_v33, 128.0  ;;  %v2336_v59 = vsel %vm2304_vm10, %v4963_v35, 128.0 }
 0x615   : > { %v2338_v28 = vsel %vm2306_vm11, %v4965_v38, 128.0  ;;  %v2340_v48 = vsel %vm2308_vm12, %v4967_v41, 128.0  ;;  %v2342_v55 = vsel %vm2310_vm13, %v4969_v42, 128.0  ;;  %v2344_v51 = vsel %vm2312_vm14, %v4973_v45, 128.0 }
 0x616   : > { %v2346_v14 = vsel %vm2314_vm1, %v4975_v52, 128.0  ;;  %v2348_v40 = vsel %vm2316_vm2, %v4977_v53, 128.0  ;;  %v2366_v13 = vmin.f32 %v2334_v26, %v2338_v28  ;;  %v2367_v34 = vmin.f32 %v2336_v59, %v2340_v48  ;;  %v7563_v26 = vld [vmem:[#allocation13_spill] sm:$0xff]  ;;  %v7565_v59 = vld [vmem:[#allocation14_spill] sm:$0xff] }
 0x617   : > { %vm2303_vm9 = vcmp.le.f32.partialorder %v6132_v24, %v6279_v12  ;;  %vm2305_vm10 = vcmp.le.f32.partialorder %v6145_v18, %v6279_v12  ;;  %vm2307_vm11 = vcmp.le.f32.partialorder %v6135_v16, %v6279_v12  ;;  %vm2309_vm12 = vcmp.le.f32.partialorder %v6147_v19, %v6279_v12 }
 0x618   : > { %v2368_v31 = vmin.f32 %v2366_v13, %v2342_v55  ;;  %v2369_v44 = vmin.f32 %v2367_v34, %v2344_v51  ;;  %vm2319_vm8 = vcmp.le.f32.partialorder %v6185_v6, %v6279_v12  ;;  %vm2321_vm7 = vcmp.le.f32.partialorder %v6193_v58, %v6279_v12 }
 0x619   : > { %vm2327_vm1 = vcmp.le.f32.partialorder %v6217_v27, %v6279_v12  ;;  %vm2329_vm2 = vcmp.le.f32.partialorder %v6225_v29, %v6279_v12  ;;  %v2350_v7 = vsel %vm2318_vm0, %v5011_v62, 128.0  ;;  %v2352_v39 = vsel %vm2320_vm15, %v5013_v63, 128.0 }
 0x61a   : > { %v2370_v50 = vmin.f32 %v2368_v31, %v2346_v14  ;;  %v2371_v3 = vmin.f32 %v2369_v44, %v2348_v40  ;;  %vm2331_vm14 = vcmp.le.f32.partialorder %v6233_v21, %v6279_v12  ;;  %vm2333_vm13 = vcmp.le.f32.partialorder %v6241_v1, %v6279_v12 }
 0x61b   : > { %v2354_v60 = vsel %vm2322_vm4, %v5033_v9, 128.0  ;;  %v2356_v4 = vsel %vm2324_vm5, %v7560_v8, 128.0  ;;  %v2335_v47 = vsel %vm2303_vm9, %v4961_v33, 128.0  ;;  %v2337_v32 = vsel %vm2305_vm10, %v4963_v35, 128.0 }
 0x61c   : > { %v2372_v15 = vmin.f32 %v2370_v50, %v2350_v7  ;;  %v2373_v23 = vmin.f32 %v2371_v3, %v2352_v39  ;;  %v2339_v46 = vsel %vm2307_vm11, %v4965_v38, 128.0  ;;  %v2341_v10 = vsel %vm2309_vm12, %v4967_v41, 128.0 }
 0x61d   : > { %v2358_v24 = vsel %vm2326_vm6, %v7561_v25, 128.0  ;;  %v2360_v18 = vsel %vm2328_vm3, %v7562_v30, 128.0  ;;  %vm7564_vm0 = vcmp.le.f32.partialorder %v6230_v37, %v6245_v56  ;;  %vm7566_vm15 = vcmp.le.f32.partialorder %v6238_v57, %v6245_v56 }
 0x61e   : > { %v2374_v20 = vmin.f32 %v2372_v15, %v2354_v60  ;;  %v2375_v36 = vmin.f32 %v2373_v23, %v2356_v4  ;;  %v2362_v16 = vsel %vm7564_vm0, %v7563_v26, 128.0  ;;  %v2364_v19 = vsel %vm7566_vm15, %v7565_v59, 128.0 }
 0x61f   : > { %v2387_v28 = vmin.f32 %v2335_v47, %v2339_v46  ;;  %v2388_v22 = vmin.f32 %v2337_v32, %v2341_v10  ;;  %vm7567_vm4 = vcmp.le.f32.partialorder %v6157_v49, %v6279_v12  ;;  %vm7568_vm5 = vcmp.le.f32.partialorder %v6163_v61, %v6279_v12 }
 0x620   : > { %v2376_v0 = vmin.f32 %v2374_v20, %v2358_v24  ;;  %v2377_v2 = vmin.f32 %v2375_v36, %v2360_v18  ;;  %v2343_v54 = vsel %vm7567_vm4, %v4969_v42, 128.0  ;;  %v2345_v37 = vsel %vm7568_vm5, %v4973_v45, 128.0 }
 0x621   : > { %v2389_v51 = vmin.f32 %v2387_v28, %v2343_v54  ;;  %v2390_v14 = vmin.f32 %v2388_v22, %v2345_v37  ;;  %vm7569_vm6 = vcmp.le.f32.partialorder %v6171_v11, %v6279_v12  ;;  %vm7570_vm3 = vcmp.le.f32.partialorder %v6177_v17, %v6279_v12  ;;  %v7576_v22 = vld [vmem:[#allocation16_spill] sm:$0xff] }
 0x622   : > { %v2378_v48 = vmin.f32 %v2376_v0, %v2362_v16  ;;  %v2379_v55 = vmin.f32 %v2377_v2, %v2364_v19  ;;  %v2347_v56 = vsel %vm7569_vm6, %v4975_v52, 128.0  ;;  %v2349_v57 = vsel %vm7570_vm3, %v4977_v53, 128.0  ;;  %v7573_v2 = vld [vmem:[#allocation15_spill] sm:$0xff]  ;;  %v3857_v37 = vld [vmem:[%s7420_s2 + $0x48] sm:$0xff] }
 0x623   : > { %v2391_v49 = vmin.f32 %v2389_v51, %v2347_v56  ;;  %v2392_v13 = vmin.f32 %v2390_v14, %v2349_v57  ;;  %v2351_v61 = vsel %vm2319_vm8, %v5011_v62, 128.0  ;;  %v2353_v31 = vsel %vm2321_vm7, %v5013_v63, 128.0  ;;  %v3858_v51 = vld [vmem:[%s7420_s2 + $0x50] sm:$0xff]  ;;  %v3859_v14 = vld [vmem:[%s7420_s2 + $0x58] sm:$0xff] }
 0x624   : > { %v2380_v40 = vmin.f32 %v2378_v48, %v2379_v55  ;;  %vm7571_vm9 = vcmp.le.f32.partialorder %v6201_v5, %v6279_v12  ;;  %vm7572_vm10 = vcmp.le.f32.partialorder %v6209_v43, %v6279_v12  ;;  %v2359_v58 = vsel %vm2327_vm1, %v7561_v25, 128.0  ;;  %v3856_v55 = vld [vmem:[%s7420_s2 + $0x40] sm:$0xff]  ;;  %v7579_v56 = vld [vmem:[#allocation17_spill] sm:$0xff] }
 0x625   : > { %v2393_v11 = vmin.f32 %v2391_v49, %v2351_v61  ;;  %v2394_v44 = vmin.f32 %v2392_v13, %v2353_v31  ;;  %v2355_v17 = vsel %vm7571_vm9, %v5033_v9, 128.0  ;;  %v2357_v3 = vsel %vm7572_vm10, %v7560_v8, 128.0  ;;  %v7581_v13 = vld [vmem:[#allocation18_spill] sm:$0xff]  ;;  %v7583_v61 = vld [vmem:[#allocation21_spill] sm:$0xff] }
 0x626   : > { %v2381_v34 = vrot.slane %v2380_v40, 4  ;;  %v2361_v15 = vsel %vm2329_vm2, %v7562_v30, 128.0  ;;  %v2363_v43 = vsel %vm2331_vm14, %v7563_v26, 128.0  ;;  %v2365_v4 = vsel %vm2333_vm13, %v7565_v59, 128.0 }
 0x627   : > { %v2395_v6 = vmin.f32 %v2393_v11, %v2355_v17  ;;  %v2396_v7 = vmin.f32 %v2394_v44, %v2357_v3  ;;  %vm3438_vm7 = vcmask 1041408   ;;  %v7575_v12 = vmov 1.0|1.0   ;;  %v7584_v11 = vld [vmem:[#allocation20_spill] sm:$0xff] }
 0x628   : > { %v2382_v50 = vmin.f32 %v2380_v40, %v2381_v34  ;;  %v7578_v54 = vmov 0.0   ;;  %v7585_v17 = vld [vmem:[#allocation24_spill] sm:$0xff] }
 0x629   : > { %v2397_v5 = vmin.f32 %v2395_v6, %v2359_v58  ;;  %v2398_v23 = vmin.f32 %v2396_v7, %v2361_v15  ;;  %v7587_v7 = vld [vmem:[#allocation22_spill] sm:$0xff] }
 0x62a   : > { %v2383_v39 = vrot.slane %v2382_v50, 2 }
 0x62b   : > { %v2399_v27 = vmin.f32 %v2397_v5, %v2363_v43  ;;  %v2400_v47 = vmin.f32 %v2398_v23, %v2365_v4  ;;  %v7590_v5 = vld [vmem:[#allocation19_spill] sm:$0xff] }
 0x62c   : > { %v2384_v60 = vmin.f32 %v2382_v50, %v2383_v39  ;;  %v7592_v43 = vld [vmem:[#allocation23_spill] sm:$0xff] }
 0x62d   : > { %v2401_v20 = vmin.f32 %v2399_v27, %v2400_v47 }
 0x62e   : > { %v2385_v32 = vrot.slane %v2384_v60, 1 }
 0x62f   : > { %v2402_v36 = vrot.slane %v2401_v20, 4 }
 0x630   : > { %v6441_v29 = vmin.f32 %v2384_v60, %v2385_v32 }
 0x631   : > { %v2403_v46 = vmin.f32 %v2401_v20, %v2402_v36 }
 0x632   : > { %v4272_v24 = vtrunc.f32 %v6441_v29  ;;  %vm2410_vm8 = vcmp.eq.f32.partialorder %v4961_v33, %v6441_v29  ;;  %vm2412_vm11 = vcmp.eq.f32.partialorder %v4963_v35, %v6441_v29  ;;  %vm2414_vm4 = vcmp.eq.f32.partialorder %v4965_v38, %v6441_v29 }
 0x633   : > { %v2404_v10 = vrot.slane %v2403_v46, 2  ;;  %vm4190_vm0 = vmpackc.low %vm2412_vm11, %vm2410_vm8  ;;  %vm2416_vm5 = vcmp.eq.f32.partialorder %v4967_v41, %v6441_v29  ;;  %vm2418_vm8 = vcmp.eq.f32.partialorder %v4969_v42, %v6441_v29  ;;  %vm2420_vm11 = vcmp.eq.f32.partialorder %v4973_v45, %v6441_v29 }
 0x634   : > { %v4273_v21 = vcvt.f32.s32 %v4272_v24  ;;  %vm4194_vm9 = vmpackc.low %vm2416_vm5, %vm2414_vm4 }
 0x635   : > { %v2405_v18 = vmin.f32 %v2403_v46, %v2404_v10 }
 0x636   : > { %v6446_v16 = vsel %vm3438_vm7, %v7573_v2, %v4273_v21 }
 0x637   : > { %v2406_v0 = vrot.slane %v2405_v18, 1  ;;  %7574 = vst [vmem:[#allocation36_spill] sm:$0xff] %v6446_v16 }
 0x639   : > { %v2407_v1 = vmin.f32 %v2405_v18, %v2406_v0  ;;  %v7595_v18 = vld [vmem:[#allocation29_spill] sm:$0xff] }
 0x63a   : > { %v7596_v0 = vld [vmem:[#allocation33_spill] sm:$0xff] }
 0x63b   : > { %vm2411_vm12 = vcmp.eq.f32.partialorder %v4961_v33, %v2407_v1  ;;  %vm2413_vm13 = vcmp.eq.f32.partialorder %v4963_v35, %v2407_v1  ;;  %vm2415_vm14 = vcmp.eq.f32.partialorder %v4965_v38, %v2407_v1  ;;  %vm2417_vm1 = vcmp.eq.f32.partialorder %v4967_v41, %v2407_v1 }
 0x63c   : > { %vm4188_vm2 = vmpackc.low %vm2413_vm13, %vm2411_vm12  ;;  %vm2419_vm6 = vcmp.eq.f32.partialorder %v4969_v42, %v2407_v1  ;;  %vm2421_vm3 = vcmp.eq.f32.partialorder %v4973_v45, %v2407_v1  ;;  %v4274_v19 = vtrunc.f32 %v2407_v1  ;;  %vm2423_vm12 = vcmp.eq.f32.partialorder %v4975_v52, %v2407_v1 }
 0x63d   : > { %4189 = vmatprep.subr.msk.bf16.mxu1 %vm4188_vm2, %v7575_v12  ;;  %vm4192_vm15 = vmpackc.low %vm2417_vm1, %vm2415_vm14  ;;  %vm2425_vm13 = vcmp.eq.f32.partialorder %v4977_v53, %v2407_v1  ;;  %vm2422_vm2 = vcmp.eq.f32.partialorder %v4975_v52, %v6441_v29  ;;  %vm2429_vm4 = vcmp.eq.f32.partialorder %v5013_v63, %v2407_v1 }
 0x63e   : > { %4191 = vmatpush1.bf16.msk.msra.mxu1 %vm4190_vm0, %v7575_v12  ;;  %v4275_v28 = vcvt.f32.s32 %v4274_v19  ;;  %vm4196_vm10 = vmpackc.low %vm2421_vm3, %vm2419_vm6  ;;  %vm2424_vm0 = vcmp.eq.f32.partialorder %v4977_v53, %v6441_v29  ;;  %vm2426_vm6 = vcmp.eq.f32.partialorder %v5011_v62, %v6441_v29  ;;  %vm2428_vm3 = vcmp.eq.f32.partialorder %v5013_v63, %v6441_v29 }
 0x63f   : > { %4193 = vmatprep.subr.msk.bf16.mxu1 %vm4192_vm15, %v7575_v12  ;;  %vm4198_vm14 = vmpackc.low %vm2420_vm11, %vm2418_vm8  ;;  %vm2427_vm15 = vcmp.eq.f32.partialorder %v5011_v62, %v2407_v1 }
 0x640   : > { %v6475_v48 = vsel %vm3438_vm7, %v7576_v22, %v4275_v28  ;;  %vm4200_vm1 = vmpackc.low %vm2425_vm13, %vm2423_vm12  ;;  %vm2430_vm12 = vcmp.eq.f32.partialorder %v5033_v9, %v6441_v29  ;;  %vm2432_vm13 = vcmp.eq.f32.partialorder %v7560_v8, %v6441_v29  ;;  %v7598_v28 = vld [vmem:[#allocation31_spill] sm:$0xff] }
 0x641   : > { %7577 = vst [vmem:[#allocation37_spill] sm:$0xff] %v6475_v48  ;;  %vm4202_vm5 = vmpackc.low %vm2424_vm0, %vm2422_vm2 }
 0x642   : > { %4195 = vmatpush1.bf16.msk.msra.mxu1 %vm4194_vm9, %v7575_v12  ;;  %vm4204_vm7 = vmpackc.low %vm2429_vm4, %vm2427_vm15  ;;  %vm2431_vm9 = vcmp.eq.f32.partialorder %v5033_v9, %v2407_v1  ;;  %vm2434_vm15 = vcmp.eq.f32.partialorder %v7561_v25, %v6441_v29  ;;  %vm2436_vm4 = vcmp.eq.f32.partialorder %v7562_v30, %v6441_v29 }
 0x643   : > { %4197 = vmatprep.subr.msk.bf16.mxu1 %vm4196_vm10, %v7575_v12  ;;  %vm2433_vm10 = vcmp.eq.f32.partialorder %v7560_v8, %v2407_v1  ;;  %vm4206_vm8 = vmpackc.low %vm2428_vm3, %vm2426_vm6 }
 0x644   : > { %vm4208_vm11 = vmpackc.low %vm2433_vm10, %vm2431_vm9  ;;  %vm2438_vm9 = vcmp.eq.f32.partialorder %v7563_v26, %v6441_v29  ;;  %vm2440_vm10 = vcmp.eq.f32.partialorder %v7565_v59, %v6441_v29 }
 0x645   : > { %vm4210_vm2 = vmpackc.low %vm2432_vm13, %vm2430_vm12 }
 0x646   : > { %4199 = vmatpush1.bf16.msk.msra.mxu1 %vm4198_vm14, %v7575_v12  ;;  %vm2435_vm14 = vcmp.eq.f32.partialorder %v7561_v25, %v2407_v1  ;;  %vm4214_vm6 = vmpackc.low %vm2436_vm4, %vm2434_vm15 }
 0x647   : > { %4201 = vmatprep.subr.msk.bf16.mxu1 %vm4200_vm1, %v7575_v12  ;;  %vm2437_vm1 = vcmp.eq.f32.partialorder %v7562_v30, %v2407_v1 }
 0x648   : > { %vm4212_vm0 = vmpackc.low %vm2437_vm1, %vm2435_vm14  ;;  %vm7616_vm14 = vcmask 1040384  }
 0x64a   : > { %4203 = vmatpush1.bf16.msk.msra.mxu1 %vm4202_vm5, %v7575_v12  ;;  %vm2439_vm5 = vcmp.eq.f32.partialorder %v7563_v26, %v2407_v1 }
 0x64b   : > { %4205 = vmatprep.subr.msk.bf16.mxu1 %vm4204_vm7, %v7575_v12  ;;  %vm2441_vm7 = vcmp.eq.f32.partialorder %v7565_v59, %v2407_v1 }
 0x64c   : > { %vm4216_vm3 = vmpackc.low %vm2441_vm7, %vm2439_vm5 }
 0x64e   : > { %4207 = vmatpush1.bf16.msk.msra.mxu1 %vm4206_vm8, %v7575_v12  ;;  %vm4218_vm8 = vmpackc.low %vm2440_vm10, %vm2438_vm9 }
 0x64f   : > { %4209 = vmatprep.subr.msk.bf16.mxu1 %vm4208_vm11, %v7575_v12  ;;  %vm7611_vm11 = vcmask 261120  }
 0x650   : > { %vm7612_vm12 = vmmov %vm7611_vm11 }
 0x651   : > { %vm7613_vm13 = vmmov %vm7611_vm11 }
 0x652   : > { %4211 = vmatpush1.bf16.msk.msra.mxu1 %vm4210_vm2, %v7575_v12  ;;  %vm7617_vm1 = vmmov %vm7611_vm11 }
 0x653   : > { %4213 = vmatprep.subr.msk.bf16.mxu1 %vm4212_vm0, %v7575_v12  ;;  %vm7618_vm2 = vmmov %vm7616_vm14 }
 0x654   : > { %vm7619_vm0 = vmmov %vm7617_vm1 }
 0x655   : > { %vm7620_vm15 = vmmov %vm7619_vm0 }
 0x656   : > { %4215 = vmatpush1.bf16.msk.msra.mxu1 %vm4214_vm6, %v7575_v12  ;;  %vm7621_vm4 = vmmov %vm7619_vm0 }
 0x657   : > { %4217 = vmatprep.subr.msk.bf16.mxu1 %vm4216_vm3, %v7575_v12  ;;  %vm7622_vm5 = vmmov %vm7619_vm0 }
 0x658   : > { %vm7623_vm7 = vmmov %vm7619_vm0 }
 0x659   : > { %vm7624_vm6 = vmmov %vm7619_vm0 }
 0x65a   : > { %4219 = vmatpush1.bf16.msk.msra.mxu1 %vm4218_vm8, %v7575_v12  ;;  %vm7625_vm3 = vmmov %vm7619_vm0 }
 0x65b   : > { %vm7626_vm9 = vmmov %vm7619_vm0 }
 0x65c   : > { %vm7627_vm10 = vmmov %vm7619_vm0 }
 0x65d   : > { %2571 = vmatmul.mubr.f32.vlgmr.msra.gmra.mrb[40].mxu1 %v3856_v55  ;;  %v7599_v55 = vld [vmem:[#allocation25_spill] sm:$0xff]  ;;  %vm7628_vm8 = vmmov %vm7619_vm0 }
 0x65e   : > { %2576 = vmatprep.mubr.f32.mxu1 %v7578_v54 }
 0x661   : > { %2577 = vmatmul.mubr.f32.gmra.mrb[42].mxu1 %v3857_v37 }
 0x662   : > { %2582 = vmatprep.mubr.f32.mxu1 %v7578_v54 }
 0x665   : > { %2583 = vmatmul.mubr.f32.gmra.mrb[44].mxu1 %v3858_v51 }
 0x666   : > { %2588 = vmatprep.mubr.f32.mxu1 %v7578_v54 }
 0x669   : > { %2589 = vmatmul.mubr.f32.gmra.mrb[46].mxu1 %v3859_v14 }
 0x66a   : > { %2823 = vmatprep.mubr.f32.mxu1 %v7578_v54 }
 0x730   : > { %v2572_v40 = vpop.f32.mrb[40].mxu1 }
 0x731   : > { %v6533_v57 = vadd.f32 %v2572_v40, %v7579_v56  ;;  %v2574_v49 = vpop.f32.mrb[41].mxu1  ;;  %v2595_v31 = vsub.f32 %v2572_v40, %v7583_v61  ;;  %v6562_v47 = vsub.f32 %v7583_v61, %v2572_v40 }
 0x732   : > { %v6536_v34 = vadd.f32 %v2574_v49, %v7581_v13  ;;  %v2596_v44 = vsub.f32 %v2574_v49, %v7584_v11  ;;  %v6552_v15 = vsub.f32 %v7584_v11, %v2574_v49  ;;  %v7602_v13 = vld [vmem:[#allocation26_spill] sm:$0xff]  ;;  %v7604_v11 = vld [vmem:[#allocation28_spill] sm:$0xff] }
 0x733   : > { %7580 = vst [vmem:[#allocation38_spill] sm:$0xff] %v6533_v57  ;;  %3956 = vst [vmem:[%s5293_s19 + $0x80] sm:$0xff] %v6533_v57  ;;  %v2603_v27 = vmul.f32 %v2595_v31, %v2595_v31 }
 0x734   : > { %7582 = vst [vmem:[#allocation39_spill] sm:$0xff] %v6536_v34  ;;  %3957 = vst [vmem:[%s5293_s19 + $0x88] sm:$0xff] %v6536_v34  ;;  %v2578_v50 = vpop.f32.mrb[42].mxu1  ;;  %v2604_v20 = vmul.f32 %v2596_v44, %v2596_v44  ;;  %v7645_v34 = vld [vmem:[#allocation51_spill] sm:$0xff] }
 0x735   : > { %v2597_v3 = vsub.f32 %v2578_v50, %v7585_v17  ;;  %v6546_v6 = vsub.f32 %v7585_v17, %v2578_v50  ;;  %v6549_v39 = vadd.f32 %v2578_v50, %v7587_v7  ;;  %v2580_v58 = vpop.f32.mrb[43].mxu1  ;;  %7589 = vst [vmem:[#allocation42_spill] sm:$0xff] %v6552_v15  ;;  %7594 = vst [vmem:[#allocation16_spill] sm:$0xff] %v6562_v47 }
 0x736   : > { %v2598_v23 = vsub.f32 %v2580_v58, %v7590_v5  ;;  %v6556_v60 = vsub.f32 %v7590_v5, %v2580_v58  ;;  %v6559_v4 = vadd.f32 %v2580_v58, %v7592_v43  ;;  %v7608_v5 = vld [vmem:[#allocation32_spill] sm:$0xff] }
 0x737   : > { %7586 = vst [vmem:[#allocation40_spill] sm:$0xff] %v6546_v6  ;;  %7588 = vst [vmem:[#allocation41_spill] sm:$0xff] %v6549_v39  ;;  %v2605_v32 = vmul.f32 %v2597_v3, %v2597_v3  ;;  %v4222_v24 = vpack.c.bf16 %v6546_v6, %v6562_v47  ;;  %v7606_v3 = vld [vmem:[#allocation27_spill] sm:$0xff] }
 0x738   : > { %7591 = vst [vmem:[#allocation43_spill] sm:$0xff] %v6556_v60  ;;  %7593 = vst [vmem:[#allocation15_spill] sm:$0xff] %v6559_v4  ;;  %v2606_v36 = vmul.f32 %v2598_v23, %v2598_v23  ;;  %v2584_v29 = vpop.f32.mrb[44].mxu1  ;;  %v4220_v46 = vpack.c.bf16 %v6556_v60, %v6552_v15  ;;  %v7644_v15 = vld [vmem:[#allocation58_spill] sm:$0xff] }
 0x739   : > { %3958 = vst [vmem:[%s5293_s19 + $0x90] sm:$0xff] %v6549_v39  ;;  %3959 = vst [vmem:[%s5293_s19 + $0x98] sm:$0xff] %v6559_v4  ;;  %v2611_v10 = vadd.f32 %v2605_v32, %v2603_v27  ;;  %v2599_v21 = vsub.f32 %v2584_v29, %v7595_v18  ;;  %v6574_v2 = vadd.f32 %v2584_v29, %v7596_v0  ;;  %v2586_v1 = vpop.f32.mrb[45].mxu1  ;;  %v7642_v4 = vld [vmem:[#allocation57_spill] sm:$0xff]  ;;  %v7643_v39 = vld [vmem:[#allocation50_spill] sm:$0xff] }
 0x73a   : > { %v2620_v19 = vadd.f32 %v2606_v36, %v2604_v20  ;;  %v2600_v22 = vsub.f32 %v2586_v1, %v7598_v28  ;;  %v6578_v37 = vadd.f32 %v2586_v1, %v7599_v55  ;;  %4221 = vmatprep.subr.bf16.mxu1 %v4220_v46  ;;  %v6583_v40 = vsub.f32 %v7598_v28, %v2586_v1 }
 0x73b   : > { %7597 = vst [vmem:[#allocation17_spill] sm:$0xff] %v6574_v2  ;;  %v2607_v51 = vmul.f32 %v2599_v21, %v2599_v21  ;;  %3960 = vst [vmem:[%s5293_s19 + $0xa0] sm:$0xff] %v6574_v2  ;;  %4223 = vmatpush1.bf16.msra.mxu1 %v4222_v24  ;;  %v6602_v43 = vsub.f32 %v7595_v18, %v2584_v29  ;;  %v3964_v29 = vld [vmem:[%s7404_s1 + $0x180] sm:$0xff]  ;;  %v7641_v2 = vld [vmem:[#allocation49_spill] sm:$0xff] }
 0x73c   : > { %7600 = vst [vmem:[#allocation18_spill] sm:$0xff] %v6578_v37  ;;  %v2608_v14 = vmul.f32 %v2600_v22, %v2600_v22  ;;  %7601 = vst [vmem:[#allocation21_spill] sm:$0xff] %v6583_v40  ;;  %v2590_v56 = vpop.f32.mrb[46].mxu1 }
 0x73d   : > { %3961 = vst [vmem:[%s5293_s19 + $0xa8] sm:$0xff] %v6578_v37  ;;  %v2612_v49 = vadd.f32 %v2611_v10, %v2607_v51  ;;  %v2601_v61 = vsub.f32 %v2590_v56, %v7602_v13  ;;  %v6589_v31 = vsub.f32 %v7602_v13, %v2590_v56  ;;  %v6592_v44 = vadd.f32 %v2590_v56, %v7604_v11  ;;  %v2592_v50 = vpop.f32.mrb[47].mxu1  ;;  %v3966_v51 = vld [vmem:[%s7404_s1 + $0x190] sm:$0xff]  ;;  %v7640_v37 = vld [vmem:[#allocation56_spill] sm:$0xff] }
 0x73e   : > { %v2621_v17 = vadd.f32 %v2620_v19, %v2608_v14  ;;  %v2602_v7 = vsub.f32 %v2592_v50, %v7606_v3  ;;  %v6596_v58 = vsub.f32 %v7606_v3, %v2592_v50  ;;  %v6599_v23 = vadd.f32 %v2592_v50, %v7608_v5  ;;  %7610 = vst [vmem:[#allocation23_spill] sm:$0xff] %v6602_v43  ;;  %v3965_v19 = vld [vmem:[%s7404_s1 + $0x188] sm:$0xff]  ;;  %v7614_v11 = vld [vmem:[#allocation34_spill] sm:$0xff] }
 0x73f   : > { %7603 = vst [vmem:[#allocation20_spill] sm:$0xff] %v6589_v31  ;;  %7605 = vst [vmem:[#allocation24_spill] sm:$0xff] %v6592_v44  ;;  %v2609_v27 = vmul.f32 %v2601_v61, %v2601_v61  ;;  %v4226_v46 = vpack.c.bf16 %v6589_v31, %v6602_v43  ;;  %v3967_v61 = vld [vmem:[%s7404_s1 + $0x198] sm:$0xff] }
 0x740   : > { %7607 = vst [vmem:[#allocation22_spill] sm:$0xff] %v6596_v58  ;;  %7609 = vst [vmem:[#allocation19_spill] sm:$0xff] %v6599_v23  ;;  %v2610_v32 = vmul.f32 %v2602_v7, %v2602_v7  ;;  %v4224_v20 = vpack.c.bf16 %v6596_v58, %v6583_v40 }
 0x741   : > { %3962 = vst [vmem:[%s5293_s19 + $0xb0] sm:$0xff] %v6592_v44  ;;  %3963 = vst [vmem:[%s5293_s19 + $0xb8] sm:$0xff] %v6599_v23  ;;  %v2613_v36 = vadd.f32 %v2612_v49, %v2609_v27  ;;  %v7638_v23 = vld [vmem:[#allocation55_spill] sm:$0xff]  ;;  %v7639_v44 = vld [vmem:[#allocation48_spill] sm:$0xff] }
 0x742   : > { %v2622_v10 = vadd.f32 %v2621_v17, %v2610_v32  ;;  %4225 = vmatprep.subr.bf16.mxu1 %v4224_v20  ;;  %v7615_v17 = vld [vmem:[#allocation35_spill] sm:$0xff]  ;;  %v3969_v20 = vld [vmem:[%s7404_s1 + $0x1a8] sm:$0xff] }
 0x743   : > { %v2614_v24 = vrot.slane %v2613_v36, 4  ;;  %4227 = vmatpush1.bf16.msra.mxu1 %v4226_v46  ;;  %v3968_v32 = vld [vmem:[%s7404_s1 + $0x1a0] sm:$0xff]  ;;  %v3971_v46 = vld [vmem:[%s7404_s1 + $0x1b8] sm:$0xff] }
 0x744   : > { %v2623_v18 = vrot.slane %v2622_v10, 4 }
 0x745   : > { %v2615_v21 = vadd.f32 %v2614_v24, %v2613_v36  ;;  %v3970_v36 = vld [vmem:[%s7404_s1 + $0x1b0] sm:$0xff]  ;;  %v3973_v24 = vld [vmem:[%s7404_s1 + $0x1c8] sm:$0xff] }
 0x746   : > { %v2624_v0 = vadd.f32 %v2623_v18, %v2622_v10  ;;  %4000 = vmatmul.mubr.msk.f32.vlgmr.msra.gmra.mrb[48].mxu1 %vm7611_vm11, %v3964_v29  ;;  %v3972_v10 = vld [vmem:[%s7404_s1 + $0x1c0] sm:$0xff]  ;;  %v3974_v29 = vld [vmem:[%s7404_s1 + $0x1d0] sm:$0xff]  ;;  %v3975_v18 = vld [vmem:[%s7404_s1 + $0x1d8] sm:$0xff] }
 0x747   : > { %v2616_v1 = vrot.slane %v2615_v21, 2  ;;  %2829 = vmatprep.mubr.f32.mxu1 %v7578_v54  ;;  %vm7629_vm11 = vmmov %vm7619_vm0 }
 0x748   : > { %v2625_v28 = vrot.slane %v2624_v0, 2 }
 0x749   : > { %v2617_v22 = vadd.f32 %v2616_v1, %v2615_v21  ;;  %v3976_v21 = vld [vmem:[%s7404_s1 + $0x1e0] sm:$0xff]  ;;  %v3978_v1 = vld [vmem:[%s7404_s1 + $0x1f0] sm:$0xff] }
 0x74a   : > { %4001 = vmatmul.mubr.msk.f32.gmra.mrb[50].mxu1 %vm7612_vm12, %v3965_v19  ;;  %v2626_v55 = vadd.f32 %v2625_v28, %v2624_v0  ;;  %v3977_v0 = vld [vmem:[%s7404_s1 + $0x1e8] sm:$0xff]  ;;  %v3979_v19 = vld [vmem:[%s7404_s1 + $0x1f8] sm:$0xff]  ;;  %vm7630_vm12 = vmmov %vm7619_vm0 }
 0x74b   : > { %2835 = vmatprep.mubr.f32.mxu1 %v7578_v54  ;;  %v2618_v14 = vrot.slane %v2617_v22, 1 }
 0x74c   : > { %v2627_v56 = vrot.slane %v2626_v55, 1 }
 0x74d   : > { %v2619_v49 = vadd.f32 %v2618_v14, %v2617_v22 }
 0x74e   : > { %4002 = vmatmul.mubr.msk.f32.gmra.mrb[52].mxu1 %vm7613_vm13, %v3966_v51  ;;  %v2628_v13 = vadd.f32 %v2627_v56, %v2626_v55 }
 0x74f   : > { %2841 = vmatprep.mubr.f32.mxu1 %v7578_v54  ;;  %v2630_v50 = vmul.f32 %v7614_v11, %v2619_v49 }
 0x750   : > { %v2631_v3 = vmul.f32 %v7615_v17, %v2628_v13  ;;  %v7637_v17 = vld [vmem:[#allocation47_spill] sm:$0xff] }
 0x751   : > { %v2632_v7 = vsel %vm7616_vm14, %v2630_v50, 0.0 }
 0x752   : > { %4003 = vmatmul.mubr.msk.f32.gmra.mrb[54].mxu1 %vm7617_vm1, %v3967_v61  ;;  %v2633_v5 = vsel %vm7618_vm2, %v2631_v3, 0.0 }
 0x753   : > { %2847 = vmatprep.mubr.f32.mxu1 %v7578_v54  ;;  %v2634_v27 = vadd.f32 %v2633_v5, %v2632_v7  ;;  %v7631_v5 = vld [vmem:[#allocation44_spill] sm:$0xff] }
 0x755   : > { %2635 = vadd.xlane.f32.xlu0 %v2634_v27 }
 0x756   : > { %4004 = vmatmul.mubr.msk.f32.gmra.mrb[56].mxu1 %vm7619_vm0, %v3968_v32  ;;  %v7632_v32 = vld [vmem:[#allocation45_spill] sm:$0xff] }
 0x757   : > { %2853 = vmatprep.mubr.f32.mxu1 %v7578_v54 }
 0x75a   : > { %4005 = vmatmul.mubr.msk.f32.gmra.mrb[58].mxu1 %vm7620_vm15, %v3969_v20 }
 0x75b   : > { %2859 = vmatprep.mubr.f32.mxu1 %v7578_v54 }
 0x75e   : > { %4006 = vmatmul.mubr.msk.f32.gmra.mrb[60].mxu1 %vm7621_vm4, %v3970_v36 }
 0x75f   : > { %2865 = vmatprep.mubr.f32.mxu1 %v7578_v54 }
 0x762   : > { %4007 = vmatmul.mubr.msk.f32.gmra.mrb[62].mxu1 %vm7622_vm5, %v3971_v46 }
 0x763   : > { %2871 = vmatprep.mubr.f32.mxu1 %v7578_v54 }
 0x766   : > { %4008 = vmatmul.mubr.msk.f32.gmra.mrb[64].mxu1 %vm7623_vm7, %v3972_v10 }
 0x767   : > { %2877 = vmatprep.mubr.f32.mxu1 %v7578_v54 }
 0x76a   : > { %4009 = vmatmul.mubr.msk.f32.gmra.mrb[66].mxu1 %vm7624_vm6, %v3973_v24 }
 0x76b   : > { %2883 = vmatprep.mubr.f32.mxu1 %v7578_v54 }
 0x76e   : > { %4010 = vmatmul.mubr.msk.f32.gmra.mrb[68].mxu1 %vm7625_vm3, %v3974_v29 }
 0x76f   : > { %2889 = vmatprep.mubr.f32.mxu1 %v7578_v54 }
 0x772   : > { %4011 = vmatmul.mubr.msk.f32.gmra.mrb[70].mxu1 %vm7626_vm9, %v3975_v18 }
 0x773   : > { %2895 = vmatprep.mubr.f32.mxu1 %v7578_v54 }
 0x776   : > { %4012 = vmatmul.mubr.msk.f32.gmra.mrb[72].mxu1 %vm7627_vm10, %v3976_v21  ;;  %v7633_v21 = vld [vmem:[#allocation52_spill] sm:$0xff] }
 0x777   : > { %2901 = vmatprep.mubr.f32.mxu1 %v7578_v54 }
 0x77a   : > { %4013 = vmatmul.mubr.msk.f32.gmra.mrb[74].mxu1 %vm7628_vm8, %v3977_v0 }
 0x77b   : > { %2907 = vmatprep.mubr.f32.mxu1 %v7578_v54 }
 0x77e   : > { %4014 = vmatmul.mubr.msk.f32.gmra.mrb[76].mxu1 %vm7629_vm11, %v3978_v1  ;;  %v7634_v1 = vld [vmem:[#allocation53_spill] sm:$0xff] }
 0x77f   : > { %2913 = vmatprep.mubr.f32.mxu1 %v7578_v54  ;;  %v7646_v54 = vld [vmem:[#allocation59_spill] sm:$0xff] }
 0x782   : > { %4015 = vmatmul.mubr.msk.f32.gmra.mrb[78].mxu1 %vm7630_vm12, %v3979_v19 }
 0x7e2   : > { %v2636_v28 = vpop.xlane.xlu0 %2635 }
 0x7e3   : > { %v2637_v22 = vrot.slane %v2636_v28, 4 }
 0x7e5   : > { %v2638_v55 = vadd.f32 %v2637_v22, %v2636_v28 }
 0x7e7   : > { %v2639_v51 = vrot.slane %v2638_v55, 2 }
 0x7e9   : > { %v2640_v14 = vadd.f32 %v2639_v51, %v2638_v55 }
 0x7eb   : > { %v2641_v56 = vrot.slane %v2640_v14, 1 }
 0x7ed   : > { %v2642_v49 = vadd.f32 %v2641_v56, %v2640_v14 }
 0x7ef   : > { %4276 = vpush %v2642_v49  ;;  %v7635_v49 = vld [vmem:[#allocation46_spill] sm:$0xff] }
 0x819   : > { %v2825_v13 = vpop.f32.mrb[48].mxu1 }
 0x81a   : > { %v2827_v61 = vpop.f32.mrb[49].mxu1  ;;  %v6696_v27 = vadd.f32 %v7631_v5, %v2825_v13 }
 0x81b   : > { %v6702_v46 = vadd.f32 %v7631_v5, %v2827_v61 }
 0x81d   : > { %v2831_v50 = vpop.f32.mrb[50].mxu1 }
 0x81e   : > { %v2833_v3 = vpop.f32.mrb[51].mxu1  ;;  %v6712_v0 = vadd.f32 %v7633_v21, %v2831_v50 }
 0x81f   : > { %v6718_v22 = vadd.f32 %v7633_v21, %v2833_v3 }
 0x821   : > { %v2837_v7 = vpop.f32.mrb[52].mxu1 }
 0x822   : > { %v6699_v20 = vadd.f32 %v7632_v32, %v2837_v7  ;;  %v2839_v36 = vpop.f32.mrb[53].mxu1 }
 0x823   : > { %v6705_v10 = vadd.f32 %v7632_v32, %v2839_v36  ;;  %v7636_v32 = vld [vmem:[#allocation54_spill] sm:$0xff] }
 0x824   : > { %v3032_v24 = vmin.f32 %v6696_v27, %v6699_v20 }
 0x825   : > { %v3053_v29 = vmin.f32 %v6702_v46, %v6705_v10  ;;  %v2843_v18 = vpop.f32.mrb[54].mxu1 }
 0x826   : > { %v6715_v19 = vadd.f32 %v7634_v1, %v2843_v18  ;;  %v2845_v28 = vpop.f32.mrb[55].mxu1 }
 0x827   : > { %v6721_v55 = vadd.f32 %v7634_v1, %v2845_v28 }
 0x828   : > { %v3033_v51 = vmin.f32 %v6712_v0, %v6715_v19 }
 0x829   : > { %v3054_v14 = vmin.f32 %v6718_v22, %v6721_v55  ;;  %v2849_v56 = vpop.f32.mrb[56].mxu1 }
 0x82a   : > { %v6728_v13 = vadd.f32 %v7635_v49, %v2849_v56  ;;  %v2851_v61 = vpop.f32.mrb[57].mxu1 }
 0x82b   : > { %v6731_v50 = vadd.f32 %v7635_v49, %v2851_v61 }
 0x82c   : > { %v3034_v3 = vmin.f32 %v3032_v24, %v6728_v13 }
 0x82d   : > { %v3055_v7 = vmin.f32 %v3053_v29, %v6731_v50  ;;  %v2855_v5 = vpop.f32.mrb[58].mxu1 }
 0x82e   : > { %v6736_v36 = vadd.f32 %v7636_v32, %v2855_v5  ;;  %v2857_v18 = vpop.f32.mrb[59].mxu1 }
 0x82f   : > { %v6739_v21 = vadd.f32 %v7636_v32, %v2857_v18 }
 0x830   : > { %v3035_v1 = vmin.f32 %v3033_v51, %v6736_v36 }
 0x831   : > { %v3056_v28 = vmin.f32 %v3054_v14, %v6739_v21  ;;  %v2861_v56 = vpop.f32.mrb[60].mxu1 }
 0x832   : > { %v6744_v49 = vadd.f32 %v7637_v17, %v2861_v56  ;;  %v2863_v61 = vpop.f32.mrb[61].mxu1 }
 0x833   : > { %v6747_v24 = vadd.f32 %v7637_v17, %v2863_v61 }
 0x834   : > { %v3036_v29 = vmin.f32 %v3034_v3, %v6744_v49 }
 0x835   : > { %v3057_v5 = vmin.f32 %v3055_v7, %v6747_v24  ;;  %v2867_v11 = vpop.f32.mrb[62].mxu1 }
 0x836   : > { %v6752_v32 = vadd.f32 %v7638_v23, %v2867_v11  ;;  %v2869_v18 = vpop.f32.mrb[63].mxu1 }
 0x837   : > { %v6755_v51 = vadd.f32 %v7638_v23, %v2869_v18 }
 0x838   : > { %v3037_v14 = vmin.f32 %v3035_v1, %v6752_v32 }
 0x839   : > { %v3058_v56 = vmin.f32 %v3056_v28, %v6755_v51  ;;  %v2873_v58 = vpop.f32.mrb[64].mxu1 }
 0x83a   : > { %v6760_v17 = vadd.f32 %v7639_v44, %v2873_v58  ;;  %v2875_v61 = vpop.f32.mrb[65].mxu1 }
 0x83b   : > { %v6763_v3 = vadd.f32 %v7639_v44, %v2875_v61 }
 0x83c   : > { %v3038_v7 = vmin.f32 %v3036_v29, %v6760_v17 }
 0x83d   : > { %v3059_v11 = vmin.f32 %v3057_v5, %v6763_v3  ;;  %v2879_v31 = vpop.f32.mrb[66].mxu1 }
 0x83e   : > { %v6768_v23 = vadd.f32 %v7640_v37, %v2879_v31  ;;  %v2881_v18 = vpop.f32.mrb[67].mxu1 }
 0x83f   : > { %v6771_v1 = vadd.f32 %v7640_v37, %v2881_v18 }
 0x840   : > { %v3039_v28 = vmin.f32 %v3037_v14, %v6768_v23 }
 0x841   : > { %v3060_v58 = vmin.f32 %v3058_v56, %v6771_v1  ;;  %v2885_v40 = vpop.f32.mrb[68].mxu1 }
 0x842   : > { %v6776_v44 = vadd.f32 %v7641_v2, %v2885_v40  ;;  %v2887_v61 = vpop.f32.mrb[69].mxu1 }
 0x843   : > { %v6779_v29 = vadd.f32 %v7641_v2, %v2887_v61 }
 0x844   : > { %v3040_v5 = vmin.f32 %v3038_v7, %v6776_v44 }
 0x845   : > { %v3061_v31 = vmin.f32 %v3059_v11, %v6779_v29  ;;  %v2891_v43 = vpop.f32.mrb[70].mxu1 }
 0x846   : > { %v6784_v37 = vadd.f32 %v7642_v4, %v2891_v43  ;;  %v2893_v18 = vpop.f32.mrb[71].mxu1 }
 0x847   : > { %v6787_v14 = vadd.f32 %v7642_v4, %v2893_v18 }
 0x848   : > { %v3041_v56 = vmin.f32 %v3039_v28, %v6784_v37 }
 0x849   : > { %v3062_v40 = vmin.f32 %v3060_v58, %v6787_v14  ;;  %v2897_v60 = vpop.f32.mrb[72].mxu1 }
 0x84a   : > { %v6792_v2 = vadd.f32 %v7643_v39, %v2897_v60  ;;  %v2899_v61 = vpop.f32.mrb[73].mxu1 }
 0x84b   : > { %v6795_v7 = vadd.f32 %v7643_v39, %v2899_v61 }
 0x84c   : > { %v3042_v11 = vmin.f32 %v3040_v5, %v6792_v2 }
 0x84d   : > { %v3063_v43 = vmin.f32 %v3061_v31, %v6795_v7  ;;  %v2903_v6 = vpop.f32.mrb[74].mxu1 }
 0x84e   : > { %v6800_v4 = vadd.f32 %v7644_v15, %v2903_v6  ;;  %v2905_v18 = vpop.f32.mrb[75].mxu1 }
 0x84f   : > { %v6803_v28 = vadd.f32 %v7644_v15, %v2905_v18 }
 0x850   : > { %v3043_v58 = vmin.f32 %v3041_v56, %v6800_v4 }
 0x851   : > { %v3064_v60 = vmin.f32 %v3062_v40, %v6803_v28  ;;  %v2909_v47 = vpop.f32.mrb[76].mxu1 }
 0x852   : > { %v6808_v39 = vadd.f32 %v7645_v34, %v2909_v47  ;;  %v2911_v61 = vpop.f32.mrb[77].mxu1 }
 0x853   : > { %v6811_v5 = vadd.f32 %v7645_v34, %v2911_v61 }
 0x854   : > { %v3044_v31 = vmin.f32 %v3042_v11, %v6808_v39 }
 0x855   : > { %v3065_v6 = vmin.f32 %v3063_v43, %v6811_v5  ;;  %v2915_v57 = vpop.f32.mrb[78].mxu1 }
 0x856   : > { %v6816_v15 = vadd.f32 %v7646_v54, %v2915_v57  ;;  %v2917_v18 = vpop.f32.mrb[79].mxu1 }
 0x857   : > { %v6819_v56 = vadd.f32 %v7646_v54, %v2917_v18 }
 0x858   : > { %v3045_v40 = vmin.f32 %v3043_v58, %v6816_v15 }
 0x859   : > { %v3066_v47 = vmin.f32 %v3064_v60, %v6819_v56 }
 0x85a   : > { %v3046_v48 = vmin.f32 %v3044_v31, %v3045_v40 }
 0x85b   : > { %v3067_v12 = vmin.f32 %v3065_v6, %v3066_v47 }
 0x85c   : > { %v3047_v34 = vrot.slane %v3046_v48, 4 }
 0x85d   : > { %v3068_v61 = vrot.slane %v3067_v12, 4 }
 0x85e   : > { %v3048_v16 = vmin.f32 %v3046_v48, %v3047_v34 }
 0x85f   : > { %v3069_v11 = vmin.f32 %v3067_v12, %v3068_v61  ;;  %v7648_v61 = vld [vmem:[#allocation11_spill] sm:$0xff] }
 0x860   : > { %v3049_v59 = vrot.slane %v3048_v16, 2 }
 0x861   : > { %v3070_v43 = vrot.slane %v3069_v11, 2 }
 0x862   : > { %v3050_v26 = vmin.f32 %v3048_v16, %v3049_v59 }
 0x863   : > { %v3071_v30 = vmin.f32 %v3069_v11, %v3070_v43  ;;  %v7649_v11 = vld [vmem:[#allocation12_spill] sm:$0xff] }
 0x864   : > { %v3051_v57 = vrot.slane %v3050_v26, 1 }
 0x865   : > { %v3072_v8 = vrot.slane %v3071_v30, 1 }
 0x866   : > { %v6823_v25 = vmin.f32 %v3050_v26, %v3051_v57 }
 0x867   : > { %v6857_v26 = vmin.f32 %v3071_v30, %v3072_v8 }
 0x868   : > { %vm3074_vm13 = vcmp.le.f32.partialorder %v6696_v27, %v6823_v25  ;;  %vm3076_vm14 = vcmp.le.f32.partialorder %v6712_v0, %v6823_v25  ;;  %vm3078_vm1 = vcmp.le.f32.partialorder %v6699_v20, %v6823_v25  ;;  %vm3080_vm2 = vcmp.le.f32.partialorder %v6715_v19, %v6823_v25 }
 0x869   : > { %vm3082_vm0 = vcmp.le.f32.partialorder %v6728_v13, %v6823_v25  ;;  %vm3084_vm15 = vcmp.le.f32.partialorder %v6736_v36, %v6823_v25  ;;  %vm3086_vm4 = vcmp.le.f32.partialorder %v6744_v49, %v6823_v25  ;;  %vm3088_vm5 = vcmp.le.f32.partialorder %v6752_v32, %v6823_v25 }
 0x86a   : > { %vm3090_vm7 = vcmp.le.f32.partialorder %v6760_v17, %v6823_v25  ;;  %vm3092_vm6 = vcmp.le.f32.partialorder %v6768_v23, %v6823_v25  ;;  %vm3094_vm3 = vcmp.le.f32.partialorder %v6776_v44, %v6823_v25  ;;  %vm3096_vm9 = vcmp.le.f32.partialorder %v6784_v37, %v6823_v25  ;;  %v7647_v17 = vld [vmem:[#allocation10_spill] sm:$0xff] }
 0x86b   : > { %vm3098_vm10 = vcmp.le.f32.partialorder %v6792_v2, %v6823_v25  ;;  %vm3100_vm8 = vcmp.le.f32.partialorder %v6800_v4, %v6823_v25  ;;  %v3106_v59 = vsel %vm3074_vm13, %v4961_v33, 128.0  ;;  %v3108_v16 = vsel %vm3076_vm14, %v4963_v35, 128.0 }
 0x86c   : > { %v3110_v12 = vsel %vm3078_vm1, %v4965_v38, 128.0  ;;  %v3112_v8 = vsel %vm3080_vm2, %v4967_v41, 128.0  ;;  %v3114_v30 = vsel %vm3082_vm0, %v4969_v42, 128.0  ;;  %v3116_v48 = vsel %vm3084_vm15, %v4973_v45, 128.0 }
 0x86d   : > { %v3118_v54 = vsel %vm3086_vm4, %v4975_v52, 128.0  ;;  %v3120_v27 = vsel %vm3088_vm5, %v4977_v53, 128.0  ;;  %v3138_v20 = vmin.f32 %v3106_v59, %v3110_v12  ;;  %v3139_v0 = vmin.f32 %v3108_v16, %v3112_v8  ;;  %v7650_v59 = vld [vmem:[#allocation13_spill] sm:$0xff]  ;;  %v7652_v16 = vld [vmem:[#allocation14_spill] sm:$0xff] }
 0x86e   : > { %vm3075_vm13 = vcmp.le.f32.partialorder %v6702_v46, %v6857_v26  ;;  %vm3077_vm14 = vcmp.le.f32.partialorder %v6718_v22, %v6857_v26  ;;  %vm3079_vm1 = vcmp.le.f32.partialorder %v6705_v10, %v6857_v26  ;;  %vm3081_vm2 = vcmp.le.f32.partialorder %v6721_v55, %v6857_v26 }
 0x86f   : > { %v3140_v19 = vmin.f32 %v3138_v20, %v3114_v30  ;;  %v3141_v13 = vmin.f32 %v3139_v0, %v3116_v48  ;;  %vm3091_vm12 = vcmp.le.f32.partialorder %v6763_v3, %v6857_v26  ;;  %vm3093_vm11 = vcmp.le.f32.partialorder %v6771_v1, %v6857_v26 }
 0x870   : > { %vm3099_vm4 = vcmp.le.f32.partialorder %v6795_v7, %v6857_v26  ;;  %vm3101_vm5 = vcmp.le.f32.partialorder %v6803_v28, %v6857_v26  ;;  %v3122_v32 = vsel %vm3090_vm7, %v5011_v62, 128.0  ;;  %v3124_v58 = vsel %vm3092_vm6, %v5013_v63, 128.0 }
 0x871   : > { %v3142_v36 = vmin.f32 %v3140_v19, %v3118_v54  ;;  %v3143_v49 = vmin.f32 %v3141_v13, %v3120_v27  ;;  %vm3103_vm15 = vcmp.le.f32.partialorder %v6811_v5, %v6857_v26  ;;  %vm3105_vm0 = vcmp.le.f32.partialorder %v6819_v56, %v6857_v26 }
 0x872   : > { %v3126_v6 = vsel %vm3094_vm3, %v5033_v9, 128.0  ;;  %v3128_v18 = vsel %vm3096_vm9, %v7647_v17, 128.0  ;;  %v3107_v23 = vsel %vm3075_vm13, %v4961_v33, 128.0  ;;  %v3109_v40 = vsel %vm3077_vm14, %v4963_v35, 128.0 }
 0x873   : > { %v3144_v60 = vmin.f32 %v3142_v36, %v3122_v32  ;;  %v3145_v31 = vmin.f32 %v3143_v49, %v3124_v58  ;;  %v3111_v44 = vsel %vm3079_vm1, %v4965_v38, 128.0  ;;  %v3113_v37 = vsel %vm3081_vm2, %v4967_v41, 128.0 }
 0x874   : > { %v3130_v46 = vsel %vm3098_vm10, %v7648_v61, 128.0  ;;  %v3132_v22 = vsel %vm3100_vm8, %v7649_v11, 128.0  ;;  %vm7651_vm7 = vcmp.le.f32.partialorder %v6808_v39, %v6823_v25  ;;  %vm7653_vm6 = vcmp.le.f32.partialorder %v6816_v15, %v6823_v25 }
 0x875   : > { %v3146_v47 = vmin.f32 %v3144_v60, %v3126_v6  ;;  %v3147_v34 = vmin.f32 %v3145_v31, %v3128_v18  ;;  %v3134_v10 = vsel %vm7651_vm7, %v7650_v59, 128.0  ;;  %v3136_v55 = vsel %vm7653_vm6, %v7652_v16, 128.0 }
 0x876   : > { %v3159_v12 = vmin.f32 %v3107_v23, %v3111_v44  ;;  %v3160_v2 = vmin.f32 %v3109_v40, %v3113_v37  ;;  %vm7654_vm3 = vcmp.le.f32.partialorder %v6731_v50, %v6857_v26  ;;  %vm7655_vm9 = vcmp.le.f32.partialorder %v6739_v21, %v6857_v26 }
 0x877   : > { %v3148_v43 = vmin.f32 %v3146_v47, %v3130_v46  ;;  %v3149_v57 = vmin.f32 %v3147_v34, %v3132_v22  ;;  %v3115_v4 = vsel %vm7654_vm3, %v4969_v42, 128.0  ;;  %v3117_v39 = vsel %vm7655_vm9, %v4973_v45, 128.0 }
 0x878   : > { %v3161_v48 = vmin.f32 %v3159_v12, %v3115_v4  ;;  %v3162_v54 = vmin.f32 %v3160_v2, %v3117_v39  ;;  %vm7656_vm10 = vcmp.le.f32.partialorder %v6747_v24, %v6857_v26  ;;  %vm7657_vm8 = vcmp.le.f32.partialorder %v6755_v51, %v6857_v26  ;;  %v7667_v2 = vld [vmem:[#allocation42_spill] sm:$0xff]  ;;  %v7668_v4 = vld [vmem:[#allocation40_spill] sm:$0xff] }
 0x879   : > { %v3150_v8 = vmin.f32 %v3148_v43, %v3134_v10  ;;  %v3151_v30 = vmin.f32 %v3149_v57, %v3136_v55  ;;  %v3119_v25 = vsel %vm7656_vm10, %v4975_v52, 128.0  ;;  %v3121_v15 = vsel %vm7657_vm8, %v4977_v53, 128.0  ;;  %v7660_v57 = vld [vmem:[#allocation36_spill] sm:$0xff] }
 0x87a   : > { %v3163_v50 = vmin.f32 %v3161_v48, %v3119_v25  ;;  %v3164_v20 = vmin.f32 %v3162_v54, %v3121_v15  ;;  %v3123_v21 = vsel %vm3091_vm12, %v5011_v62, 128.0  ;;  %v3125_v19 = vsel %vm3093_vm11, %v5013_v63, 128.0  ;;  %v7669_v48 = vld [vmem:[#allocation41_spill] sm:$0xff]  ;;  %v7670_v25 = vld [vmem:[#allocation43_spill] sm:$0xff] }
 0x87b   : > { %v3152_v27 = vmin.f32 %v3150_v8, %v3151_v30  ;;  %vm7658_vm13 = vcmp.le.f32.partialorder %v6779_v29, %v6857_v26  ;;  %vm7659_vm14 = vcmp.le.f32.partialorder %v6787_v14, %v6857_v26  ;;  %v3131_v1 = vsel %vm3099_vm4, %v7648_v61, 128.0 }
 0x87c   : > { %v3165_v24 = vmin.f32 %v3163_v50, %v3123_v21  ;;  %v3166_v13 = vmin.f32 %v3164_v20, %v3125_v19  ;;  %v3127_v51 = vsel %vm7658_vm13, %v5033_v9, 128.0  ;;  %v3129_v49 = vsel %vm7659_vm14, %v7647_v17, 128.0  ;;  %v7671_v50 = vld [vmem:[#allocation15_spill] sm:$0xff] }
 0x87d   : > { %v3153_v0 = vrot.slane %v3152_v27, 4  ;;  %v3133_v60 = vsel %vm3101_vm5, %v7649_v11, 128.0  ;;  %v3135_v14 = vsel %vm3103_vm15, %v7650_v59, 128.0  ;;  %v3137_v18 = vsel %vm3105_vm0, %v7652_v16, 128.0 }
 0x87e   : > { %v3167_v3 = vmin.f32 %v3165_v24, %v3127_v51  ;;  %v3168_v32 = vmin.f32 %v3166_v13, %v3129_v49  ;;  %vm3441_vm11 = vcmask 1042432   ;;  %v7661_v26 = vmov 1.0|1.0   ;;  %v7672_v51 = vld [vmem:[#allocation23_spill] sm:$0xff] }
 0x87f   : > { %v3154_v36 = vmin.f32 %v3152_v27, %v3153_v0 }
 0x880   : > { %v3169_v29 = vmin.f32 %v3167_v3, %v3131_v1  ;;  %v3170_v31 = vmin.f32 %v3168_v32, %v3133_v60  ;;  %v7673_v3 = vld [vmem:[#allocation17_spill] sm:$0xff] }
 0x881   : > { %v3155_v58 = vrot.slane %v3154_v36, 2  ;;  %v7674_v60 = vld [vmem:[#allocation21_spill] sm:$0xff] }
 0x882   : > { %v3171_v7 = vmin.f32 %v3169_v29, %v3135_v14  ;;  %v3172_v23 = vmin.f32 %v3170_v31, %v3137_v18  ;;  %v7675_v31 = vld [vmem:[#allocation18_spill] sm:$0xff] }
 0x883   : > { %v3156_v6 = vmin.f32 %v3154_v36, %v3155_v58 }
 0x884   : > { %v3173_v47 = vmin.f32 %v3171_v7, %v3172_v23 }
 0x885   : > { %v3157_v40 = vrot.slane %v3156_v6, 1 }
 0x886   : > { %v3174_v34 = vrot.slane %v3173_v47, 4 }
 0x887   : > { %v7019_v28 = vmin.f32 %v3156_v6, %v3157_v40  ;;  %v7676_v40 = vld [vmem:[#allocation20_spill] sm:$0xff] }
 0x888   : > { %v3175_v44 = vmin.f32 %v3173_v47, %v3174_v34  ;;  %v7677_v34 = vld [vmem:[#allocation24_spill] sm:$0xff] }
 0x889   : > { %v4278_v46 = vtrunc.f32 %v7019_v28  ;;  %vm3182_vm12 = vcmp.eq.f32.partialorder %v4961_v33, %v7019_v28  ;;  %vm3184_vm1 = vcmp.eq.f32.partialorder %v4963_v35, %v7019_v28  ;;  %vm3186_vm3 = vcmp.eq.f32.partialorder %v4965_v38, %v7019_v28 }
 0x88a   : > { %v3176_v37 = vrot.slane %v3175_v44, 2  ;;  %vm4230_vm7 = vmpackc.low %vm3184_vm1, %vm3182_vm12  ;;  %vm3188_vm9 = vcmp.eq.f32.partialorder %v4967_v41, %v7019_v28  ;;  %vm3190_vm12 = vcmp.eq.f32.partialorder %v4969_v42, %v7019_v28  ;;  %vm3192_vm1 = vcmp.eq.f32.partialorder %v4973_v45, %v7019_v28 }
 0x88b   : > { %v4279_v5 = vcvt.f32.s32 %v4278_v46  ;;  %vm4234_vm13 = vmpackc.low %vm3188_vm9, %vm3186_vm3  ;;  %v7678_v46 = vld [vmem:[#allocation22_spill] sm:$0xff] }
 0x88c   : > { %v3177_v22 = vmin.f32 %v3175_v44, %v3176_v37 }
 0x88d   : > { %v3442_v10 = vsel %vm3441_vm11, %v7660_v57, %v4279_v5  ;;  %v7679_v5 = vld [vmem:[#allocation19_spill] sm:$0xff] }
 0x88e   : > { %v3178_v43 = vrot.slane %v3177_v22, 1 }
 0x890   : > { %v7024_v56 = vmin.f32 %v3177_v22, %v3178_v43 }
 0x892   : > { %vm3183_vm2 = vcmp.eq.f32.partialorder %v4961_v33, %v7024_v56  ;;  %vm3185_vm0 = vcmp.eq.f32.partialorder %v4963_v35, %v7024_v56  ;;  %vm3187_vm15 = vcmp.eq.f32.partialorder %v4965_v38, %v7024_v56  ;;  %vm3189_vm4 = vcmp.eq.f32.partialorder %v4967_v41, %v7024_v56  ;;  %v7662_v38 = vld [vmem:[#allocation37_spill] sm:$0xff] }
 0x893   : > { %vm4228_vm5 = vmpackc.low %vm3185_vm0, %vm3183_vm2  ;;  %vm3191_vm10 = vcmp.eq.f32.partialorder %v4969_v42, %v7024_v56  ;;  %vm3193_vm8 = vcmp.eq.f32.partialorder %v4973_v45, %v7024_v56  ;;  %v4280_v33 = vtrunc.f32 %v7024_v56  ;;  %vm3195_vm2 = vcmp.eq.f32.partialorder %v4975_v52, %v7024_v56  ;;  %v3980_v42 = vld [vmem:[%s7420_s2 + $0x60] sm:$0xff] }
 0x894   : > { %4229 = vmatprep.subr.msk.bf16.mxu0 %vm4228_vm5, %v7661_v26  ;;  %vm4232_vm6 = vmpackc.low %vm3189_vm4, %vm3187_vm15  ;;  %vm3197_vm0 = vcmp.eq.f32.partialorder %v4977_v53, %v7024_v56  ;;  %vm3194_vm5 = vcmp.eq.f32.partialorder %v4975_v52, %v7019_v28  ;;  %v7663_v45 = vmov 0.0   ;;  %v3981_v52 = vld [vmem:[%s7420_s2 + $0x68] sm:$0xff] }
 0x895   : > { %4231 = vmatpush1.bf16.msk.msra.mxu0 %vm4230_vm7, %v7661_v26  ;;  %v4281_v35 = vcvt.f32.s32 %v4280_v33  ;;  %vm4236_vm14 = vmpackc.low %vm3193_vm8, %vm3191_vm10  ;;  %vm3196_vm7 = vcmp.eq.f32.partialorder %v4977_v53, %v7019_v28  ;;  %vm3198_vm10 = vcmp.eq.f32.partialorder %v5011_v62, %v7019_v28  ;;  %vm3200_vm8 = vcmp.eq.f32.partialorder %v5013_v63, %v7019_v28  ;;  %v3982_v53 = vld [vmem:[%s7420_s2 + $0x70] sm:$0xff] }
 0x896   : > { %4233 = vmatprep.subr.msk.bf16.mxu0 %vm4232_vm6, %v7661_v26  ;;  %vm4238_vm15 = vmpackc.low %vm3192_vm1, %vm3190_vm12  ;;  %vm3201_vm6 = vcmp.eq.f32.partialorder %v5013_v63, %v7024_v56 }
 0x897   : > { %v3443_v41 = vsel %vm3441_vm11, %v7662_v38, %v4281_v35  ;;  %vm4240_vm4 = vmpackc.low %vm3197_vm0, %vm3195_vm2  ;;  %vm3199_vm11 = vcmp.eq.f32.partialorder %v5011_v62, %v7024_v56  ;;  %vm3202_vm2 = vcmp.eq.f32.partialorder %v5033_v9, %v7019_v28  ;;  %vm3204_vm0 = vcmp.eq.f32.partialorder %v7647_v17, %v7019_v28  ;;  %v3983_v62 = vld [vmem:[%s7420_s2 + $0x78] sm:$0xff] }
 0x898   : > { %v3444_v55 = vcombine.low %v3442_v10, %v3443_v41  ;;  %vm4242_vm3 = vmpackc.low %vm3196_vm7, %vm3194_vm5 }
 0x899   : > { %4235 = vmatpush1.bf16.msk.msra.mxu0 %vm4234_vm13, %v7661_v26  ;;  %vm4244_vm9 = vmpackc.low %vm3201_vm6, %vm3199_vm11  ;;  %vm3203_vm13 = vcmp.eq.f32.partialorder %v5033_v9, %v7024_v56  ;;  %vm3206_vm11 = vcmp.eq.f32.partialorder %v7648_v61, %v7019_v28  ;;  %vm3208_vm6 = vcmp.eq.f32.partialorder %v7649_v11, %v7019_v28  ;;  %v7664_v9 = vld [vmem:[#allocation38_spill] sm:$0xff] }
 0x89a   : > { %4237 = vmatprep.subr.msk.bf16.mxu0 %vm4236_vm14, %v7661_v26  ;;  %3445 = vst [vmem:[%s7068_s9] sm:$0xff] %v3444_v55  ;;  %vm3205_vm14 = vcmp.eq.f32.partialorder %v7647_v17, %v7024_v56  ;;  %vm4246_vm12 = vmpackc.low %vm3200_vm8, %vm3198_vm10 }
 0x89b   : > { %vm4248_vm1 = vmpackc.low %vm3205_vm14, %vm3203_vm13  ;;  %vm3210_vm13 = vcmp.eq.f32.partialorder %v7650_v59, %v7019_v28  ;;  %vm3212_vm14 = vcmp.eq.f32.partialorder %v7652_v16, %v7019_v28 }
 0x89c   : > { %vm4250_vm5 = vmpackc.low %vm3204_vm0, %vm3202_vm2 }
 0x89d   : > { %4239 = vmatpush1.bf16.msk.msra.mxu0 %vm4238_vm15, %v7661_v26  ;;  %vm3207_vm15 = vcmp.eq.f32.partialorder %v7648_v61, %v7024_v56  ;;  %vm4254_vm10 = vmpackc.low %vm3208_vm6, %vm3206_vm11 }
 0x89e   : > { %4241 = vmatprep.subr.msk.bf16.mxu0 %vm4240_vm4, %v7661_v26  ;;  %vm3209_vm4 = vcmp.eq.f32.partialorder %v7649_v11, %v7024_v56  ;;  %v7665_v11 = vld [vmem:[#allocation39_spill] sm:$0xff] }
 0x89f   : > { %vm4252_vm7 = vmpackc.low %vm3209_vm4, %vm3207_vm15 }
 0x8a1   : > { %4243 = vmatpush1.bf16.msk.msra.mxu0 %vm4242_vm3, %v7661_v26  ;;  %vm3211_vm3 = vcmp.eq.f32.partialorder %v7650_v59, %v7024_v56 }
 0x8a2   : > { %4245 = vmatprep.subr.msk.bf16.mxu0 %vm4244_vm9, %v7661_v26  ;;  %vm3213_vm9 = vcmp.eq.f32.partialorder %v7652_v16, %v7024_v56  ;;  %v7666_v16 = vld [vmem:[#allocation16_spill] sm:$0xff] }
 0x8a3   : > { %vm4256_vm8 = vmpackc.low %vm3213_vm9, %vm3211_vm3 }
 0x8a5   : > { %4247 = vmatpush1.bf16.msk.msra.mxu0 %vm4246_vm12, %v7661_v26  ;;  %vm4258_vm12 = vmpackc.low %vm3212_vm14, %vm3210_vm13 }
 0x8a6   : > { %4249 = vmatprep.subr.msk.bf16.mxu0 %vm4248_vm1, %v7661_v26  ;;  %vm7682_vm1 = vcmask 1040384  }
 0x8a7   : > { %vm7683_vm2 = vmmov %vm7682_vm1 }
 0x8a9   : > { %4251 = vmatpush1.bf16.msk.msra.mxu0 %vm4250_vm5, %v7661_v26 }
 0x8aa   : > { %4253 = vmatprep.subr.msk.bf16.mxu0 %vm4252_vm7, %v7661_v26 }
 0x8ad   : > { %4255 = vmatpush1.bf16.msk.msra.mxu0 %vm4254_vm10, %v7661_v26 }
 0x8ae   : > { %4257 = vmatprep.subr.msk.bf16.mxu0 %vm4256_vm8, %v7661_v26 }
 0x8b1   : > { %4259 = vmatpush1.bf16.msk.msra.mxu0 %vm4258_vm12, %v7661_v26 }
 0x8b4   : > { %3343 = vmatmul.mubr.f32.vlgmr.msra.gmra.mrb[72].mxu0 %v3980_v42 }
 0x8b5   : > { %3348 = vmatprep.mubr.f32.mxu0 %v7663_v45 }
 0x8b8   : > { %3349 = vmatmul.mubr.f32.gmra.mrb[74].mxu0 %v3981_v52 }
 0x8b9   : > { %3354 = vmatprep.mubr.f32.mxu0 %v7663_v45 }
 0x8bc   : > { %3355 = vmatmul.mubr.f32.gmra.mrb[76].mxu0 %v3982_v53 }
 0x8bd   : > { %3360 = vmatprep.mubr.f32.mxu0 %v7663_v45 }
 0x8c0   : > { %3361 = vmatmul.mubr.f32.gmra.mrb[78].mxu0 %v3983_v62 }
 0x987   : > { %v3344_v63 = vpop.f32.mrb[72].mxu0 }
 0x988   : > { %v3419_v17 = vadd.f32 %v3344_v63, %v7664_v9  ;;  %v3346_v61 = vpop.f32.mrb[73].mxu0  ;;  %v3367_v12 = vsub.f32 %v3344_v63, %v7666_v16 }
 0x989   : > { %v3420_v59 = vadd.f32 %v3346_v61, %v7665_v11  ;;  %v3368_v8 = vsub.f32 %v3346_v61, %v7667_v2  ;;  %v7681_v11 = vld [vmem:[#allocation35_spill] sm:$0xff] }
 0x98a   : > { %4080 = vst [vmem:[%s5293_s19 + $0xc0] sm:$0xff] %v3419_v17  ;;  %v3375_v0 = vmul.f32 %v3367_v12, %v3367_v12  ;;  %v7680_v17 = vld [vmem:[#allocation34_spill] sm:$0xff] }
 0x98b   : > { %4081 = vst [vmem:[%s5293_s19 + $0xc8] sm:$0xff] %v3420_v59  ;;  %v3350_v30 = vpop.f32.mrb[74].mxu0  ;;  %v3376_v19 = vmul.f32 %v3368_v8, %v3368_v8 }
 0x98c   : > { %v3369_v39 = vsub.f32 %v3350_v30, %v7668_v4  ;;  %v3421_v54 = vadd.f32 %v3350_v30, %v7669_v48  ;;  %v3352_v27 = vpop.f32.mrb[75].mxu0 }
 0x98d   : > { %v3370_v15 = vsub.f32 %v3352_v27, %v7670_v25  ;;  %v3422_v20 = vadd.f32 %v3352_v27, %v7671_v50 }
 0x98e   : > { %v3377_v21 = vmul.f32 %v3369_v39, %v3369_v39  ;;  %4082 = vst [vmem:[%s5293_s19 + $0xd0] sm:$0xff] %v3421_v54 }
 0x98f   : > { %v3378_v24 = vmul.f32 %v3370_v15, %v3370_v15  ;;  %4083 = vst [vmem:[%s5293_s19 + $0xd8] sm:$0xff] %v3422_v20  ;;  %v3356_v13 = vpop.f32.mrb[76].mxu0 }
 0x990   : > { %v3383_v36 = vadd.f32 %v3377_v21, %v3375_v0  ;;  %v3371_v49 = vsub.f32 %v3356_v13, %v7672_v51  ;;  %v3423_v32 = vadd.f32 %v3356_v13, %v7673_v3  ;;  %v3358_v58 = vpop.f32.mrb[77].mxu0 }
 0x991   : > { %v3392_v1 = vadd.f32 %v3378_v24, %v3376_v19  ;;  %v3372_v29 = vsub.f32 %v3358_v58, %v7674_v60  ;;  %v3424_v6 = vadd.f32 %v3358_v58, %v7675_v31 }
 0x992   : > { %v3379_v14 = vmul.f32 %v3371_v49, %v3371_v49  ;;  %4084 = vst [vmem:[%s5293_s19 + $0xe0] sm:$0xff] %v3423_v32 }
 0x993   : > { %v3380_v18 = vmul.f32 %v3372_v29, %v3372_v29  ;;  %4085 = vst [vmem:[%s5293_s19 + $0xe8] sm:$0xff] %v3424_v6  ;;  %v3362_v7 = vpop.f32.mrb[78].mxu0 }
 0x994   : > { %v3384_v23 = vadd.f32 %v3383_v36, %v3379_v14  ;;  %v3373_v47 = vsub.f32 %v3362_v7, %v7676_v40  ;;  %v3425_v28 = vadd.f32 %v3362_v7, %v7677_v34  ;;  %v3364_v44 = vpop.f32.mrb[79].mxu0 }
 0x995   : > { %v3393_v37 = vadd.f32 %v3392_v1, %v3380_v18  ;;  %v3374_v22 = vsub.f32 %v3364_v44, %v7678_v46  ;;  %v3426_v43 = vadd.f32 %v3364_v44, %v7679_v5 }
 0x996   : > { %v3381_v57 = vmul.f32 %v3373_v47, %v3373_v47  ;;  %4086 = vst [vmem:[%s5293_s19 + $0xf0] sm:$0xff] %v3425_v28 }
 0x997   : > { %v3382_v10 = vmul.f32 %v3374_v22, %v3374_v22  ;;  %4087 = vst [vmem:[%s5293_s19 + $0xf8] sm:$0xff] %v3426_v43 }
 0x998   : > { %v3385_v56 = vadd.f32 %v3384_v23, %v3381_v57 }
 0x999   : > { %v3394_v26 = vadd.f32 %v3393_v37, %v3382_v10 }
 0x99a   : > { %v3386_v33 = vrot.slane %v3385_v56, 4 }
 0x99b   : > { %v3395_v35 = vrot.slane %v3394_v26, 4 }
 0x99c   : > { %v3387_v38 = vadd.f32 %v3386_v33, %v3385_v56 }
 0x99d   : > { %v3396_v41 = vadd.f32 %v3395_v35, %v3394_v26 }
 0x99e   : > { %v3388_v55 = vrot.slane %v3387_v38, 2 }
 0x99f   : > { %v3397_v42 = vrot.slane %v3396_v41, 2 }
 0x9a0   : > { %v3389_v45 = vadd.f32 %v3388_v55, %v3387_v38 }
 0x9a1   : > { %v3398_v52 = vadd.f32 %v3397_v42, %v3396_v41 }
 0x9a2   : > { %v3390_v53 = vrot.slane %v3389_v45, 1 }
 0x9a3   : > { %v3399_v62 = vrot.slane %v3398_v52, 1 }
 0x9a4   : > { %v3391_v63 = vadd.f32 %v3390_v53, %v3389_v45 }
 0x9a5   : > { %v3400_v9 = vadd.f32 %v3399_v62, %v3398_v52 }
 0x9a6   : > { %v3402_v61 = vmul.f32 %v7680_v17, %v3391_v63 }
 0x9a7   : > { %v3403_v59 = vmul.f32 %v7681_v11, %v3400_v9 }
 0x9a8   : > { %v3404_v16 = vsel %vm7682_vm1, %v3402_v61, 0.0 }
 0x9a9   : > { %v3405_v12 = vsel %vm7683_vm2, %v3403_v59, 0.0 }
 0x9aa   : > { %v3406_v2 = vadd.f32 %v3405_v12, %v3404_v16 }
 0x9ac   : > { %3407 = vadd.xlane.f32.xlu0 %v3406_v2 }
 0x9ad   : > { %4362 = shalt.err (!%p4359_p5)
}
 0x9ae   : > { %s4363_s19 = scalar_lea.hbm %s7161_s10, 4096  ;;  %s4367_s29 = scalar_lea.hbm %s7269_s5, 12288 }
 0x9af   : > { %p4364_p7 = scmp.ne.s32.totalorder %s7161_s10, %s4363_s19  ;;  %p4368_p11 = scmp.lt.u32.totalorder %s7161_s10, %s7269_s5 }
 0x9b0   : > { %p4369_p12 = scmp.lt.u32.totalorder %s4367_s29, %s4363_s19  ;;  %p4371_p0 = scmp.lt.u32.totalorder %s4363_s19, %s7161_s10 }
 0x9b1   : > { %p4365_p9 = pnand %p4364_p7, %p4556_p6 }
 0x9b2   : > { %p4370_p13 = por %p4369_p12, %p4368_p11 }
 0x9b3   : > { %p4366_p10 = pneg %p4365_p9 }
 0x9b4   : > { %p4372_p1 = por %p4371_p0, %p4370_p13 }
 0x9b6   : > { %p4373_p2 = pnand %p4372_p1, %p4366_p10 }
 0x9b8   : > { %4376 = shalt.err (!%p4373_p2)
}
 0x9b9   : > { %s4477_s15 = smov 256   ;;  %s4478_s18 = smov 768  }
 0x9ba   : > { %s4479_s12 = smov 16   ;;  %s4098_s20 = sshll.u32 %s4538_s25, 7 }
 0x9bb   : > { %4285 = dma.vmem_to_hbm [thread:$0]  (%p4556_p6), %s7165_s13, 4096, %s7161_s10, %s7167_s14, %s4477_s15, %s4478_s18, %s4479_s12  }
 0x9bc   : > { %s3472_s28 = sshll.u32 %s7068_s9, 4  ;;  %s7196_s11 = scalar_lea.hbm %s7268_s4, %s4098_s20  ;;  %s3473_s28 = int_to_ptr.vmem [resolvable:$true] %s3472_s28 }
 0x9bd   : > { %s3449_s17 = scalar_lea.sflag [#allocation4], %s4575_s16  ;;  %s4377_s26 = scalar_lea.vmem %s3473_s28, 128 }
 0x9be   : > { %p4378_p3 = scmp.ne.s32.totalorder %s3473_s28, %s4377_s26  ;;  %s4480_s0 = smov [#allocation3]  }
 0x9bf   : > { %s4381_s1 = sshll.u32 %s4480_s0, 4  ;;  %s4382_s1 = int_to_ptr.vmem [resolvable:$false] %s4381_s1 }
 0x9c0   : > { %p4379_p4 = pnand %p4378_p3, %p4556_p6  ;;  %s4383_s2 = scalar_lea.vmem %s4382_s1, 256 }
 0x9c1   : > { %p4384_p7 = scmp.lt.s32.totalorder %s3473_s28, %s4382_s1  ;;  %p4385_p9 = scmp.lt.s32.totalorder %s4383_s2, %s4377_s26 }
 0x9c2   : > { %p4380_p5 = pneg %p4379_p4 }
 0x9c3   : > { %p4386_p10 = por %p4385_p9, %p4384_p7 }
 0x9c5   : > { %p4387_p11 = pnand %p4386_p10, %p4380_p5 }
 0x9c7   : > { %4390 = shalt.err (!%p4387_p11)
}
 0x9c8   : > { %s4391_s9 = scalar_lea.hbm %s7196_s11, 128  ;;  %s4395_s0 = scalar_lea.hbm %s7268_s4, 384 }
 0x9c9   : > { %p4392_p12 = scmp.ne.s32.totalorder %s7196_s11, %s4391_s9  ;;  %p4396_p1 = scmp.lt.u32.totalorder %s7196_s11, %s7268_s4 }
 0x9ca   : > { %p4397_p2 = scmp.lt.u32.totalorder %s4395_s0, %s4391_s9  ;;  %p4399_p4 = scmp.lt.u32.totalorder %s4391_s9, %s7196_s11 }
 0x9cb   : > { %p4393_p13 = pnand %p4392_p12, %p4556_p6 }
 0x9cc   : > { %p4398_p3 = por %p4397_p2, %p4396_p1 }
 0x9cd   : > { %p4394_p0 = pneg %p4393_p13 }
 0x9ce   : > { %p4400_p5 = por %p4399_p4, %p4398_p3 }
 0x9d0   : > { %p4401_p7 = pnand %p4400_p5, %p4394_p0 }
 0x9d2   : > { %4404 = shalt.err (!%p4401_p7)
}
 0x9d3   : > { %4284 = dma.vmem_to_hbm [thread:$0]  (%p4556_p6), %s3473_s28, 128, %s7196_s11, %s3449_s17   ;;  %v7684_v25 = vld [vmem:[#allocation30_spill] sm:$0xff]  ;;  %vm3446_vm7 = vcmask 24576  }
 0x9d4   : > { %s4265_s2 = spop %4264  ;;  %vm1857_vm0 = vcmp.eq.s32.totalorder %v7684_v25, 1  ;;  %vm1085_vm15 = vcmp.eq.s32.totalorder %v7684_v25, 0  ;;  %vm2629_vm4 = vcmp.eq.s32.totalorder %v7684_v25, 2  ;;  %vm3401_vm5 = vcmp.eq.s32.totalorder %v7684_v25, 3  ;;  %s4094_s12 = sshll.u32 %s4538_s25, 4 }
 0x9d5   : > { %s4271_s26 = spop %4270  ;;  %v1101_v50 = vstv %s4265_s2  ;;  %s300_s28 = scalar_lea.vmem [#allocation7], %s4575_s16 }
 0x9d6   : > { %s4277_s18 = spop %4276  ;;  %v1872_v15 = vstv %s4271_s26  ;;  %v1102_v21 = vsel %vm1085_vm15, %v1101_v50, 0.0  ;;  %s3501_s29 = sshll.u32 %s300_s28, 4  ;;  %s3502_s29 = int_to_ptr.vmem [resolvable:$true] %s3501_s29 }
 0x9d7   : > { %v2644_v20 = vstv %s4277_s18  ;;  %v1873_v0 = vsel %vm1857_vm0, %v1872_v15, 0.0  ;;  %s7225_s17 = scalar_lea.hbm %s7270_s6, %s4094_s12  ;;  %s4405_s9 = scalar_lea.vmem %s3502_s29, 16 }
 0x9d8   : > { %v2645_v19 = vsel %vm2629_vm4, %v2644_v20, 0.0  ;;  %v1874_v24 = vadd.f32 %v1873_v0, %v1102_v21  ;;  %p4406_p9 = scmp.ne.s32.totalorder %s3502_s29, %s4405_s9  ;;  %s4481_s25 = smov [#allocation7]  }
 0x9d9   : > { %s4409_s16 = sshll.u32 %s4481_s25, 4  ;;  %s4410_s16 = int_to_ptr.vmem [resolvable:$false] %s4409_s16 }
 0x9da   : > { %v2646_v13 = vadd.f32 %v2645_v19, %v1874_v24  ;;  %p4407_p10 = pnand %p4406_p9, %p4556_p6  ;;  %s4411_s10 = scalar_lea.vmem %s4410_s16, 32 }
 0x9db   : > { %p4412_p12 = scmp.lt.s32.totalorder %s3502_s29, %s4410_s16  ;;  %p4413_p13 = scmp.lt.s32.totalorder %s4411_s10, %s4405_s9 }
 0x9dc   : > { %p4408_p11 = pneg %p4407_p10 }
 0x9dd   : > { %p4414_p0 = por %p4413_p13, %p4412_p12 }
 0x9df   : > { %p4415_p1 = pnand %p4414_p0, %p4408_p11 }
 0xa39   : > { %v3408_v8 = vpop.xlane.xlu0 %3407 }
 0xa3a   : > { %v3409_v30 = vrot.slane %v3408_v8, 4 }
 0xa3c   : > { %v3410_v4 = vadd.f32 %v3409_v30, %v3408_v8 }
 0xa3e   : > { %v3411_v39 = vrot.slane %v3410_v4, 2 }
 0xa40   : > { %v3412_v48 = vadd.f32 %v3411_v39, %v3410_v4 }
 0xa42   : > { %v3413_v54 = vrot.slane %v3412_v48, 1 }
 0xa44   : > { %v3414_v27 = vadd.f32 %v3413_v54, %v3412_v48 }
 0xa46   : > { %4282 = vpush %v3414_v27 }
 0xa77   : > { %s4283_s20 = spop %4282 }
 0xa78   : > { %v3416_v36 = vstv %s4283_s20 }
 0xa79   : > { %v3417_v51 = vsel %vm3401_vm5, %v3416_v36, 0.0 }
 0xa7a   : > { %v3418_v49 = vadd.f32 %v3417_v51, %v2646_v13 }
 0xa7c   : > { %3447 = vst.msk [vmem:[%s300_s28] sm:$0x1] %vm3446_vm7, %v3418_v49 }
 0xa7d   : > { %4418 = shalt.err (!%p4415_p1)
}
 0xa7e   : > { %s4419_s13 = scalar_lea.hbm %s7225_s17, 16  ;;  %s4423_s1 = scalar_lea.hbm %s7270_s6, 48 }
 0xa7f   : > { %p4420_p2 = scmp.ne.s32.totalorder %s7225_s17, %s4419_s13  ;;  %p4424_p5 = scmp.lt.u32.totalorder %s7225_s17, %s7270_s6 }
 0xa80   : > { %p4425_p7 = scmp.lt.u32.totalorder %s4423_s1, %s4419_s13  ;;  %p4427_p10 = scmp.lt.u32.totalorder %s4419_s13, %s7225_s17 }
 0xa81   : > { %p4421_p3 = pnand %p4420_p2, %p4556_p6 }
 0xa82   : > { %p4426_p9 = por %p4425_p7, %p4424_p5 }
 0xa83   : > { %p4422_p4 = pneg %p4421_p3 }
 0xa84   : > { %p4428_p11 = por %p4427_p10, %p4426_p9 }
 0xa86   : > { %p4429_p12 = pnand %p4428_p11, %p4422_p4 }
 0xa88   : > { %4432 = shalt.err (!%p4429_p12)
}
 0xa89   : > { %4286 = dma.vmem_to_hbm [thread:$0]  (%p4556_p6), %s3502_s29, 16, %s7225_s17, %s7167_s14  }
 0xa8a PF: > { %p4300_p13 = scmp.ge.s32.totalorder %s4471_s24, 2  ;;  %s3513_s18 = sand.u32 1, %s4459_s21  }
 0xa8b   : > { %s3514_s12 = scalar_lea.sflag [#allocation4], %s3513_s18 }
 0xa8c   : > { %p4291_p0 = pnand %p4300_p13, %p4562_p8 }
 0xa8e   : > { %4450 = dma.done.wait (!%p4291_p0), %s3514_s12, 128  }
 0xa8f   : > { %4452 = vsyncadd (!%p4291_p0), %s3514_s12, 4294967168  ;;  %s7685_s20 = sadd.s32 4294967294, %s4471_s24  }
 0xa90   : > { %s3522_s28 = sand.u32 1, %s7685_s20  }
 0xa91   : > { %s3523_s19 = scalar_lea.sflag [#allocation6], %s3522_s28 }
 0xa92   : > { %4454 = dma.done.wait (!%p4291_p0), %s3523_s19, 4112  }
 0xa93   : > { %4456 = vsyncadd (!%p4291_p0), %s3523_s19, 4294963184  ;;  %p20_p6 = scmp.ge.s32.totalorder %s4542_s27, 5   ;;  %s7686_s21 = smov %s4463_s22 }
 0xa94   : > { %s7687_s22 = smov %s4467_s23  ;;  %s7688_s23 = smov %s4554_s30 }
 0xa95   : > { %s7689_s24 = smov %s4542_s27  ;;  %22 = sbr.rel (!%p20_p6) target bundleno = 9 (0x9), region = 143 }
 0xa9c   :  { %3536 = vsyncpa [#allocation4], 1 }
 0xa9d   :  { %3538 = vsyncpa [#allocation4 + $0x1], 1 }
 0xa9e   :  { %3539 = vsyncpa [#allocation6], 1 }
 0xa9f   :  { %3541 = vsyncpa [#allocation6 + $0x1], 1 }

</bundles_post_ra>
